<compile_context>
chip_gen: v7x
topology: tpu7x:2x2x1
jax: 0.10.0
libtpu: 0.0.40
codegen_flags: <defaults>
</compile_context>

<pallas_src>
from functools import partial

import jax
import jax.numpy as jnp
from jax import lax
from jax.experimental import pallas as pl
from jax.experimental.pallas import tpu as pltpu

C_INTERNAL = 128      # internal channel count (lane-dense)
HEAD_PAD = 128        # Linear(C, 1) head padded to 128 output lanes


def _round_up(x, m):
    return (x + m - 1) // m * m


# ----------------------------------------------------------------------------
# Fused per-sample kernel: the whole forward pass, no intermediate HBM traffic.
# ----------------------------------------------------------------------------
def senet_fused_kernel(a_ref, ws_ref, bs_ref, w1_ref, b1_ref, w2_ref, b2_ref,
                       sw1_ref, sb1_ref, sw2_ref, sb2_ref, wh_ref, bh_ref,
                       o_ref, y0_scr, y1_scr, *, H, W, Wa):
    """One sample per grid step (grid=(N,), 'parallel').

    Spatial layout: flattened zero-halo grid of shape (H+2, Wa) rows x C lanes,
    Wa = roundup(W+2, 8).  Real pixel (i, j) lives at flat row (i+1)*Wa+(j+1);
    the 3x3 conv then reads tap (dh, dw) as a CONTIGUOUS slice at static
    offset dh*Wa+dw (no strided gather / relayout).
    """
    Ha = H + 2
    HW = H * W
    C = w1_ref.shape[0]
    R_pad = Ha * Wa                     # rows of the halo-embedded layout
    R_out = H * Wa                      # rows of the conv-output layout
    R_scr = y1_scr.shape[0]
    f32, bf16 = jnp.float32, jnp.bfloat16

    # Slack tail rows of the y1 scratch are only ever read into discarded
    # columns by the last taps; zero them every step (cheap, and correct under
    # megacore partitioning of the batch axis — no program_id==0 init needed).
    y1_scr[R_pad:R_scr, :] = jnp.zeros((R_scr - R_pad, C), bf16)

    # Validity masks built from iota (no HBM traffic).
    pi = lax.broadcasted_iota(jnp.int32, (Ha, Wa, C), 0)
    qi = lax.broadcasted_iota(jnp.int32, (Ha, Wa, C), 1)
    m_pad = ((pi >= 1) & (pi <= H) & (qi >= 1) & (qi <= W)
             ).astype(f32).reshape(R_pad, C)         # interior of the halo grid
    qo = lax.broadcasted_iota(jnp.int32, (H, Wa, C), 1)
    m_out = (qo < W).astype(f32).reshape(R_out, C)   # valid output columns

    # ---- stem 3x3 conv (im2col GEMM, K=9*Cin, bf16 MXU / f32 acc) + ReLU ----
    y0 = jnp.dot(a_ref[0], ws_ref[...], preferred_element_type=f32)
    y0 = jnp.maximum(y0 + bs_ref[...], 0.0) * m_pad      # zero halo
    y0_scr[...] = y0                                     # residual source (f32)

    # ---- 1x1 conv + ReLU, fused (activation stays in VMEM) -----------------
    y1 = jnp.dot(y0.astype(bf16), w1_ref[...], preferred_element_type=f32)
    y1 = jnp.maximum(y1 + b1_ref[...], 0.0) * m_pad      # zero halo for SAME conv
    y1_scr[0:R_pad, :] = y1.astype(bf16)

    # ---- 3x3 conv: 9 contiguous tap slices, value accumulation (no RMW) ----
    acc = None
    for dh in range(3):
        for dw in range(3):
            off = dh * Wa + dw                           # static offset
            t = jnp.dot(y1_scr[off:off + R_out, :], w2_ref[dh * 3 + dw],
                        preferred_element_type=f32)
            acc = t if acc is None else acc + t
    y2 = (acc + b2_ref[...]) * m_out                     # (R_out, C), f32

    # ---- squeeze-excite (per-sample channel gate) ---------------------------
    pooled = jnp.sum(y2, axis=0, keepdims=True) * (1.0 / HW)        # (1, C)
    h = jnp.maximum(jnp.dot(pooled, sw1_ref[...],
                            preferred_element_type=f32) + sb1_ref[...], 0.0)
    s = jax.nn.sigmoid(jnp.dot(h, sw2_ref[...],
                               preferred_element_type=f32) + sb2_ref[...])

    # ---- rescale + residual add + ReLU (f32 elementwise) --------------------
    res = y0_scr[Wa + 1:Wa + 1 + R_out, :]               # y0 in output layout
    out = jnp.maximum(y2 * s + res, 0.0)                 # invalid cols stay 0

    # ---- classifier: GAP (1/HW folded into wh) + Linear, 128-lane padded ----
    pooled_out = jnp.sum(out, axis=0, keepdims=True)     # (1, C)
    o_ref[0] = jnp.dot(pooled_out, wh_ref[...],
                       preferred_element_type=f32) + bh_ref[...]


# ----------------------------------------------------------------------------
# pallas_call wrapper
# ----------------------------------------------------------------------------
def senet_fused(a, ws, bs, w1, b1, w2, b2, sw1, sb1, sw2, sb2, wh, bh,
                *, H, W, Wa):
    N, R_pad, K0 = a.shape
    C = w1.shape[0]
    CR = sw1.shape[1]
    HEAD = wh.shape[1]
    R_out = H * Wa
    R_scr = R_pad + Wa                                   # tap-slice slack rows

    flops = N * (2 * R_pad * K0 * C + 2 * R_pad * C * C + 18 * R_out * C * C
                 + 4 * C * CR + 2 * C * HEAD)
    bytes_accessed = (2 * (a.size + ws.size + w1.size + w2.size)
                      + 4 * (bs.size + b1.size + b2.size + sw1.size + sb1.size
                             + sw2.size + sb2.size + wh.size + bh.size)
                      + 4 * N * HEAD)

    return pl.pallas_call(
        partial(senet_fused_kernel, H=H, W=W, Wa=Wa),
        out_shape=jax.ShapeDtypeStruct((N, 1, HEAD), jnp.float32),
        grid_spec=pltpu.PrefetchScalarGridSpec(
            num_scalar_prefetch=0,
            grid=(N,),
            in_specs=[
                pl.BlockSpec((1, R_pad, K0), lambda n: (n, 0, 0)),  # im2col input
                pl.BlockSpec((K0, C), lambda n: (0, 0)),            # stem W
                pl.BlockSpec((1, C), lambda n: (0, 0)),             # stem b
                pl.BlockSpec((C, C), lambda n: (0, 0)),             # 1x1 W
                pl.BlockSpec((1, C), lambda n: (0, 0)),             # 1x1 b
                pl.BlockSpec((9, C, C), lambda n: (0, 0, 0)),       # 3x3 W
                pl.BlockSpec((1, C), lambda n: (0, 0)),             # 3x3 b
                pl.BlockSpec((C, CR), lambda n: (0, 0)),            # SE reduce W
                pl.BlockSpec((1, CR), lambda n: (0, 0)),            # SE reduce b
                pl.BlockSpec((CR, C), lambda n: (0, 0)),            # SE expand W
                pl.BlockSpec((1, C), lambda n: (0, 0)),             # SE expand b
                pl.BlockSpec((C, HEAD), lambda n: (0, 0)),          # head W (/HW)
                pl.BlockSpec((1, HEAD), lambda n: (0, 0)),          # head b
            ],
            out_specs=pl.BlockSpec((1, 1, HEAD), lambda n: (n, 0, 0)),
            scratch_shapes=[
                pltpu.VMEM((R_pad, C), jnp.float32),     # y0 (residual source)
                pltpu.VMEM((R_scr, C), jnp.bfloat16),    # y1, halo layout + slack
            ],
        ),
        compiler_params=pltpu.CompilerParams(
            dimension_semantics=("parallel",),           # batch across TCs (v7x)
            vmem_limit_bytes=32 * 1024 * 1024,
        ),
        cost_estimate=pl.CostEstimate(flops=flops, transcendentals=N * C,
                                      bytes_accessed=bytes_accessed),
    )(a, ws, bs, w1, b1, w2, b2, sw1, sb1, sw2, sb2, wh, bh)


# ----------------------------------------------------------------------------
# Parameters (BN folded as identity into biases) & forward pass
# ----------------------------------------------------------------------------
def init_params(key, cin=3, c=C_INTERNAL, reduction=8):
    cr = c // reduction
    ks = jax.random.split(key, 6)
    n = lambda k, shp, s=0.05: s * jax.random.normal(k, shp, jnp.float32)
    z = lambda shp: jnp.zeros(shp, jnp.float32)
    return {
        "w_stem": n(ks[0], (9, cin, c)), "b_stem": z((1, c)),   # 3x3 conv Cin->C
        "w1":     n(ks[1], (c, c)),      "b1":     z((1, c)),   # 1x1 conv C->C
        "w2":     n(ks[2], (9, c, c)),   "b2":     z((1, c)),   # 3x3 conv C->C
        "se_w1":  n(ks[3], (c, cr)),     "se_b1":  z((1, cr)),  # SE reduce
        "se_w2":  n(ks[4], (cr, c)),     "se_b2":  z((1, c)),   # SE expand
        "w_fc":   n(ks[5], (c, 1)),      "b_fc":   z((1, 1)),   # model.fc -> Linear(C,1)
    }


def senet_forward(x_nchw, params):
    N, Cin, H, W = x_nchw.shape
    C = params["w1"].shape[0]
    HW = H * W
    Ha = H + 2
    Wa = _round_up(W + 2, 8)            # halo'd width padded to 8 sublanes
    K0 = _round_up(9 * Cin, 8)          # stem contraction (27 -> 32)

    # Host-side im2col of the tiny Cin-channel input (K = 9*Cin), embedded in
    # the zero-halo (Ha, Wa) spatial layout, bf16 for the MXU.  This replaces
    # zero-padding RGB to 128 K-lanes (was ~97.7% wasted stem MXU work).
    x = jnp.transpose(x_nchw, (0, 2, 3, 1))                        # (N,H,W,Cin)
    xp = jnp.pad(x, ((0, 0), (1, 1), (1, 1), (0, 0)))              # SAME halo
    pats = jnp.concatenate(
        [xp[:, dh:dh + H, dw:dw + W, :] for dh in range(3) for dw in range(3)],
        axis=-1)                                                   # (N,H,W,9*Cin)
    pats = jnp.pad(pats, ((0, 0), (1, 1), (1, Wa - W - 1), (0, K0 - 9 * Cin)))
    a = pats.reshape(N, Ha * Wa, K0).astype(jnp.bfloat16)

    # bf16 MXU weights; biases / SE / head stay f32.
    ws = jnp.pad(params["w_stem"].reshape(9 * Cin, C),
                 ((0, K0 - 9 * Cin), (0, 0))).astype(jnp.bfloat16)
    w1 = params["w1"].astype(jnp.bfloat16)
    w2 = params["w2"].astype(jnp.bfloat16)

    # Head: fold 1/HW of the GAP into w_fc, pad to 128 lanes (lane-dense store).
    wh = jnp.zeros((C, HEAD_PAD), jnp.float32).at[:, 0].set(
        params["w_fc"][:, 0] / float(HW))
    bh = jnp.zeros((1, HEAD_PAD), jnp.float32).at[0, 0].set(params["b_fc"][0, 0])

    logits_pad = senet_fused(
        a, ws, params["b_stem"], w1, params["b1"], w2, params["b2"],
        params["se_w1"], params["se_b1"], params["se_w2"], params["se_b2"],
        wh, bh, H=H, W=W, Wa=Wa)                                   # (N, 1, 128)
    return logits_pad[:, 0, :1]                                    # (N, 1)


if __name__ == "__main__":
    N, Cin, H, W = 2, 3, 16, 16
    key = jax.random.PRNGKey(0)
    kx, kp = jax.random.split(key)
    x = jax.random.normal(kx, (N, Cin, H, W), jnp.float32)
    params = init_params(kp)

    fwd = jax.jit(lambda xx: senet_forward(xx, params))
    logits = fwd(x)
    jax.block_until_ready(logits)

    assert logits.shape == (N, 1) and logits.dtype == jnp.float32
    assert bool(jnp.all(jnp.isfinite(logits)))
    print("KERNEL_OK")
</pallas_src>

<mosaic_0001>
module attributes {stable_mosaic.version = 11 : i64} {
  func.func @senet_fused_kernel(%arg0: i32, %arg1: memref<1x432x32xbf16, #tpu.memory_space<vmem>>, %arg2: memref<32x128xbf16, #tpu.memory_space<vmem>>, %arg3: memref<1x128xf32, #tpu.memory_space<vmem>>, %arg4: memref<128x128xbf16, #tpu.memory_space<vmem>>, %arg5: memref<1x128xf32, #tpu.memory_space<vmem>>, %arg6: memref<9x128x128xbf16, #tpu.memory_space<vmem>>, %arg7: memref<1x128xf32, #tpu.memory_space<vmem>>, %arg8: memref<128x16xf32, #tpu.memory_space<vmem>>, %arg9: memref<1x16xf32, #tpu.memory_space<vmem>>, %arg10: memref<16x128xf32, #tpu.memory_space<vmem>>, %arg11: memref<1x128xf32, #tpu.memory_space<vmem>>, %arg12: memref<128x128xf32, #tpu.memory_space<vmem>>, %arg13: memref<1x128xf32, #tpu.memory_space<vmem>>, %arg14: memref<1x1x128xf32, #tpu.memory_space<vmem>>, %arg15: memref<432x128xf32, #tpu.memory_space<vmem>>, %arg16: memref<456x128xbf16, #tpu.memory_space<vmem>>) attributes {dimension_semantics = [#tpu.dimension_semantics<parallel>], iteration_bounds = array<i64: 2>, scalar_prefetch = 0 : i64, scratch_operands = 2 : i64, tpu.core_type = #tpu.core_type<tc>, window_params = [{transform_indices = @transform_0, window_bounds = array<i64: 1, 432, 32>}, {pipeline_mode = #tpu.pipeline_mode<synchronous>, transform_indices = @transform_1, window_bounds = array<i64: 32, 128>}, {pipeline_mode = #tpu.pipeline_mode<synchronous>, transform_indices = @transform_2, window_bounds = array<i64: 1, 128>}, {pipeline_mode = #tpu.pipeline_mode<synchronous>, transform_indices = @transform_3, window_bounds = array<i64: 128, 128>}, {pipeline_mode = #tpu.pipeline_mode<synchronous>, transform_indices = @transform_4, window_bounds = array<i64: 1, 128>}, {pipeline_mode = #tpu.pipeline_mode<synchronous>, transform_indices = @transform_5, window_bounds = array<i64: 9, 128, 128>}, {pipeline_mode = #tpu.pipeline_mode<synchronous>, transform_indices = @transform_6, window_bounds = array<i64: 1, 128>}, {pipeline_mode = #tpu.pipeline_mode<synchronous>, transform_indices = @transform_7, window_bounds = array<i64: 128, 16>}, {pipeline_mode = #tpu.pipeline_mode<synchronous>, transform_indices = @transform_8, window_bounds = array<i64: 1, 16>}, {pipeline_mode = #tpu.pipeline_mode<synchronous>, transform_indices = @transform_9, window_bounds = array<i64: 16, 128>}, {pipeline_mode = #tpu.pipeline_mode<synchronous>, transform_indices = @transform_10, window_bounds = array<i64: 1, 128>}, {pipeline_mode = #tpu.pipeline_mode<synchronous>, transform_indices = @transform_11, window_bounds = array<i64: 128, 128>}, {pipeline_mode = #tpu.pipeline_mode<synchronous>, transform_indices = @transform_12, window_bounds = array<i64: 1, 128>}, {transform_indices = @transform_13, window_bounds = array<i64: 1, 1, 128>}]} {
    %cst = arith.constant 0.000000e+00 : bf16
    %0 = vector.broadcast %cst : bf16 to vector<24x128xbf16>
    %c432 = arith.constant 432 : index
    %c0 = arith.constant 0 : index
    %1 = vector.load %arg16[%c432, %c0] : memref<456x128xbf16, #tpu.memory_space<vmem>>, vector<24x128xbf16>
    tpu.vector_store %arg16[%c432, %c0], %0 {strides = array<i32>} : memref<456x128xbf16, #tpu.memory_space<vmem>>, vector<24x128xbf16>,
    %2 = tpu.iota {dimensions = array<i32: 0>} : vector<18x24x128xi32>
    %3 = tpu.iota {dimensions = array<i32: 1>} : vector<18x24x128xi32>
    %c1_i32 = arith.constant 1 : i32
    %4 = vector.broadcast %c1_i32 : i32 to vector<18x24x128xi32>
    %5 = arith.cmpi sge, %2, %4 : vector<18x24x128xi32>
    %c16_i32 = arith.constant 16 : i32
    %6 = vector.broadcast %c16_i32 : i32 to vector<18x24x128xi32>
    %7 = arith.cmpi sle, %2, %6 : vector<18x24x128xi32>
    %8 = arith.andi %5, %7 : vector<18x24x128xi1>
    %c1_i32_0 = arith.constant 1 : i32
    %9 = vector.broadcast %c1_i32_0 : i32 to vector<18x24x128xi32>
    %10 = arith.cmpi sge, %3, %9 : vector<18x24x128xi32>
    %11 = arith.andi %8, %10 : vector<18x24x128xi1>
    %c16_i32_1 = arith.constant 16 : i32
    %12 = vector.broadcast %c16_i32_1 : i32 to vector<18x24x128xi32>
    %13 = arith.cmpi sle, %3, %12 : vector<18x24x128xi32>
    %14 = arith.andi %11, %13 : vector<18x24x128xi1>
    %15 = arith.extui %14 : vector<18x24x128xi1> to vector<18x24x128xi32>
    %16 = arith.sitofp %15 : vector<18x24x128xi32> to vector<18x24x128xf32>
    %17 = vector.shape_cast %16 : vector<18x24x128xf32> to vector<432x128xf32>
    %18 = tpu.iota {dimensions = array<i32: 1>} : vector<16x24x128xi32>
    %c16_i32_2 = arith.constant 16 : i32
    %19 = vector.broadcast %c16_i32_2 : i32 to vector<16x24x128xi32>
    %20 = arith.cmpi slt, %18, %19 : vector<16x24x128xi32>
    %21 = arith.extui %20 : vector<16x24x128xi1> to vector<16x24x128xi32>
    %22 = arith.sitofp %21 : vector<16x24x128xi32> to vector<16x24x128xf32>
    %23 = vector.shape_cast %22 : vector<16x24x128xf32> to vector<384x128xf32>
    %c0_3 = arith.constant 0 : index
    %c0_4 = arith.constant 0 : index
    %c0_5 = arith.constant 0 : index
    %24 = vector.load %arg1[%c0_3, %c0_4, %c0_5] : memref<1x432x32xbf16, #tpu.memory_space<vmem>>, vector<1x432x32xbf16>
    %25 = vector.shape_cast %24 : vector<1x432x32xbf16> to vector<432x32xbf16>
    %c0_6 = arith.constant 0 : index
    %c0_7 = arith.constant 0 : index
    %26 = vector.load %arg2[%c0_6, %c0_7] : memref<32x128xbf16, #tpu.memory_space<vmem>>, vector<32x128xbf16>
    %cst_8 = arith.constant dense<0.000000e+00> : vector<432x128xf32>
    %27 = tpu.matmul %25, %26, %cst_8 {dimension_numbers = #tpu.dot_dimension_numbers<[1], [0], [0], [1], [0, 0, 1, 1], [], []>} : vector<432x32xbf16>, vector<32x128xbf16>, vector<432x128xf32> -> vector<432x128xf32>
    %c0_9 = arith.constant 0 : index
    %c0_10 = arith.constant 0 : index
    %28 = vector.load %arg3[%c0_9, %c0_10] : memref<1x128xf32, #tpu.memory_space<vmem>>, vector<1x128xf32>
    %29 = vector.broadcast %28 : vector<1x128xf32> to vector<432x128xf32>
    %30 = arith.addf %27, %29 : vector<432x128xf32>
    %cst_11 = arith.constant 0.000000e+00 : f32
    %31 = vector.broadcast %cst_11 : f32 to vector<432x128xf32>
    %32 = arith.maximumf %30, %31 : vector<432x128xf32>
    %33 = arith.mulf %32, %17 : vector<432x128xf32>
    %c0_12 = arith.constant 0 : index
    %c0_13 = arith.constant 0 : index
    %34 = vector.load %arg15[%c0_12, %c0_13] : memref<432x128xf32, #tpu.memory_space<vmem>>, vector<432x128xf32>
    tpu.vector_store %arg15[%c0_12, %c0_13], %33 {strides = array<i32>} : memref<432x128xf32, #tpu.memory_space<vmem>>, vector<432x128xf32>,
    %35 = arith.truncf %33 : vector<432x128xf32> to vector<432x128xbf16>
    %c0_14 = arith.constant 0 : index
    %c0_15 = arith.constant 0 : index
    %36 = vector.load %arg4[%c0_14, %c0_15] : memref<128x128xbf16, #tpu.memory_space<vmem>>, vector<128x128xbf16>
    %cst_16 = arith.constant dense<0.000000e+00> : vector<432x128xf32>
    %37 = tpu.matmul %35, %36, %cst_16 {dimension_numbers = #tpu.dot_dimension_numbers<[1], [0], [0], [1], [0, 0, 1, 1], [], []>} : vector<432x128xbf16>, vector<128x128xbf16>, vector<432x128xf32> -> vector<432x128xf32>
    %c0_17 = arith.constant 0 : index
    %c0_18 = arith.constant 0 : index
    %38 = vector.load %arg5[%c0_17, %c0_18] : memref<1x128xf32, #tpu.memory_space<vmem>>, vector<1x128xf32>
    %39 = vector.broadcast %38 : vector<1x128xf32> to vector<432x128xf32>
    %40 = arith.addf %37, %39 : vector<432x128xf32>
    %cst_19 = arith.constant 0.000000e+00 : f32
    %41 = vector.broadcast %cst_19 : f32 to vector<432x128xf32>
    %42 = arith.maximumf %40, %41 : vector<432x128xf32>
    %43 = arith.mulf %42, %17 : vector<432x128xf32>
    %44 = arith.truncf %43 : vector<432x128xf32> to vector<432x128xbf16>
    %c0_20 = arith.constant 0 : index
    %c0_21 = arith.constant 0 : index
    %45 = vector.load %arg16[%c0_20, %c0_21] : memref<456x128xbf16, #tpu.memory_space<vmem>>, vector<432x128xbf16>
    tpu.vector_store %arg16[%c0_20, %c0_21], %44 {strides = array<i32>} : memref<456x128xbf16, #tpu.memory_space<vmem>>, vector<432x128xbf16>,
    %c0_22 = arith.constant 0 : index
    %c0_23 = arith.constant 0 : index
    %46 = vector.load %arg16[%c0_22, %c0_23] : memref<456x128xbf16, #tpu.memory_space<vmem>>, vector<384x128xbf16>
    %c0_24 = arith.constant 0 : index
    %c0_25 = arith.constant 0 : index
    %c0_26 = arith.constant 0 : index
    %47 = vector.load %arg6[%c0_24, %c0_25, %c0_26] : memref<9x128x128xbf16, #tpu.memory_space<vmem>>, vector<1x128x128xbf16>
    %48 = vector.shape_cast %47 : vector<1x128x128xbf16> to vector<128x128xbf16>
    %cst_27 = arith.constant dense<0.000000e+00> : vector<384x128xf32>
    %49 = tpu.matmul %46, %48, %cst_27 {dimension_numbers = #tpu.dot_dimension_numbers<[1], [0], [0], [1], [0, 0, 1, 1], [], []>} : vector<384x128xbf16>, vector<128x128xbf16>, vector<384x128xf32> -> vector<384x128xf32>
    %c1 = arith.constant 1 : index
    %c0_28 = arith.constant 0 : index
    %50 = vector.load %arg16[%c1, %c0_28] : memref<456x128xbf16, #tpu.memory_space<vmem>>, vector<384x128xbf16>
    %c1_29 = arith.constant 1 : index
    %c0_30 = arith.constant 0 : index
    %c0_31 = arith.constant 0 : index
    %51 = vector.load %arg6[%c1_29, %c0_30, %c0_31] : memref<9x128x128xbf16, #tpu.memory_space<vmem>>, vector<1x128x128xbf16>
    %52 = vector.shape_cast %51 : vector<1x128x128xbf16> to vector<128x128xbf16>
    %cst_32 = arith.constant dense<0.000000e+00> : vector<384x128xf32>
    %53 = tpu.matmul %50, %52, %cst_32 {dimension_numbers = #tpu.dot_dimension_numbers<[1], [0], [0], [1], [0, 0, 1, 1], [], []>} : vector<384x128xbf16>, vector<128x128xbf16>, vector<384x128xf32> -> vector<384x128xf32>
    %54 = arith.addf %49, %53 : vector<384x128xf32>
    %c2 = arith.constant 2 : index
    %c0_33 = arith.constant 0 : index
    %55 = vector.load %arg16[%c2, %c0_33] : memref<456x128xbf16, #tpu.memory_space<vmem>>, vector<384x128xbf16>
    %c2_34 = arith.constant 2 : index
    %c0_35 = arith.constant 0 : index
    %c0_36 = arith.constant 0 : index
    %56 = vector.load %arg6[%c2_34, %c0_35, %c0_36] : memref<9x128x128xbf16, #tpu.memory_space<vmem>>, vector<1x128x128xbf16>
    %57 = vector.shape_cast %56 : vector<1x128x128xbf16> to vector<128x128xbf16>
    %cst_37 = arith.constant dense<0.000000e+00> : vector<384x128xf32>
    %58 = tpu.matmul %55, %57, %cst_37 {dimension_numbers = #tpu.dot_dimension_numbers<[1], [0], [0], [1], [0, 0, 1, 1], [], []>} : vector<384x128xbf16>, vector<128x128xbf16>, vector<384x128xf32> -> vector<384x128xf32>
    %59 = arith.addf %54, %58 : vector<384x128xf32>
    %c24 = arith.constant 24 : index
    %c0_38 = arith.constant 0 : index
    %60 = vector.load %arg16[%c24, %c0_38] : memref<456x128xbf16, #tpu.memory_space<vmem>>, vector<384x128xbf16>
    %c3 = arith.constant 3 : index
    %c0_39 = arith.constant 0 : index
    %c0_40 = arith.constant 0 : index
    %61 = vector.load %arg6[%c3, %c0_39, %c0_40] : memref<9x128x128xbf16, #tpu.memory_space<vmem>>, vector<1x128x128xbf16>
    %62 = vector.shape_cast %61 : vector<1x128x128xbf16> to vector<128x128xbf16>
    %cst_41 = arith.constant dense<0.000000e+00> : vector<384x128xf32>
    %63 = tpu.matmul %60, %62, %cst_41 {dimension_numbers = #tpu.dot_dimension_numbers<[1], [0], [0], [1], [0, 0, 1, 1], [], []>} : vector<384x128xbf16>, vector<128x128xbf16>, vector<384x128xf32> -> vector<384x128xf32>
    %64 = arith.addf %59, %63 : vector<384x128xf32>
    %c25 = arith.constant 25 : index
    %c0_42 = arith.constant 0 : index
    %65 = vector.load %arg16[%c25, %c0_42] : memref<456x128xbf16, #tpu.memory_space<vmem>>, vector<384x128xbf16>
    %c4 = arith.constant 4 : index
    %c0_43 = arith.constant 0 : index
    %c0_44 = arith.constant 0 : index
    %66 = vector.load %arg6[%c4, %c0_43, %c0_44] : memref<9x128x128xbf16, #tpu.memory_space<vmem>>, vector<1x128x128xbf16>
    %67 = vector.shape_cast %66 : vector<1x128x128xbf16> to vector<128x128xbf16>
    %cst_45 = arith.constant dense<0.000000e+00> : vector<384x128xf32>
    %68 = tpu.matmul %65, %67, %cst_45 {dimension_numbers = #tpu.dot_dimension_numbers<[1], [0], [0], [1], [0, 0, 1, 1], [], []>} : vector<384x128xbf16>, vector<128x128xbf16>, vector<384x128xf32> -> vector<384x128xf32>
    %69 = arith.addf %64, %68 : vector<384x128xf32>
    %c26 = arith.constant 26 : index
    %c0_46 = arith.constant 0 : index
    %70 = vector.load %arg16[%c26, %c0_46] : memref<456x128xbf16, #tpu.memory_space<vmem>>, vector<384x128xbf16>
    %c5 = arith.constant 5 : index
    %c0_47 = arith.constant 0 : index
    %c0_48 = arith.constant 0 : index
    %71 = vector.load %arg6[%c5, %c0_47, %c0_48] : memref<9x128x128xbf16, #tpu.memory_space<vmem>>, vector<1x128x128xbf16>
    %72 = vector.shape_cast %71 : vector<1x128x128xbf16> to vector<128x128xbf16>
    %cst_49 = arith.constant dense<0.000000e+00> : vector<384x128xf32>
    %73 = tpu.matmul %70, %72, %cst_49 {dimension_numbers = #tpu.dot_dimension_numbers<[1], [0], [0], [1], [0, 0, 1, 1], [], []>} : vector<384x128xbf16>, vector<128x128xbf16>, vector<384x128xf32> -> vector<384x128xf32>
    %74 = arith.addf %69, %73 : vector<384x128xf32>
    %c48 = arith.constant 48 : index
    %c0_50 = arith.constant 0 : index
    %75 = vector.load %arg16[%c48, %c0_50] : memref<456x128xbf16, #tpu.memory_space<vmem>>, vector<384x128xbf16>
    %c6 = arith.constant 6 : index
    %c0_51 = arith.constant 0 : index
    %c0_52 = arith.constant 0 : index
    %76 = vector.load %arg6[%c6, %c0_51, %c0_52] : memref<9x128x128xbf16, #tpu.memory_space<vmem>>, vector<1x128x128xbf16>
    %77 = vector.shape_cast %76 : vector<1x128x128xbf16> to vector<128x128xbf16>
    %cst_53 = arith.constant dense<0.000000e+00> : vector<384x128xf32>
    %78 = tpu.matmul %75, %77, %cst_53 {dimension_numbers = #tpu.dot_dimension_numbers<[1], [0], [0], [1], [0, 0, 1, 1], [], []>} : vector<384x128xbf16>, vector<128x128xbf16>, vector<384x128xf32> -> vector<384x128xf32>
    %79 = arith.addf %74, %78 : vector<384x128xf32>
    %c49 = arith.constant 49 : index
    %c0_54 = arith.constant 0 : index
    %80 = vector.load %arg16[%c49, %c0_54] : memref<456x128xbf16, #tpu.memory_space<vmem>>, vector<384x128xbf16>
    %c7 = arith.constant 7 : index
    %c0_55 = arith.constant 0 : index
    %c0_56 = arith.constant 0 : index
    %81 = vector.load %arg6[%c7, %c0_55, %c0_56] : memref<9x128x128xbf16, #tpu.memory_space<vmem>>, vector<1x128x128xbf16>
    %82 = vector.shape_cast %81 : vector<1x128x128xbf16> to vector<128x128xbf16>
    %cst_57 = arith.constant dense<0.000000e+00> : vector<384x128xf32>
    %83 = tpu.matmul %80, %82, %cst_57 {dimension_numbers = #tpu.dot_dimension_numbers<[1], [0], [0], [1], [0, 0, 1, 1], [], []>} : vector<384x128xbf16>, vector<128x128xbf16>, vector<384x128xf32> -> vector<384x128xf32>
    %84 = arith.addf %79, %83 : vector<384x128xf32>
    %c50 = arith.constant 50 : index
    %c0_58 = arith.constant 0 : index
    %85 = vector.load %arg16[%c50, %c0_58] : memref<456x128xbf16, #tpu.memory_space<vmem>>, vector<384x128xbf16>
    %c8 = arith.constant 8 : index
    %c0_59 = arith.constant 0 : index
    %c0_60 = arith.constant 0 : index
    %86 = vector.load %arg6[%c8, %c0_59, %c0_60] : memref<9x128x128xbf16, #tpu.memory_space<vmem>>, vector<1x128x128xbf16>
    %87 = vector.shape_cast %86 : vector<1x128x128xbf16> to vector<128x128xbf16>
    %cst_61 = arith.constant dense<0.000000e+00> : vector<384x128xf32>
    %88 = tpu.matmul %85, %87, %cst_61 {dimension_numbers = #tpu.dot_dimension_numbers<[1], [0], [0], [1], [0, 0, 1, 1], [], []>} : vector<384x128xbf16>, vector<128x128xbf16>, vector<384x128xf32> -> vector<384x128xf32>
    %89 = arith.addf %84, %88 : vector<384x128xf32>
    %c0_62 = arith.constant 0 : index
    %c0_63 = arith.constant 0 : index
    %90 = vector.load %arg7[%c0_62, %c0_63] : memref<1x128xf32, #tpu.memory_space<vmem>>, vector<1x128xf32>
    %91 = vector.broadcast %90 : vector<1x128xf32> to vector<384x128xf32>
    %92 = arith.addf %89, %91 : vector<384x128xf32>
    %93 = arith.mulf %92, %23 : vector<384x128xf32>
    %cst_64 = arith.constant dense<0.000000e+00> : vector<128xf32>
    %94 = vector.multi_reduction <add>, %93, %cst_64 [0] : vector<384x128xf32> to vector<128xf32>
    %95 = vector.shape_cast %94 : vector<128xf32> to vector<1x128xf32>
    %cst_65 = arith.constant 3.906250e-03 : f32
    %96 = vector.broadcast %cst_65 : f32 to vector<1x128xf32>
    %97 = arith.mulf %95, %96 : vector<1x128xf32>
    %c0_66 = arith.constant 0 : index
    %c0_67 = arith.constant 0 : index
    %98 = vector.load %arg8[%c0_66, %c0_67] : memref<128x16xf32, #tpu.memory_space<vmem>>, vector<128x16xf32>
    %cst_68 = arith.constant dense<0.000000e+00> : vector<1x16xf32>
    %99 = tpu.matmul %97, %98, %cst_68 {dimension_numbers = #tpu.dot_dimension_numbers<[1], [0], [0], [1], [0, 0, 1, 1], [], []>} : vector<1x128xf32>, vector<128x16xf32>, vector<1x16xf32> -> vector<1x16xf32>
    %c0_69 = arith.constant 0 : index
    %c0_70 = arith.constant 0 : index
    %100 = vector.load %arg9[%c0_69, %c0_70] : memref<1x16xf32, #tpu.memory_space<vmem>>, vector<1x16xf32>
    %101 = arith.addf %99, %100 : vector<1x16xf32>
    %cst_71 = arith.constant 0.000000e+00 : f32
    %102 = vector.broadcast %cst_71 : f32 to vector<1x16xf32>
    %103 = arith.maximumf %101, %102 : vector<1x16xf32>
    %c0_72 = arith.constant 0 : index
    %c0_73 = arith.constant 0 : index
    %104 = vector.load %arg10[%c0_72, %c0_73] : memref<16x128xf32, #tpu.memory_space<vmem>>, vector<16x128xf32>
    %cst_74 = arith.constant dense<0.000000e+00> : vector<1x128xf32>
    %105 = tpu.matmul %103, %104, %cst_74 {dimension_numbers = #tpu.dot_dimension_numbers<[1], [0], [0], [1], [0, 0, 1, 1], [], []>} : vector<1x16xf32>, vector<16x128xf32>, vector<1x128xf32> -> vector<1x128xf32>
    %c0_75 = arith.constant 0 : index
    %c0_76 = arith.constant 0 : index
    %106 = vector.load %arg11[%c0_75, %c0_76] : memref<1x128xf32, #tpu.memory_space<vmem>>, vector<1x128xf32>
    %107 = arith.addf %105, %106 : vector<1x128xf32>
    %108 = arith.negf %107 : vector<1x128xf32>
    %109 = math.exp %108 : vector<1x128xf32>
    %cst_77 = arith.constant 1.000000e+00 : f32
    %110 = vector.broadcast %cst_77 : f32 to vector<1x128xf32>
    %111 = arith.addf %110, %109 : vector<1x128xf32>
    %112 = arith.divf %110, %111 : vector<1x128xf32>
    %c25_78 = arith.constant 25 : index
    %c0_79 = arith.constant 0 : index
    %113 = vector.load %arg15[%c25_78, %c0_79] : memref<432x128xf32, #tpu.memory_space<vmem>>, vector<384x128xf32>
    %114 = vector.broadcast %112 : vector<1x128xf32> to vector<384x128xf32>
    %115 = arith.mulf %93, %114 : vector<384x128xf32>
    %116 = arith.addf %115, %113 : vector<384x128xf32>
    %cst_80 = arith.constant 0.000000e+00 : f32
    %117 = vector.broadcast %cst_80 : f32 to vector<384x128xf32>
    %118 = arith.maximumf %116, %117 : vector<384x128xf32>
    %cst_81 = arith.constant dense<0.000000e+00> : vector<128xf32>
    %119 = vector.multi_reduction <add>, %118, %cst_81 [0] : vector<384x128xf32> to vector<128xf32>
    %120 = vector.shape_cast %119 : vector<128xf32> to vector<1x128xf32>
    %c0_82 = arith.constant 0 : index
    %c0_83 = arith.constant 0 : index
    %121 = vector.load %arg12[%c0_82, %c0_83] : memref<128x128xf32, #tpu.memory_space<vmem>>, vector<128x128xf32>
    %cst_84 = arith.constant dense<0.000000e+00> : vector<1x128xf32>
    %122 = tpu.matmul %120, %121, %cst_84 {dimension_numbers = #tpu.dot_dimension_numbers<[1], [0], [0], [1], [0, 0, 1, 1], [], []>} : vector<1x128xf32>, vector<128x128xf32>, vector<1x128xf32> -> vector<1x128xf32>
    %c0_85 = arith.constant 0 : index
    %c0_86 = arith.constant 0 : index
    %123 = vector.load %arg13[%c0_85, %c0_86] : memref<1x128xf32, #tpu.memory_space<vmem>>, vector<1x128xf32>
    %124 = arith.addf %122, %123 : vector<1x128xf32>
    %c0_87 = arith.constant 0 : index
    %c0_88 = arith.constant 0 : index
    %c0_89 = arith.constant 0 : index
    %125 = vector.load %arg14[%c0_87, %c0_88, %c0_89] : memref<1x1x128xf32, #tpu.memory_space<vmem>>, vector<1x1x128xf32>
    %126 = vector.shape_cast %125 : vector<1x1x128xf32> to vector<1x128xf32>
    %127 = vector.shape_cast %124 : vector<1x128xf32> to vector<1x1x128xf32>
    tpu.vector_store %arg14[%c0_87, %c0_88, %c0_89], %127 {strides = array<i32>} : memref<1x1x128xf32, #tpu.memory_space<vmem>>, vector<1x1x128xf32>,
    return
  }
  func.func @transform_0(%arg0: i32) -> (i32, i32, i32) {
    %c0_i32 = arith.constant 0 : i32
    %c0_i32_0 = arith.constant 0 : i32
    %c0_i32_1 = arith.constant 0 : i32
    return %arg0, %c0_i32, %c0_i32_0 : i32, i32, i32
  }
  func.func @transform_1(%arg0: i32) -> (i32, i32) {
    %c0_i32 = arith.constant 0 : i32
    %c0_i32_0 = arith.constant 0 : i32
    %c0_i32_1 = arith.constant 0 : i32
    return %c0_i32, %c0_i32_0 : i32, i32
  }
  func.func @transform_2(%arg0: i32) -> (i32, i32) {
    %c0_i32 = arith.constant 0 : i32
    %c0_i32_0 = arith.constant 0 : i32
    %c0_i32_1 = arith.constant 0 : i32
    return %c0_i32, %c0_i32_0 : i32, i32
  }
  func.func @transform_3(%arg0: i32) -> (i32, i32) {
    %c0_i32 = arith.constant 0 : i32
    %c0_i32_0 = arith.constant 0 : i32
    %c0_i32_1 = arith.constant 0 : i32
    return %c0_i32, %c0_i32_0 : i32, i32
  }
  func.func @transform_4(%arg0: i32) -> (i32, i32) {
    %c0_i32 = arith.constant 0 : i32
    %c0_i32_0 = arith.constant 0 : i32
    %c0_i32_1 = arith.constant 0 : i32
    return %c0_i32, %c0_i32_0 : i32, i32
  }
  func.func @transform_5(%arg0: i32) -> (i32, i32, i32) {
    %c0_i32 = arith.constant 0 : i32
    %c0_i32_0 = arith.constant 0 : i32
    %c0_i32_1 = arith.constant 0 : i32
    %c0_i32_2 = arith.constant 0 : i32
    return %c0_i32, %c0_i32_0, %c0_i32_1 : i32, i32, i32
  }
  func.func @transform_6(%arg0: i32) -> (i32, i32) {
    %c0_i32 = arith.constant 0 : i32
    %c0_i32_0 = arith.constant 0 : i32
    %c0_i32_1 = arith.constant 0 : i32
    return %c0_i32, %c0_i32_0 : i32, i32
  }
  func.func @transform_7(%arg0: i32) -> (i32, i32) {
    %c0_i32 = arith.constant 0 : i32
    %c0_i32_0 = arith.constant 0 : i32
    %c0_i32_1 = arith.constant 0 : i32
    return %c0_i32, %c0_i32_0 : i32, i32
  }
  func.func @transform_8(%arg0: i32) -> (i32, i32) {
    %c0_i32 = arith.constant 0 : i32
    %c0_i32_0 = arith.constant 0 : i32
    %c0_i32_1 = arith.constant 0 : i32
    return %c0_i32, %c0_i32_0 : i32, i32
  }
  func.func @transform_9(%arg0: i32) -> (i32, i32) {
    %c0_i32 = arith.constant 0 : i32
    %c0_i32_0 = arith.constant 0 : i32
    %c0_i32_1 = arith.constant 0 : i32
    return %c0_i32, %c0_i32_0 : i32, i32
  }
  func.func @transform_10(%arg0: i32) -> (i32, i32) {
    %c0_i32 = arith.constant 0 : i32
    %c0_i32_0 = arith.constant 0 : i32
    %c0_i32_1 = arith.constant 0 : i32
    return %c0_i32, %c0_i32_0 : i32, i32
  }
  func.func @transform_11(%arg0: i32) -> (i32, i32) {
    %c0_i32 = arith.constant 0 : i32
    %c0_i32_0 = arith.constant 0 : i32
    %c0_i32_1 = arith.constant 0 : i32
    return %c0_i32, %c0_i32_0 : i32, i32
  }
  func.func @transform_12(%arg0: i32) -> (i32, i32) {
    %c0_i32 = arith.constant 0 : i32
    %c0_i32_0 = arith.constant 0 : i32
    %c0_i32_1 = arith.constant 0 : i32
    return %c0_i32, %c0_i32_0 : i32, i32
  }
  func.func @transform_13(%arg0: i32) -> (i32, i32, i32) {
    %c0_i32 = arith.constant 0 : i32
    %c0_i32_0 = arith.constant 0 : i32
    %c0_i32_1 = arith.constant 0 : i32
    return %arg0, %c0_i32, %c0_i32_0 : i32, i32, i32
  }
}

</mosaic_0001>

<bundles_post_ra>
// kernel: _lambda_.1
= control target key start
LH: loop header
LB: loop body
LE: loop exit
PB: predicated region body
PF: predicated region fallthrough
CT: control target
= control target key end

     0   :  { %s10149_s25 = smov 0   ;;  %s11825_s0 = inlined_call_operand.vmem [shape: bf16[2,432,32], index: 0, kind: input, shape index: {}]   ;;  %s11826_s1 = inlined_call_operand.vmem [shape: bf16[32,128], index: 1, kind: input, shape index: {}]   ;;  %s11827_s2 = inlined_call_operand.vmem [shape: f32[1,128], index: 2, kind: input, shape index: {}, may-alias: {2,4,6,10,12}]   ;;  %s11828_s3 = inlined_call_operand.vmem [shape: bf16[128,128], index: 3, kind: input, shape index: {}]   ;;  %s11829_s4 = inlined_call_operand.vmem [shape: f32[1,128], index: 4, kind: input, shape index: {}, may-alias: {2,4,6,10,12}]   ;;  %s11830_s5 = inlined_call_operand.vmem [shape: bf16[9,128,128], index: 5, kind: input, shape index: {}]   ;;  %s11831_s6 = inlined_call_operand.vmem [shape: f32[1,128], index: 6, kind: input, shape index: {}, may-alias: {2,4,6,10,12}]   ;;  %s11832_s7 = inlined_call_operand.vmem [shape: f32[128,16], index: 7, kind: input, shape index: {}]   ;;  %s11833_s8 = inlined_call_operand.vmem [shape: f32[1,16], index: 8, kind: input, shape index: {}]   ;;  %s11834_s9 = inlined_call_operand.vmem [shape: f32[16,128], index: 9, kind: input, shape index: {}]   ;;  %s11835_s10 = inlined_call_operand.vmem [shape: f32[1,128], index: 10, kind: input, shape index: {}, may-alias: {2,4,6,10,12}]   ;;  %s11836_s11 = inlined_call_operand.vmem [shape: f32[128,128], index: 11, kind: input, shape index: {}]   ;;  %s11837_s12 = inlined_call_operand.vmem [shape: f32[1,128], index: 12, kind: input, shape index: {}, may-alias: {2,4,6,10,12}]   ;;  %s11838_s13 = inlined_call_operand.vmem [shape: f32[2,1,128], index: 13, kind: output, shape index: {}]  }
   0x1 LB: > { %s7388_s26 = sadd.s32 4294967295, %s10073_s25   ;;  %p7392_p0 = scmp.ge.s32.totalorder %s10073_s25, 1  ;;  %s10073_s25 = sphi %s10149_s25, %s23_s25  }
   0x2   : > { %p387_p1 = scmp.lt.s32.totalorder %s10073_s25, 3 }
   0x4   : > { %p388_p2 = pnand %p7392_p0, %p387_p1 }
   0x6   : > { %391 = sbr.rel (%p388_p2) target bundleno = 2269 (0x8dd), region = 72 }
   0xd   : > { %v9788_v0 = vld [vmem:[%s11826_s1] sm:$0xff]   ;;  %v11839_v1 = vmov 0.0   ;;  %v9789_v2 = vld [vmem:[%s11826_s1 + $0x8] sm:$0xff]   ;;  %vm10076_vm0 = vmmov 0   ;;  %p429_p3 = scmp.lt.s32.totalorder %s7388_s26, 1  ;;  %vm696_vm1 = vcmask 261120   ;;  %v441_v42 = vlaneseq }
   0xe   : > { %8451 = vmatprep.subr.bf16.mxu1 %v11839_v1  ;;  %8455 = vmatprep.mubr.msk.bf16.mxu1 %vm10076_vm0, %v11839_v1  ;;  %v9791_v3 = vld [vmem:[%s11828_s3] sm:$0xff]   ;;  %v9796_v5 = vld [vmem:[%s11828_s3 + $0x8] sm:$0xff]   ;;  %v9800_v7 = vld [vmem:[%s11828_s3 + $0x10] sm:$0xff]   ;;  %vm2931_vm4 = vcmask 1046528   ;;  %vm2119_vm5 = vsmask.f32 7424 }
   0xf   : > { %8452 = vmatpush3.bf16.msra.mxu1 %v9788_v0  ;;  %s11925_s26 = smov (!%p429_p3, %s7388_s26), 1  ;;  %v9804_v8 = vld [vmem:[%s11828_s3 + $0x18] sm:$0xff]   ;;  %v9809_v10 = vld [vmem:[%s11828_s3 + $0x20] sm:$0xff]   ;;  %v9813_v11 = vld [vmem:[%s11828_s3 + $0x28] sm:$0xff]   ;;  %v10322_v49 = vshrl.u32 %v441_v42, 7  ;;  %vm6924_vm6 = vcmask 130048  }
  0x10   : > { %8453 = vmatprep.subr.bf16.mxu1 %v11839_v1  ;;  %s9775_s14 = smul.u32 216, %s11925_s26  ;;  %v9818_v15 = vld [vmem:[%s11828_s3 + $0x30] sm:$0xff]   ;;  %v9822_v19 = vld [vmem:[%s11828_s3 + $0x38] sm:$0xff]   ;;  %v10316_v38 = vld [vmem:[%s11827_s2] ss:$0 sm:$0xff]  ;;  %s436_s24 = scalar_lea.vmem %s11838_s13, %s11925_s26 }
  0x11   : > { %11849 = vst [vmem:[#allocation4_spill] sm:$0xff] %v10322_v49  ;;  %vm445_vm2 = vcmp.ge.s32.totalorder %v10322_v49, 1  ;;  %v444_v62 = vadd.s32 16, %v10322_v49 }
  0x12   : > { %s10177_s19 = scalar_lea.vmem %s11825_s0, %s9775_s14  ;;  %v10330_v59 = vsel %vm445_vm2, 1.0, %v11839_v1 }
  0x13   : > { %8454 = vmatpush3.bf16.msra.mxu1 %v9789_v2  ;;  %v9790_v4 = vld [vmem:[%s10177_s19] sm:$0xff]   ;;  %v9792_v6 = vld [vmem:[%s10177_s19 + $0x8] sm:$0xff]   ;;  %v9793_v9 = vld [vmem:[%s10177_s19 + $0x10] sm:$0xff]   ;;  %vm456_vm3 = vcmp.le.s32.totalorder %v444_v62, 16 }
  0x14   : > { %8563 = vmatprep.subr.bf16.mxu1 %v11839_v1  ;;  %v9794_v12 = vld [vmem:[%s10177_s19 + $0x18] sm:$0xff]   ;;  %v9795_v13 = vld [vmem:[%s10177_s19 + $0x20] sm:$0xff]   ;;  %v9797_v14 = vld [vmem:[%s10177_s19 + $0x28] sm:$0xff]  }
  0x15   : > { %v9798_v16 = vld [vmem:[%s10177_s19 + $0x30] sm:$0xff]   ;;  %v9799_v17 = vld [vmem:[%s10177_s19 + $0x38] sm:$0xff]   ;;  %v9801_v18 = vld [vmem:[%s10177_s19 + $0x40] sm:$0xff]  }
  0x16   : > { %8456 = vmatmul.mubr.msk.bf16.vlgmr.msra.gmra.mrb[0].mxu1 %vm696_vm1, %v9790_v4  ;;  %v9802_v20 = vld [vmem:[%s10177_s19 + $0x48] sm:$0xff]   ;;  %v9803_v21 = vld [vmem:[%s10177_s19 + $0x50] sm:$0xff]   ;;  %v9805_v22 = vld [vmem:[%s10177_s19 + $0x58] sm:$0xff]  }
  0x17   : > { %8564 = vmatpush3.bf16.msra.mxu1 %v9791_v3  ;;  %8459 = vmatprep.mubr.msk.bf16.mxu1 %vm10076_vm0, %v11839_v1  ;;  %v9806_v23 = vld [vmem:[%s10177_s19 + $0x60] sm:$0xff]   ;;  %v9807_v24 = vld [vmem:[%s10177_s19 + $0x68] sm:$0xff]   ;;  %v9808_v25 = vld [vmem:[%s10177_s19 + $0x70] sm:$0xff]  }
  0x18   : > { %8565 = vmatprep.subr.bf16.mxu1 %v11839_v1  ;;  %v9810_v26 = vld [vmem:[%s10177_s19 + $0x78] sm:$0xff]   ;;  %v9811_v27 = vld [vmem:[%s10177_s19 + $0x80] sm:$0xff]   ;;  %v9812_v28 = vld [vmem:[%s10177_s19 + $0x88] sm:$0xff]  }
  0x19   : > { %v9814_v29 = vld [vmem:[%s10177_s19 + $0x90] sm:$0xff]   ;;  %v9815_v30 = vld [vmem:[%s10177_s19 + $0x98] sm:$0xff]   ;;  %v9816_v31 = vld [vmem:[%s10177_s19 + $0xa0] sm:$0xff]  }
  0x1a   : > { %v9817_v32 = vld [vmem:[%s10177_s19 + $0xa8] sm:$0xff]   ;;  %v9819_v33 = vld [vmem:[%s10177_s19 + $0xb0] sm:$0xff]   ;;  %v9820_v34 = vld [vmem:[%s10177_s19 + $0xb8] sm:$0xff]  }
  0x1b   : > { %8566 = vmatpush3.bf16.msra.mxu1 %v9796_v5  ;;  %v9821_v35 = vld [vmem:[%s10177_s19 + $0xc0] sm:$0xff]   ;;  %v9823_v36 = vld [vmem:[%s10177_s19 + $0xc8] sm:$0xff]   ;;  %v9824_v37 = vld [vmem:[%s10177_s19 + $0xd0] sm:$0xff]  }
  0x1c   : > { %8567 = vmatprep.subr.bf16.mxu1 %v11839_v1 }
  0x1e   : > { %8460 = vmatmul.mubr.msk.bf16.gmra.mrb[4].mxu1 %vm696_vm1, %v9792_v6 }
  0x1f   : > { %8463 = vmatprep.mubr.msk.bf16.mxu1 %vm10076_vm0, %v11839_v1  ;;  %8568 = vmatpush3.bf16.msra.mxu1 %v9800_v7 }
  0x20   : > { %8569 = vmatprep.subr.bf16.mxu1 %v11839_v1 }
  0x23   : > { %8570 = vmatpush3.bf16.msra.mxu1 %v9804_v8 }
  0x24   : > { %8571 = vmatprep.subr.bf16.mxu1 %v11839_v1 }
  0x26   : > { %8464 = vmatmul.mubr.msk.bf16.gmra.mrb[8].mxu1 %vm696_vm1, %v9793_v9  ;;  %v10339_v9 = vsel %vm456_vm3, 1.0, %v11839_v1 }
  0x27   : > { %8467 = vmatprep.mubr.msk.bf16.mxu1 %vm10076_vm0, %v11839_v1  ;;  %8572 = vmatpush3.bf16.msra.mxu1 %v9809_v10 }
  0x28   : > { %8573 = vmatprep.subr.bf16.mxu1 %v11839_v1 }
  0x2b   : > { %8574 = vmatpush3.bf16.msra.mxu1 %v9813_v11 }
  0x2c   : > { %8575 = vmatprep.subr.bf16.mxu1 %v11839_v1 }
  0x2e   : > { %8468 = vmatmul.mubr.msk.bf16.gmra.mrb[12].mxu1 %vm696_vm1, %v9794_v12 }
  0x2f   : > { %8471 = vmatprep.mubr.msk.bf16.mxu1 %vm10076_vm0, %v11839_v1  ;;  %8576 = vmatpush3.bf16.msra.mxu1 %v9818_v15 }
  0x30   : > { %8577 = vmatprep.subr.bf16.mxu1 %v11839_v1 }
  0x33   : > { %8578 = vmatpush3.bf16.msra.mxu1 %v9822_v19 }
  0x36   : > { %8472 = vmatmul.mubr.msk.bf16.gmra.mrb[16].mxu1 %vm696_vm1, %v9795_v13 }
  0x37   : > { %8475 = vmatprep.mubr.msk.bf16.mxu1 %vm10076_vm0, %v11839_v1 }
  0x3e   : > { %8476 = vmatmul.mubr.msk.bf16.gmra.mrb[20].mxu1 %vm696_vm1, %v9797_v14 }
  0x3f   : > { %8479 = vmatprep.mubr.msk.bf16.mxu1 %vm10076_vm0, %v11839_v1 }
  0x46   : > { %8480 = vmatmul.mubr.msk.bf16.gmra.mrb[24].mxu1 %vm696_vm1, %v9798_v16 }
  0x47   : > { %8483 = vmatprep.mubr.msk.bf16.mxu1 %vm10076_vm0, %v11839_v1 }
  0x4e   : > { %8484 = vmatmul.mubr.msk.bf16.gmra.mrb[28].mxu1 %vm696_vm1, %v9799_v17 }
  0x4f   : > { %8487 = vmatprep.mubr.msk.bf16.mxu1 %vm10076_vm0, %v11839_v1 }
  0x56   : > { %8488 = vmatmul.mubr.msk.bf16.gmra.mrb[32].mxu1 %vm696_vm1, %v9801_v18 }
  0x57   : > { %8491 = vmatprep.mubr.msk.bf16.mxu1 %vm10076_vm0, %v11839_v1 }
  0x5e   : > { %8492 = vmatmul.mubr.msk.bf16.gmra.mrb[36].mxu1 %vm696_vm1, %v9802_v20 }
  0x5f   : > { %8495 = vmatprep.mubr.msk.bf16.mxu1 %vm10076_vm0, %v11839_v1 }
  0x66   : > { %8496 = vmatmul.mubr.msk.bf16.gmra.mrb[40].mxu1 %vm696_vm1, %v9803_v21 }
  0x67   : > { %8499 = vmatprep.mubr.msk.bf16.mxu1 %vm10076_vm0, %v11839_v1 }
  0x6e   : > { %8500 = vmatmul.mubr.msk.bf16.gmra.mrb[44].mxu1 %vm696_vm1, %v9805_v22 }
  0x6f   : > { %8503 = vmatprep.mubr.msk.bf16.mxu1 %vm10076_vm0, %v11839_v1 }
  0x76   : > { %8504 = vmatmul.mubr.msk.bf16.gmra.mrb[48].mxu1 %vm696_vm1, %v9806_v23 }
  0x77   : > { %8507 = vmatprep.mubr.msk.bf16.mxu1 %vm10076_vm0, %v11839_v1 }
  0x7e   : > { %8508 = vmatmul.mubr.msk.bf16.gmra.mrb[52].mxu1 %vm696_vm1, %v9807_v24 }
  0x7f   : > { %8511 = vmatprep.mubr.msk.bf16.mxu1 %vm10076_vm0, %v11839_v1 }
  0x86   : > { %8512 = vmatmul.mubr.msk.bf16.gmra.mrb[56].mxu1 %vm696_vm1, %v9808_v25 }
  0x87   : > { %8515 = vmatprep.mubr.msk.bf16.mxu1 %vm10076_vm0, %v11839_v1 }
  0x8e   : > { %8516 = vmatmul.mubr.msk.bf16.gmra.mrb[60].mxu1 %vm696_vm1, %v9810_v26 }
  0x8f   : > { %8519 = vmatprep.mubr.msk.bf16.mxu1 %vm10076_vm0, %v11839_v1 }
  0x96   : > { %8520 = vmatmul.mubr.msk.bf16.gmra.mrb[64].mxu1 %vm696_vm1, %v9811_v27 }
  0x97   : > { %8523 = vmatprep.mubr.msk.bf16.mxu1 %vm10076_vm0, %v11839_v1 }
  0x9e   : > { %8524 = vmatmul.mubr.msk.bf16.gmra.mrb[68].mxu1 %vm696_vm1, %v9812_v28 }
  0x9f   : > { %8527 = vmatprep.mubr.msk.bf16.mxu1 %vm10076_vm0, %v11839_v1 }
  0xa6   : > { %8528 = vmatmul.mubr.msk.bf16.gmra.mrb[72].mxu1 %vm696_vm1, %v9814_v29 }
  0xa7   : > { %8531 = vmatprep.mubr.msk.bf16.mxu1 %vm10076_vm0, %v11839_v1 }
  0xae   : > { %8532 = vmatmul.mubr.msk.bf16.gmra.mrb[76].mxu1 %vm696_vm1, %v9815_v30 }
  0xaf   : > { %8535 = vmatprep.mubr.msk.bf16.mxu1 %vm10076_vm0, %v11839_v1 }
  0xb6   : > { %8536 = vmatmul.mubr.msk.bf16.gmra.mrb[80].mxu1 %vm696_vm1, %v9816_v31 }
  0xb7   : > { %8539 = vmatprep.mubr.msk.bf16.mxu1 %vm10076_vm0, %v11839_v1 }
  0xbe   : > { %8540 = vmatmul.mubr.msk.bf16.gmra.mrb[84].mxu1 %vm696_vm1, %v9817_v32 }
  0xbf   : > { %8543 = vmatprep.mubr.msk.bf16.mxu1 %vm10076_vm0, %v11839_v1 }
  0xc6   : > { %8544 = vmatmul.mubr.msk.bf16.gmra.mrb[88].mxu1 %vm696_vm1, %v9819_v33 }
  0xc7   : > { %8547 = vmatprep.mubr.msk.bf16.mxu1 %vm10076_vm0, %v11839_v1 }
  0xce   : > { %8548 = vmatmul.mubr.msk.bf16.gmra.mrb[92].mxu1 %vm696_vm1, %v9820_v34 }
  0xcf   : > { %8551 = vmatprep.mubr.msk.bf16.mxu1 %vm10076_vm0, %v11839_v1 }
  0xd6   : > { %8552 = vmatmul.mubr.msk.bf16.gmra.mrb[96].mxu1 %vm696_vm1, %v9821_v35 }
  0xd7   : > { %8555 = vmatprep.mubr.msk.bf16.mxu1 %vm10076_vm0, %v11839_v1 }
  0xde   : > { %8556 = vmatmul.mubr.msk.bf16.gmra.mrb[100].mxu1 %vm696_vm1, %v9823_v36 }
  0xdf   : > { %8559 = vmatprep.mubr.msk.bf16.mxu1 %vm10076_vm0, %v11839_v1 }
  0xe6   : > { %8560 = vmatmul.mubr.msk.bf16.gmra.mrb[104].mxu1 %vm696_vm1, %v9824_v37 }
  0xe7   : > { %8579 = vmatprep.mubr.msk.bf16.mxu1 %vm10076_vm0, %v11839_v1 }
  0xe9   : > { %v812_v39 = vpop.f32.mrb[0].mxu1 }
  0xea   : > { %v813_v40 = vadd.f32 %v10316_v38, %v812_v39  ;;  %v8457_v41 = vpop.f32.mrb[1].mxu1 }
  0xeb   : > { %v815_v43 = vpop.f32.mrb[2].mxu1 }
  0xec   : > { %v1027_v44 = vmax.f32 %v813_v40, 0.0  ;;  %v816_v45 = vadd.f32 %v10316_v38, %v815_v43  ;;  %v8458_v46 = vpop.f32.mrb[3].mxu1 }
  0xee   : > { %v1081_v47 = vmul.f32 0.0, %v1027_v44  ;;  %v1028_v48 = vmax.f32 %v816_v45, 0.0 }
  0xf0   : > { %v1082_v50 = vmul.f32 0.0, %v1028_v48 }
  0xf1   : > { %v820_v51 = vpop.f32.mrb[4].mxu1 }
  0xf2   : > { %v1189_v52 = vpack.c.bf16 %v1082_v50, %v1081_v47  ;;  %v821_v53 = vadd.f32 %v10316_v38, %v820_v51  ;;  %v8461_v54 = vpop.f32.mrb[5].mxu1 }
  0xf3   : > { %v823_v55 = vpop.f32.mrb[6].mxu1 }
  0xf4   : > { %v1029_v56 = vmax.f32 %v821_v53, 0.0  ;;  %v824_v57 = vadd.f32 %v10316_v38, %v823_v55  ;;  %v8462_v58 = vpop.f32.mrb[7].mxu1  ;;  %8580 = vmatmul.mubr.bf16.vlgmr.msra.gmra.mrb[108].mxu1 %v1189_v52 }
  0xf5   : > { %8583 = vmatprep.mubr.msk.bf16.mxu1 %vm10076_vm0, %v11839_v1 }
  0xf6   : > { %v1030_v60 = vmax.f32 %v824_v57, 0.0  ;;  %v1083_v61 = vmul.f32 0.0, %v1029_v56 }
  0xf8   : > { %v1084_v63 = vmul.f32 %v10330_v59, %v1030_v60 }
  0xf9   : > { %v828_v0 = vpop.f32.mrb[8].mxu1 }
  0xfa   : > { %v829_v2 = vadd.f32 %v10316_v38, %v828_v0  ;;  %v8465_v3 = vpop.f32.mrb[9].mxu1  ;;  %1138 = vst [vmem:[#allocation2 + $0x18] sm:$0xff] %v1084_v63  ;;  %v1190_v4 = vpack.c.bf16 %v1084_v63, %v1083_v61 }
  0xfb   : > { %v831_v5 = vpop.f32.mrb[10].mxu1 }
  0xfc   : > { %v1031_v6 = vmax.f32 %v829_v2, 0.0  ;;  %v832_v7 = vadd.f32 %v10316_v38, %v831_v5  ;;  %v8466_v8 = vpop.f32.mrb[11].mxu1  ;;  %8584 = vmatmul.mubr.bf16.gmra.mrb[112].mxu1 %v1190_v4 }
  0xfd   : > { %8587 = vmatprep.mubr.msk.bf16.mxu1 %vm10076_vm0, %v11839_v1 }
  0xfe   : > { %1139 = vst [vmem:[#allocation2 + $0x20] sm:$0xff] %v1031_v6  ;;  %v1032_v10 = vmax.f32 %v832_v7, 0.0 }
 0x100   : > { %v1086_v11 = vmul.f32 %v10339_v9, %v1032_v10 }
 0x101   : > { %v836_v12 = vpop.f32.mrb[12].mxu1 }
 0x102   : > { %v837_v13 = vadd.f32 %v10316_v38, %v836_v12  ;;  %v8469_v14 = vpop.f32.mrb[13].mxu1  ;;  %1140 = vst [vmem:[#allocation2 + $0x28] sm:$0xff] %v1086_v11  ;;  %v1191_v15 = vpack.c.bf16 %v1086_v11, %v1031_v6 }
 0x103   : > { %v839_v16 = vpop.f32.mrb[14].mxu1 }
 0x104   : > { %v1033_v17 = vmax.f32 %v837_v13, 0.0  ;;  %v840_v18 = vadd.f32 %v10316_v38, %v839_v16  ;;  %v8470_v19 = vpop.f32.mrb[15].mxu1  ;;  %8588 = vmatmul.mubr.bf16.gmra.mrb[116].mxu1 %v1191_v15 }
 0x105   : > { %8591 = vmatprep.mubr.msk.bf16.mxu1 %vm10076_vm0, %v11839_v1 }
 0x106   : > { %v1034_v20 = vmax.f32 %v840_v18, 0.0  ;;  %v1087_v21 = vmul.f32 %v10330_v59, %v1033_v17 }
 0x108   : > { %1141 = vst [vmem:[#allocation2 + $0x30] sm:$0xff] %v1087_v21  ;;  %1142 = vst [vmem:[#allocation2 + $0x38] sm:$0xff] %v1034_v20  ;;  %v1192_v22 = vpack.c.bf16 %v1034_v20, %v1087_v21 }
 0x109   : > { %v844_v23 = vpop.f32.mrb[16].mxu1 }
 0x10a   : > { %v845_v24 = vadd.f32 %v10316_v38, %v844_v23  ;;  %v8473_v25 = vpop.f32.mrb[17].mxu1 }
 0x10b   : > { %v847_v26 = vpop.f32.mrb[18].mxu1 }
 0x10c   : > { %v1035_v27 = vmax.f32 %v845_v24, 0.0  ;;  %v848_v28 = vadd.f32 %v10316_v38, %v847_v26  ;;  %v8474_v29 = vpop.f32.mrb[19].mxu1  ;;  %8592 = vmatmul.mubr.bf16.gmra.mrb[120].mxu1 %v1192_v22 }
 0x10d   : > { %8595 = vmatprep.mubr.msk.bf16.mxu1 %vm10076_vm0, %v11839_v1 }
 0x10e   : > { %v1089_v30 = vmul.f32 %v10339_v9, %v1035_v27  ;;  %v1036_v31 = vmax.f32 %v848_v28, 0.0 }
 0x110   : > { %1143 = vst [vmem:[#allocation2 + $0x40] sm:$0xff] %v1089_v30  ;;  %v1090_v32 = vmul.f32 %v10330_v59, %v1036_v31 }
 0x111   : > { %v852_v33 = vpop.f32.mrb[20].mxu1 }
 0x112   : > { %1144 = vst [vmem:[#allocation2 + $0x48] sm:$0xff] %v1090_v32  ;;  %v853_v34 = vadd.f32 %v10316_v38, %v852_v33  ;;  %v8477_v35 = vpop.f32.mrb[21].mxu1  ;;  %v1193_v36 = vpack.c.bf16 %v1090_v32, %v1089_v30 }
 0x113   : > { %v855_v37 = vpop.f32.mrb[22].mxu1 }
 0x114   : > { %v1037_v39 = vmax.f32 %v853_v34, 0.0  ;;  %v856_v40 = vadd.f32 %v10316_v38, %v855_v37  ;;  %v8478_v41 = vpop.f32.mrb[23].mxu1  ;;  %8596 = vmatmul.mubr.bf16.gmra.mrb[124].mxu1 %v1193_v36 }
 0x115   : > { %8599 = vmatprep.mubr.msk.bf16.mxu1 %vm10076_vm0, %v11839_v1 }
 0x116   : > { %1145 = vst [vmem:[#allocation2 + $0x50] sm:$0xff] %v1037_v39  ;;  %v1038_v42 = vmax.f32 %v856_v40, 0.0 }
 0x118   : > { %v1092_v43 = vmul.f32 %v10339_v9, %v1038_v42 }
 0x119   : > { %v860_v44 = vpop.f32.mrb[24].mxu1 }
 0x11a   : > { %1146 = vst [vmem:[#allocation2 + $0x58] sm:$0xff] %v1092_v43  ;;  %v861_v45 = vadd.f32 %v10316_v38, %v860_v44  ;;  %v8481_v46 = vpop.f32.mrb[25].mxu1  ;;  %v1194_v47 = vpack.c.bf16 %v1092_v43, %v1037_v39 }
 0x11b   : > { %v863_v48 = vpop.f32.mrb[26].mxu1 }
 0x11c   : > { %v1039_v50 = vmax.f32 %v861_v45, 0.0  ;;  %v864_v51 = vadd.f32 %v10316_v38, %v863_v48  ;;  %v8482_v52 = vpop.f32.mrb[27].mxu1  ;;  %8600 = vmatmul.mubr.bf16.gmra.mrb[128].mxu1 %v1194_v47 }
 0x11d   : > { %8603 = vmatprep.mubr.msk.bf16.mxu1 %vm10076_vm0, %v11839_v1 }
 0x11e   : > { %v1093_v53 = vmul.f32 %v10330_v59, %v1039_v50  ;;  %v1040_v54 = vmax.f32 %v864_v51, 0.0 }
 0x120   : > { %1147 = vst [vmem:[#allocation2 + $0x60] sm:$0xff] %v1093_v53  ;;  %1148 = vst [vmem:[#allocation2 + $0x68] sm:$0xff] %v1040_v54  ;;  %v1195_v55 = vpack.c.bf16 %v1040_v54, %v1093_v53 }
 0x121   : > { %v868_v56 = vpop.f32.mrb[28].mxu1 }
 0x122   : > { %v869_v57 = vadd.f32 %v10316_v38, %v868_v56  ;;  %v8485_v58 = vpop.f32.mrb[29].mxu1  ;;  %v9825_v56 = vld [vmem:[%s11830_s5 + $0x80] sm:$0xff]  }
 0x123   : > { %v871_v60 = vpop.f32.mrb[30].mxu1  ;;  %8815 = vmatprep.subr.bf16.mxu0 %v9825_v56 }
 0x124   : > { %v1041_v61 = vmax.f32 %v869_v57, 0.0  ;;  %v872_v62 = vadd.f32 %v10316_v38, %v871_v60  ;;  %v8486_v63 = vpop.f32.mrb[31].mxu1  ;;  %8604 = vmatmul.mubr.bf16.gmra.mrb[132].mxu1 %v1195_v55  ;;  %v9826_v60 = vld [vmem:[%s11830_s5 + $0x40] sm:$0xff]   ;;  %8816 = vmatpush3.bf16.msra.mxu0 %v9825_v56 }
 0x125   : > { %8607 = vmatprep.mubr.msk.bf16.mxu1 %vm10076_vm0, %v11839_v1  ;;  %8687 = vmatprep.subr.bf16.mxu1 %v9826_v60 }
 0x126   : > { %v1095_v0 = vmul.f32 %v10339_v9, %v1041_v61  ;;  %v1042_v2 = vmax.f32 %v872_v62, 0.0  ;;  %v9827_v62 = vld [vmem:[%s11830_s5 + $0x88] sm:$0xff]   ;;  %8688 = vmatpush3.bf16.msra.mxu1 %v9826_v60 }
 0x127   : > { %8817 = vmatprep.subr.bf16.mxu0 %v9827_v62 }
 0x128   : > { %1149 = vst [vmem:[#allocation2 + $0x70] sm:$0xff] %v1095_v0  ;;  %v1096_v3 = vmul.f32 %v10330_v59, %v1042_v2  ;;  %8818 = vmatpush3.bf16.msra.mxu0 %v9827_v62 }
 0x129   : > { %v876_v4 = vpop.f32.mrb[32].mxu1 }
 0x12a   : > { %1150 = vst [vmem:[#allocation2 + $0x78] sm:$0xff] %v1096_v3  ;;  %v877_v5 = vadd.f32 %v10316_v38, %v876_v4  ;;  %v8489_v6 = vpop.f32.mrb[33].mxu1  ;;  %v1196_v7 = vpack.c.bf16 %v1096_v3, %v1095_v0  ;;  %v9828_v3 = vld [vmem:[%s11830_s5 + $0x48] sm:$0xff]  }
 0x12b   : > { %v879_v8 = vpop.f32.mrb[34].mxu1  ;;  %8689 = vmatprep.subr.bf16.mxu1 %v9828_v3 }
 0x12c   : > { %v1043_v10 = vmax.f32 %v877_v5, 0.0  ;;  %v880_v11 = vadd.f32 %v10316_v38, %v879_v8  ;;  %v8490_v12 = vpop.f32.mrb[35].mxu1  ;;  %8608 = vmatmul.mubr.bf16.gmra.mrb[136].mxu1 %v1196_v7  ;;  %v9829_v8 = vld [vmem:[%s11830_s5 + $0x90] sm:$0xff]  }
 0x12d   : > { %8611 = vmatprep.mubr.msk.bf16.mxu1 %vm10076_vm0, %v11839_v1  ;;  %8690 = vmatpush3.bf16.msra.mxu1 %v9828_v3  ;;  %v9830_v12 = vld [vmem:[%s11830_s5 + $0x50] sm:$0xff]  }
 0x12e   : > { %1151 = vst [vmem:[#allocation2 + $0x80] sm:$0xff] %v1043_v10  ;;  %v1044_v13 = vmax.f32 %v880_v11, 0.0  ;;  %8819 = vmatprep.subr.bf16.mxu0 %v9829_v8  ;;  %8691 = vmatprep.subr.bf16.mxu1 %v9830_v12 }
 0x12f   : > { %8820 = vmatpush3.bf16.msra.mxu0 %v9829_v8 }
 0x130   : > { %v1098_v14 = vmul.f32 %v10339_v9, %v1044_v13 }
 0x131   : > { %v884_v15 = vpop.f32.mrb[36].mxu1  ;;  %8692 = vmatpush3.bf16.msra.mxu1 %v9830_v12 }
 0x132   : > { %1152 = vst [vmem:[#allocation2 + $0x88] sm:$0xff] %v1098_v14  ;;  %v885_v16 = vadd.f32 %v10316_v38, %v884_v15  ;;  %v8493_v17 = vpop.f32.mrb[37].mxu1  ;;  %v1197_v18 = vpack.c.bf16 %v1098_v14, %v1043_v10  ;;  %v9831_v14 = vld [vmem:[%s11830_s5 + $0x98] sm:$0xff]  }
 0x133   : > { %v887_v19 = vpop.f32.mrb[38].mxu1  ;;  %8821 = vmatprep.subr.bf16.mxu0 %v9831_v14 }
 0x134   : > { %v1045_v20 = vmax.f32 %v885_v16, 0.0  ;;  %v888_v21 = vadd.f32 %v10316_v38, %v887_v19  ;;  %v8494_v22 = vpop.f32.mrb[39].mxu1  ;;  %8612 = vmatmul.mubr.bf16.gmra.mrb[140].mxu1 %v1197_v18  ;;  %v9832_v19 = vld [vmem:[%s11830_s5 + $0x58] sm:$0xff]   ;;  %8822 = vmatpush3.bf16.msra.mxu0 %v9831_v14 }
 0x135   : > { %8615 = vmatprep.mubr.msk.bf16.mxu1 %vm10076_vm0, %v11839_v1  ;;  %8693 = vmatprep.subr.bf16.mxu1 %v9832_v19 }
 0x136   : > { %v1099_v23 = vmul.f32 %v10330_v59, %v1045_v20  ;;  %v1046_v24 = vmax.f32 %v888_v21, 0.0  ;;  %8694 = vmatpush3.bf16.msra.mxu1 %v9832_v19 }
 0x138   : > { %1153 = vst [vmem:[#allocation2 + $0x90] sm:$0xff] %v1099_v23  ;;  %1154 = vst [vmem:[#allocation2 + $0x98] sm:$0xff] %v1046_v24  ;;  %v1198_v25 = vpack.c.bf16 %v1046_v24, %v1099_v23  ;;  %v9833_v24 = vld [vmem:[%s11830_s5 + $0xa0] sm:$0xff]  }
 0x139   : > { %v892_v26 = vpop.f32.mrb[40].mxu1  ;;  %8823 = vmatprep.subr.bf16.mxu0 %v9833_v24 }
 0x13a   : > { %v893_v27 = vadd.f32 %v10316_v38, %v892_v26  ;;  %v8497_v28 = vpop.f32.mrb[41].mxu1  ;;  %v9834_v26 = vld [vmem:[%s11830_s5 + $0x60] sm:$0xff]   ;;  %8824 = vmatpush3.bf16.msra.mxu0 %v9833_v24 }
 0x13b   : > { %v895_v29 = vpop.f32.mrb[42].mxu1  ;;  %8695 = vmatprep.subr.bf16.mxu1 %v9834_v26  ;;  %v9835_v28 = vld [vmem:[%s11830_s5 + $0xa8] sm:$0xff]  }
 0x13c   : > { %v1047_v30 = vmax.f32 %v893_v27, 0.0  ;;  %v896_v31 = vadd.f32 %v10316_v38, %v895_v29  ;;  %v8498_v32 = vpop.f32.mrb[43].mxu1  ;;  %8616 = vmatmul.mubr.bf16.gmra.mrb[144].mxu1 %v1198_v25  ;;  %8825 = vmatprep.subr.bf16.mxu0 %v9835_v28 }
 0x13d   : > { %8619 = vmatprep.mubr.msk.bf16.mxu1 %vm10076_vm0, %v11839_v1  ;;  %8696 = vmatpush3.bf16.msra.mxu1 %v9834_v26 }
 0x13e   : > { %v1101_v33 = vmul.f32 %v10339_v9, %v1047_v30  ;;  %v1048_v34 = vmax.f32 %v896_v31, 0.0  ;;  %8826 = vmatpush3.bf16.msra.mxu0 %v9835_v28 }
 0x140   : > { %1155 = vst [vmem:[#allocation2 + $0xa0] sm:$0xff] %v1101_v33  ;;  %v1102_v35 = vmul.f32 %v10330_v59, %v1048_v34 }
 0x141   : > { %v900_v36 = vpop.f32.mrb[44].mxu1 }
 0x142   : > { %1156 = vst [vmem:[#allocation2 + $0xa8] sm:$0xff] %v1102_v35  ;;  %v901_v37 = vadd.f32 %v10316_v38, %v900_v36  ;;  %v8501_v39 = vpop.f32.mrb[45].mxu1  ;;  %v1199_v40 = vpack.c.bf16 %v1102_v35, %v1101_v33  ;;  %v9836_v33 = vld [vmem:[%s11830_s5 + $0x68] sm:$0xff]  }
 0x143   : > { %v903_v41 = vpop.f32.mrb[46].mxu1  ;;  %8697 = vmatprep.subr.bf16.mxu1 %v9836_v33  ;;  %v9837_v39 = vld [vmem:[%s11830_s5 + $0xb0] sm:$0xff]  }
 0x144   : > { %v1049_v42 = vmax.f32 %v901_v37, 0.0  ;;  %v904_v43 = vadd.f32 %v10316_v38, %v903_v41  ;;  %v8502_v44 = vpop.f32.mrb[47].mxu1  ;;  %8620 = vmatmul.mubr.bf16.gmra.mrb[148].mxu1 %v1199_v40  ;;  %8827 = vmatprep.subr.bf16.mxu0 %v9837_v39 }
 0x145   : > { %8623 = vmatprep.mubr.msk.bf16.mxu1 %vm10076_vm0, %v11839_v1  ;;  %8698 = vmatpush3.bf16.msra.mxu1 %v9836_v33 }
 0x146   : > { %1157 = vst [vmem:[#allocation2 + $0xb0] sm:$0xff] %v1049_v42  ;;  %v1050_v45 = vmax.f32 %v904_v43, 0.0  ;;  %8828 = vmatpush3.bf16.msra.mxu0 %v9837_v39 }
 0x148   : > { %v1104_v46 = vmul.f32 %v10339_v9, %v1050_v45  ;;  %v9842_v45 = vld [vmem:[%s11830_s5 + $0xb8] sm:$0xff]  }
 0x149   : > { %v908_v47 = vpop.f32.mrb[48].mxu1  ;;  %8829 = vmatprep.subr.bf16.mxu0 %v9842_v45 }
 0x14a   : > { %1158 = vst [vmem:[#allocation2 + $0xb8] sm:$0xff] %v1104_v46  ;;  %v909_v48 = vadd.f32 %v10316_v38, %v908_v47  ;;  %v8505_v50 = vpop.f32.mrb[49].mxu1  ;;  %v1200_v51 = vpack.c.bf16 %v1104_v46, %v1049_v42  ;;  %v9841_v42 = vld [vmem:[%s11830_s5 + $0x70] sm:$0xff]   ;;  %8830 = vmatpush3.bf16.msra.mxu0 %v9842_v45 }
 0x14b   : > { %v911_v52 = vpop.f32.mrb[50].mxu1  ;;  %8699 = vmatprep.subr.bf16.mxu1 %v9841_v42  ;;  %v9843_v50 = vld [vmem:[%s11830_s5 + $0x78] sm:$0xff]  }
 0x14c   : > { %v1051_v53 = vmax.f32 %v909_v48, 0.0  ;;  %v912_v54 = vadd.f32 %v10316_v38, %v911_v52  ;;  %v8506_v55 = vpop.f32.mrb[51].mxu1  ;;  %8624 = vmatmul.mubr.bf16.gmra.mrb[152].mxu1 %v1200_v51 }
 0x14d   : > { %8627 = vmatprep.mubr.msk.bf16.mxu1 %vm10076_vm0, %v11839_v1  ;;  %8700 = vmatpush3.bf16.msra.mxu1 %v9841_v42 }
 0x14e   : > { %v1105_v57 = vmul.f32 %v10330_v59, %v1051_v53  ;;  %v1052_v58 = vmax.f32 %v912_v54, 0.0  ;;  %8701 = vmatprep.subr.bf16.mxu1 %v9843_v50 }
 0x150   : > { %1159 = vst [vmem:[#allocation2 + $0xc0] sm:$0xff] %v1105_v57  ;;  %1160 = vst [vmem:[#allocation2 + $0xc8] sm:$0xff] %v1052_v58  ;;  %v1201_v61 = vpack.c.bf16 %v1052_v58, %v1105_v57 }
 0x151   : > { %v916_v63 = vpop.f32.mrb[52].mxu1  ;;  %8702 = vmatpush3.bf16.msra.mxu1 %v9843_v50 }
 0x152   : > { %v917_v0 = vadd.f32 %v10316_v38, %v916_v63  ;;  %v8509_v2 = vpop.f32.mrb[53].mxu1 }
 0x153   : > { %v919_v4 = vpop.f32.mrb[54].mxu1 }
 0x154   : > { %v1053_v5 = vmax.f32 %v917_v0, 0.0  ;;  %v920_v6 = vadd.f32 %v10316_v38, %v919_v4  ;;  %v8510_v7 = vpop.f32.mrb[55].mxu1  ;;  %8628 = vmatmul.mubr.bf16.gmra.mrb[156].mxu1 %v1201_v61 }
 0x155   : > { %8631 = vmatprep.mubr.msk.bf16.mxu1 %vm10076_vm0, %v11839_v1 }
 0x156   : > { %v1107_v10 = vmul.f32 %v10339_v9, %v1053_v5  ;;  %v1054_v11 = vmax.f32 %v920_v6, 0.0 }
 0x158   : > { %1161 = vst [vmem:[#allocation2 + $0xd0] sm:$0xff] %v1107_v10  ;;  %v1108_v13 = vmul.f32 %v10330_v59, %v1054_v11 }
 0x159   : > { %v924_v15 = vpop.f32.mrb[56].mxu1 }
 0x15a   : > { %1162 = vst [vmem:[#allocation2 + $0xd8] sm:$0xff] %v1108_v13  ;;  %v925_v16 = vadd.f32 %v10316_v38, %v924_v15  ;;  %v8513_v17 = vpop.f32.mrb[57].mxu1  ;;  %v1202_v18 = vpack.c.bf16 %v1108_v13, %v1107_v10 }
 0x15b   : > { %v927_v20 = vpop.f32.mrb[58].mxu1 }
 0x15c   : > { %v1055_v21 = vmax.f32 %v925_v16, 0.0  ;;  %v928_v22 = vadd.f32 %v10316_v38, %v927_v20  ;;  %v8514_v23 = vpop.f32.mrb[59].mxu1  ;;  %8632 = vmatmul.mubr.bf16.gmra.mrb[160].mxu1 %v1202_v18 }
 0x15d   : > { %8635 = vmatprep.mubr.msk.bf16.mxu1 %vm10076_vm0, %v11839_v1 }
 0x15e   : > { %1163 = vst [vmem:[#allocation2 + $0xe0] sm:$0xff] %v1055_v21  ;;  %v1056_v25 = vmax.f32 %v928_v22, 0.0 }
 0x160   : > { %v1110_v27 = vmul.f32 %v10339_v9, %v1056_v25 }
 0x161   : > { %v932_v29 = vpop.f32.mrb[60].mxu1 }
 0x162   : > { %1164 = vst [vmem:[#allocation2 + $0xe8] sm:$0xff] %v1110_v27  ;;  %v933_v30 = vadd.f32 %v10316_v38, %v932_v29  ;;  %v8517_v31 = vpop.f32.mrb[61].mxu1  ;;  %v1203_v32 = vpack.c.bf16 %v1110_v27, %v1055_v21 }
 0x163   : > { %v935_v34 = vpop.f32.mrb[62].mxu1 }
 0x164   : > { %v1057_v35 = vmax.f32 %v933_v30, 0.0  ;;  %v936_v36 = vadd.f32 %v10316_v38, %v935_v34  ;;  %v8518_v37 = vpop.f32.mrb[63].mxu1  ;;  %8636 = vmatmul.mubr.bf16.gmra.mrb[164].mxu1 %v1203_v32 }
 0x165   : > { %8639 = vmatprep.mubr.msk.bf16.mxu1 %vm10076_vm0, %v11839_v1 }
 0x166   : > { %v1111_v40 = vmul.f32 %v10330_v59, %v1057_v35  ;;  %v1058_v41 = vmax.f32 %v936_v36, 0.0 }
 0x168   : > { %1165 = vst [vmem:[#allocation2 + $0xf0] sm:$0xff] %v1111_v40  ;;  %1166 = vst [vmem:[#allocation2 + $0xf8] sm:$0xff] %v1058_v41  ;;  %v1204_v43 = vpack.c.bf16 %v1058_v41, %v1111_v40 }
 0x169   : > { %v940_v44 = vpop.f32.mrb[64].mxu1 }
 0x16a   : > { %v941_v46 = vadd.f32 %v10316_v38, %v940_v44  ;;  %v8521_v47 = vpop.f32.mrb[65].mxu1 }
 0x16b   : > { %v943_v48 = vpop.f32.mrb[66].mxu1 }
 0x16c   : > { %v1059_v51 = vmax.f32 %v941_v46, 0.0  ;;  %v944_v52 = vadd.f32 %v10316_v38, %v943_v48  ;;  %v8522_v53 = vpop.f32.mrb[67].mxu1  ;;  %8640 = vmatmul.mubr.bf16.gmra.mrb[168].mxu1 %v1204_v43 }
 0x16d   : > { %8643 = vmatprep.mubr.msk.bf16.mxu1 %vm10076_vm0, %v11839_v1 }
 0x16e   : > { %v1113_v54 = vmul.f32 %v10339_v9, %v1059_v51  ;;  %v1060_v55 = vmax.f32 %v944_v52, 0.0 }
 0x170   : > { %1167 = vst [vmem:[#allocation2 + $0x100] sm:$0xff] %v1113_v54  ;;  %v1114_v56 = vmul.f32 %v10330_v59, %v1060_v55 }
 0x171   : > { %v948_v57 = vpop.f32.mrb[68].mxu1 }
 0x172   : > { %1168 = vst [vmem:[#allocation2 + $0x108] sm:$0xff] %v1114_v56  ;;  %v949_v58 = vadd.f32 %v10316_v38, %v948_v57  ;;  %v8525_v60 = vpop.f32.mrb[69].mxu1  ;;  %v1205_v61 = vpack.c.bf16 %v1114_v56, %v1113_v54 }
 0x173   : > { %v951_v62 = vpop.f32.mrb[70].mxu1 }
 0x174   : > { %v1061_v63 = vmax.f32 %v949_v58, 0.0  ;;  %v952_v0 = vadd.f32 %v10316_v38, %v951_v62  ;;  %v8526_v2 = vpop.f32.mrb[71].mxu1  ;;  %8644 = vmatmul.mubr.bf16.gmra.mrb[172].mxu1 %v1205_v61 }
 0x175   : > { %8647 = vmatprep.mubr.msk.bf16.mxu1 %vm10076_vm0, %v11839_v1 }
 0x176   : > { %1169 = vst [vmem:[#allocation2 + $0x110] sm:$0xff] %v1061_v63  ;;  %v1062_v3 = vmax.f32 %v952_v0, 0.0 }
 0x178   : > { %v1116_v4 = vmul.f32 %v10339_v9, %v1062_v3 }
 0x179   : > { %v956_v5 = vpop.f32.mrb[72].mxu1 }
 0x17a   : > { %1170 = vst [vmem:[#allocation2 + $0x118] sm:$0xff] %v1116_v4  ;;  %v957_v6 = vadd.f32 %v10316_v38, %v956_v5  ;;  %v8529_v7 = vpop.f32.mrb[73].mxu1  ;;  %v1206_v8 = vpack.c.bf16 %v1116_v4, %v1061_v63 }
 0x17b   : > { %v959_v10 = vpop.f32.mrb[74].mxu1 }
 0x17c   : > { %v1063_v11 = vmax.f32 %v957_v6, 0.0  ;;  %v960_v12 = vadd.f32 %v10316_v38, %v959_v10  ;;  %v8530_v13 = vpop.f32.mrb[75].mxu1  ;;  %8648 = vmatmul.mubr.bf16.gmra.mrb[176].mxu1 %v1206_v8 }
 0x17d   : > { %8651 = vmatprep.mubr.msk.bf16.mxu1 %vm10076_vm0, %v11839_v1 }
 0x17e   : > { %v1117_v14 = vmul.f32 %v10330_v59, %v1063_v11  ;;  %v1064_v15 = vmax.f32 %v960_v12, 0.0 }
 0x180   : > { %1171 = vst [vmem:[#allocation2 + $0x120] sm:$0xff] %v1117_v14  ;;  %1172 = vst [vmem:[#allocation2 + $0x128] sm:$0xff] %v1064_v15  ;;  %v1207_v16 = vpack.c.bf16 %v1064_v15, %v1117_v14 }
 0x181   : > { %v964_v17 = vpop.f32.mrb[76].mxu1 }
 0x182   : > { %v965_v18 = vadd.f32 %v10316_v38, %v964_v17  ;;  %v8533_v19 = vpop.f32.mrb[77].mxu1 }
 0x183   : > { %v967_v20 = vpop.f32.mrb[78].mxu1 }
 0x184   : > { %v1065_v21 = vmax.f32 %v965_v18, 0.0  ;;  %v968_v22 = vadd.f32 %v10316_v38, %v967_v20  ;;  %v8534_v23 = vpop.f32.mrb[79].mxu1  ;;  %8652 = vmatmul.mubr.bf16.gmra.mrb[180].mxu1 %v1207_v16 }
 0x185   : > { %8655 = vmatprep.mubr.msk.bf16.mxu1 %vm10076_vm0, %v11839_v1 }
 0x186   : > { %v1119_v24 = vmul.f32 %v10339_v9, %v1065_v21  ;;  %v1066_v25 = vmax.f32 %v968_v22, 0.0 }
 0x188   : > { %1173 = vst [vmem:[#allocation2 + $0x130] sm:$0xff] %v1119_v24  ;;  %v1120_v26 = vmul.f32 %v10330_v59, %v1066_v25 }
 0x189   : > { %v972_v27 = vpop.f32.mrb[80].mxu1 }
 0x18a   : > { %1174 = vst [vmem:[#allocation2 + $0x138] sm:$0xff] %v1120_v26  ;;  %v973_v28 = vadd.f32 %v10316_v38, %v972_v27  ;;  %v8537_v29 = vpop.f32.mrb[81].mxu1  ;;  %v1208_v30 = vpack.c.bf16 %v1120_v26, %v1119_v24 }
 0x18b   : > { %v975_v31 = vpop.f32.mrb[82].mxu1 }
 0x18c   : > { %v1067_v32 = vmax.f32 %v973_v28, 0.0  ;;  %v976_v33 = vadd.f32 %v10316_v38, %v975_v31  ;;  %v8538_v34 = vpop.f32.mrb[83].mxu1  ;;  %8656 = vmatmul.mubr.bf16.gmra.mrb[184].mxu1 %v1208_v30 }
 0x18d   : > { %8659 = vmatprep.mubr.msk.bf16.mxu1 %vm10076_vm0, %v11839_v1 }
 0x18e   : > { %1175 = vst [vmem:[#allocation2 + $0x140] sm:$0xff] %v1067_v32  ;;  %v1068_v35 = vmax.f32 %v976_v33, 0.0 }
 0x190   : > { %v1122_v36 = vmul.f32 %v10339_v9, %v1068_v35 }
 0x191   : > { %v980_v37 = vpop.f32.mrb[84].mxu1 }
 0x192   : > { %1176 = vst [vmem:[#allocation2 + $0x148] sm:$0xff] %v1122_v36  ;;  %v981_v39 = vadd.f32 %v10316_v38, %v980_v37  ;;  %v8541_v40 = vpop.f32.mrb[85].mxu1  ;;  %v1209_v41 = vpack.c.bf16 %v1122_v36, %v1067_v32 }
 0x193   : > { %v983_v42 = vpop.f32.mrb[86].mxu1 }
 0x194   : > { %v1069_v43 = vmax.f32 %v981_v39, 0.0  ;;  %v984_v44 = vadd.f32 %v10316_v38, %v983_v42  ;;  %v8542_v45 = vpop.f32.mrb[87].mxu1  ;;  %8660 = vmatmul.mubr.bf16.gmra.mrb[188].mxu1 %v1209_v41 }
 0x195   : > { %8663 = vmatprep.mubr.msk.bf16.mxu1 %vm10076_vm0, %v11839_v1 }
 0x196   : > { %v1123_v46 = vmul.f32 %v10330_v59, %v1069_v43  ;;  %v1070_v47 = vmax.f32 %v984_v44, 0.0  ;;  %v10519_v43 = vld [vmem:[%s11829_s4] ss:$0 sm:$0xff] }
 0x198   : > { %1177 = vst [vmem:[#allocation2 + $0x150] sm:$0xff] %v1123_v46  ;;  %1178 = vst [vmem:[#allocation2 + $0x158] sm:$0xff] %v1070_v47  ;;  %v1210_v48 = vpack.c.bf16 %v1070_v47, %v1123_v46 }
 0x199   : > { %v988_v50 = vpop.f32.mrb[88].mxu1 }
 0x19a   : > { %v989_v51 = vadd.f32 %v10316_v38, %v988_v50  ;;  %v8545_v52 = vpop.f32.mrb[89].mxu1 }
 0x19b   : > { %v991_v53 = vpop.f32.mrb[90].mxu1 }
 0x19c   : > { %v1071_v54 = vmax.f32 %v989_v51, 0.0  ;;  %v992_v55 = vadd.f32 %v10316_v38, %v991_v53  ;;  %v8546_v56 = vpop.f32.mrb[91].mxu1  ;;  %8664 = vmatmul.mubr.bf16.gmra.mrb[192].mxu1 %v1210_v48 }
 0x19d   : > { %8667 = vmatprep.mubr.msk.bf16.mxu1 %vm10076_vm0, %v11839_v1 }
 0x19e   : > { %v1125_v57 = vmul.f32 %v10339_v9, %v1071_v54  ;;  %v1072_v58 = vmax.f32 %v992_v55, 0.0 }
 0x1a0   : > { %1179 = vst [vmem:[#allocation2 + $0x160] sm:$0xff] %v1125_v57  ;;  %v1126_v60 = vmul.f32 %v10330_v59, %v1072_v58 }
 0x1a1   : > { %v996_v61 = vpop.f32.mrb[92].mxu1 }
 0x1a2   : > { %1180 = vst [vmem:[#allocation2 + $0x168] sm:$0xff] %v1126_v60  ;;  %v997_v62 = vadd.f32 %v10316_v38, %v996_v61  ;;  %v8549_v63 = vpop.f32.mrb[93].mxu1  ;;  %v1211_v0 = vpack.c.bf16 %v1126_v60, %v1125_v57 }
 0x1a3   : > { %v999_v2 = vpop.f32.mrb[94].mxu1 }
 0x1a4   : > { %v1073_v3 = vmax.f32 %v997_v62, 0.0  ;;  %v1000_v4 = vadd.f32 %v10316_v38, %v999_v2  ;;  %v8550_v5 = vpop.f32.mrb[95].mxu1  ;;  %8668 = vmatmul.mubr.bf16.gmra.mrb[196].mxu1 %v1211_v0 }
 0x1a5   : > { %8671 = vmatprep.mubr.msk.bf16.mxu1 %vm10076_vm0, %v11839_v1 }
 0x1a6   : > { %1181 = vst [vmem:[#allocation2 + $0x170] sm:$0xff] %v1073_v3  ;;  %v1074_v6 = vmax.f32 %v1000_v4, 0.0 }
 0x1a8   : > { %v1128_v7 = vmul.f32 %v10339_v9, %v1074_v6 }
 0x1a9   : > { %v1004_v8 = vpop.f32.mrb[96].mxu1 }
 0x1aa   : > { %1182 = vst [vmem:[#allocation2 + $0x178] sm:$0xff] %v1128_v7  ;;  %v1005_v10 = vadd.f32 %v10316_v38, %v1004_v8  ;;  %v8553_v11 = vpop.f32.mrb[97].mxu1  ;;  %v1212_v12 = vpack.c.bf16 %v1128_v7, %v1073_v3 }
 0x1ab   : > { %v1007_v13 = vpop.f32.mrb[98].mxu1 }
 0x1ac   : > { %v1075_v14 = vmax.f32 %v1005_v10, 0.0  ;;  %v1008_v15 = vadd.f32 %v10316_v38, %v1007_v13  ;;  %v8554_v16 = vpop.f32.mrb[99].mxu1  ;;  %8672 = vmatmul.mubr.bf16.gmra.mrb[200].mxu1 %v1212_v12 }
 0x1ad   : > { %8675 = vmatprep.mubr.msk.bf16.mxu1 %vm10076_vm0, %v11839_v1 }
 0x1ae   : > { %v1129_v17 = vmul.f32 %v10330_v59, %v1075_v14  ;;  %v1076_v18 = vmax.f32 %v1008_v15, 0.0 }
 0x1b0   : > { %1183 = vst [vmem:[#allocation2 + $0x180] sm:$0xff] %v1129_v17  ;;  %1184 = vst [vmem:[#allocation2 + $0x188] sm:$0xff] %v1076_v18  ;;  %v1213_v19 = vpack.c.bf16 %v1076_v18, %v1129_v17 }
 0x1b1   : > { %v1012_v20 = vpop.f32.mrb[100].mxu1 }
 0x1b2   : > { %v1013_v21 = vadd.f32 %v10316_v38, %v1012_v20  ;;  %v8557_v22 = vpop.f32.mrb[101].mxu1 }
 0x1b3   : > { %v1015_v23 = vpop.f32.mrb[102].mxu1 }
 0x1b4   : > { %v1077_v24 = vmax.f32 %v1013_v21, 0.0  ;;  %v1016_v25 = vadd.f32 %v10316_v38, %v1015_v23  ;;  %8676 = vmatmul.mubr.bf16.gmra.mrb[204].mxu1 %v1213_v19  ;;  %v8558_v26 = vpop.f32.mrb[103].mxu1 }
 0x1b5   : > { %8679 = vmatprep.mubr.msk.bf16.mxu1 %vm10076_vm0, %v11839_v1 }
 0x1b6   : > { %v1131_v27 = vmul.f32 %v10339_v9, %v1077_v24  ;;  %v1078_v28 = vmax.f32 %v1016_v25, 0.0 }
 0x1b8   : > { %1185 = vst [vmem:[#allocation2 + $0x190] sm:$0xff] %v1131_v27  ;;  %v1132_v29 = vmul.f32 0.0, %v1078_v28 }
 0x1b9   : > { %v1020_v30 = vpop.f32.mrb[104].mxu1 }
 0x1ba   : > { %1186 = vst [vmem:[#allocation2 + $0x198] sm:$0xff] %v1132_v29  ;;  %v1214_v31 = vpack.c.bf16 %v1132_v29, %v1131_v27  ;;  %v1021_v32 = vadd.f32 %v10316_v38, %v1020_v30  ;;  %v8561_v33 = vpop.f32.mrb[105].mxu1 }
 0x1bb   : > { %v1023_v34 = vpop.f32.mrb[106].mxu1 }
 0x1bc   : > { %v1079_v35 = vmax.f32 %v1021_v32, 0.0  ;;  %v1024_v36 = vadd.f32 %v10316_v38, %v1023_v34  ;;  %8680 = vmatmul.mubr.bf16.gmra.mrb[208].mxu1 %v1214_v31  ;;  %v8562_v37 = vpop.f32.mrb[107].mxu1  ;;  %v10525_v38 = vld [vmem:[%s11830_s5 + $0xc0] sm:$0xff]  }
 0x1bd   : > { %8683 = vmatprep.mubr.msk.bf16.mxu1 %vm10076_vm0, %v11839_v1  ;;  %8879 = vmatprep.subr.bf16.mxu0 %v10525_v38 }
 0x1be   : > { %v1133_v39 = vmul.f32 0.0, %v1079_v35  ;;  %v1080_v40 = vmax.f32 %v1024_v36, 0.0 }
 0x1c0   : > { %v1134_v41 = vmul.f32 0.0, %v1080_v40 }
 0x1c2   : > { %v1215_v42 = vpack.c.bf16 %v1134_v41, %v1133_v39 }
 0x1c4   : > { %8684 = vmatmul.mubr.bf16.gmra.mrb[212].mxu1 %v1215_v42 }
 0x1c7   : > { %v1321_v44 = vpop.f32.mrb[108].mxu1 }
 0x1c8   : > { %v1322_v45 = vadd.f32 %v10519_v43, %v1321_v44  ;;  %v8581_v46 = vpop.f32.mrb[109].mxu1 }
 0x1c9   : > { %v1324_v47 = vpop.f32.mrb[110].mxu1 }
 0x1ca   : > { %v1536_v48 = vmax.f32 %v1322_v45, 0.0  ;;  %v1325_v50 = vadd.f32 %v10519_v43, %v1324_v47  ;;  %v8582_v51 = vpop.f32.mrb[111].mxu1 }
 0x1cc   : > { %v1537_v52 = vmax.f32 %v1325_v50, 0.0  ;;  %v1590_v53 = vmul.f32 0.0, %v1536_v48 }
 0x1ce   : > { %v1591_v54 = vmul.f32 0.0, %v1537_v52 }
 0x1cf   : > { %v1329_v55 = vpop.f32.mrb[112].mxu1 }
 0x1d0   : > { %v7904_v56 = vpack.c.bf16 %v1591_v54, %v1590_v53  ;;  %v1330_v57 = vadd.f32 %v10519_v43, %v1329_v55  ;;  %v8585_v58 = vpop.f32.mrb[113].mxu1 }
 0x1d1   : > { %v1332_v60 = vpop.f32.mrb[114].mxu1 }
 0x1d2   : > { %7905 = vst [vmem:[#allocation3] sm:$0xff] %v7904_v56   ;;  %v1538_v61 = vmax.f32 %v1330_v57, 0.0  ;;  %v1333_v62 = vadd.f32 %v10519_v43, %v1332_v60  ;;  %v8586_v63 = vpop.f32.mrb[115].mxu1  ;;  %v9858_v57 = vld [vmem:[%s11830_s5 + $0xc8] sm:$0xff]  }
 0x1d4   : > { %v1539_v0 = vmax.f32 %v1333_v62, 0.0  ;;  %v1592_v2 = vmul.f32 0.0, %v1538_v61 }
 0x1d6   : > { %v1593_v3 = vmul.f32 %v10330_v59, %v1539_v0 }
 0x1d7   : > { %v1337_v4 = vpop.f32.mrb[116].mxu1 }
 0x1d8   : > { %v7909_v5 = vpack.c.bf16 %v1593_v3, %v1592_v2  ;;  %v8589_v6 = vpop.f32.mrb[117].mxu1  ;;  %v1338_v11 = vadd.f32 %v10519_v43, %v1337_v4 }
 0x1d9   : > { %v1340_v7 = vpop.f32.mrb[118].mxu1  ;;  %v1914_v8 = vld [vmem:[#allocation3] sm:$0xf]  ;;  %v1915_v10 = vld [vmem:[#allocation3 + $0x4] sm:$0xf] }
 0x1da   : > { %8036 = vst [vmem:[#allocation3 + $0x8] sm:$0xff] %v7909_v5   ;;  %v1341_v12 = vadd.f32 %v10519_v43, %v1340_v7  ;;  %v8590_v13 = vpop.f32.mrb[119].mxu1  ;;  %v10534_v14 = vcombine.low %v1914_v8, %v1915_v10  ;;  %v2910_v16 = vld [vmem:[#allocation3] sm:$0xe]  ;;  %v1540_v18 = vmax.f32 %v1338_v11, 0.0 }
 0x1db   : > { %v7589_v21 = vcombine.low %v2910_v16, %v1915_v10  ;;  %v9860_v8 = vld [vmem:[%s11830_s5 + $0xd0] sm:$0xff]  }
 0x1dc   : > { %v1541_v15 = vmax.f32 %v1341_v12, 0.0  ;;  %v2123_v17 = vshll.u32 %v10534_v14, 16  ;;  %v2121_v33 = vshrl.u32 %v10534_v14, 16 }
 0x1dd   : > { %v2932_v31 = vrot.slane %v7589_v21, 1 }
 0x1de   : > { %v1595_v19 = vmul.f32 %v10339_v9, %v1541_v15  ;;  %v2125_v25 = vrot.slane %v2123_v17, 1 }
 0x1df   : > { %v1345_v20 = vpop.f32.mrb[120].mxu1 }
 0x1e0   : > { %v7914_v22 = vpack.c.bf16 %v1595_v19, %v1540_v18  ;;  %v1346_v23 = vadd.f32 %v10519_v43, %v1345_v20  ;;  %v8593_v24 = vpop.f32.mrb[121].mxu1  ;;  %v2126_v39 = vor.u32 %v2125_v25, %v2121_v33 }
 0x1e1   : > { %v1348_v26 = vpop.f32.mrb[122].mxu1  ;;  %v9839_v27 = vld [vmem:[#allocation3 + $0x8] sm:$0xff]  }
 0x1e2   : > { %8037 = vst [vmem:[#allocation3 + $0x10] sm:$0xff] %v7914_v22   ;;  %v1542_v28 = vmax.f32 %v1346_v23, 0.0  ;;  %v1349_v29 = vadd.f32 %v10519_v43, %v1348_v26  ;;  %v8594_v30 = vpop.f32.mrb[123].mxu1  ;;  %v2933_v32 = vrot.slane %v9839_v27, 1  ;;  %v2128_v34 = vshll.u32 %v9839_v27, 16  ;;  %v9863_v23 = vld [vmem:[%s11830_s5 + $0xd8] sm:$0xff]  }
 0x1e3   : > { %v2132_v53 = vshrl.u32 %v9839_v27, 16  ;;  %v4586_v2 = vld [vmem:[#allocation3 + $0xc] sm:$0xe] }
 0x1e4   : > { %v1596_v35 = vmul.f32 %v10330_v59, %v1542_v28  ;;  %v1543_v36 = vmax.f32 %v1349_v29, 0.0  ;;  %v2934_v37 = vsel %vm2931_vm4, %v2932_v31, %v2933_v32  ;;  %v2130_v40 = vrot.slane %v2128_v34, 1  ;;  %v9865_v34 = vld [vmem:[%s11830_s5 + $0xe0] sm:$0xff]  }
 0x1e5   : > { %8831 = vmatprep.mubr.bf16.mxu0 %v2934_v37 }
 0x1e6   : > { %v7919_v41 = vpack.c.bf16 %v1543_v36, %v1596_v35  ;;  %v2131_v44 = vsel %vm2119_vm5, %v2126_v39, %v2130_v40  ;;  %v2134_v58 = vor.u32 %v2132_v53, %v2130_v40 }
 0x1e7   : > { %v1353_v42 = vpop.f32.mrb[124].mxu1  ;;  %8703 = vmatprep.mubr.bf16.mxu1 %v2131_v44 }
 0x1e8   : > { %8038 = vst [vmem:[#allocation3 + $0x18] sm:$0xff] %v7919_v41   ;;  %v1354_v45 = vadd.f32 %v10519_v43, %v1353_v42  ;;  %v8597_v46 = vpop.f32.mrb[125].mxu1 }
 0x1e9   : > { %v1356_v47 = vpop.f32.mrb[126].mxu1  ;;  %v9844_v48 = vld [vmem:[#allocation3 + $0x10] sm:$0xff]  }
 0x1ea   : > { %v1544_v50 = vmax.f32 %v1354_v45, 0.0  ;;  %v1357_v51 = vadd.f32 %v10519_v43, %v1356_v47  ;;  %v8598_v52 = vpop.f32.mrb[127].mxu1  ;;  %v2935_v54 = vrot.slane %v9844_v48, 1  ;;  %v2136_v55 = vshll.u32 %v9844_v48, 16  ;;  %v3857_v0 = vld [vmem:[#allocation3 + $0x10] sm:$0xf] }
 0x1eb   : > { %v2140_v12 = vshrl.u32 %v9844_v48, 16  ;;  %v7711_v15 = vcombine.low %v4586_v2, %v3857_v0  ;;  %v9868_v2 = vld [vmem:[%s11830_s5 + $0xe8] sm:$0xff]  }
 0x1ec   : > { %v1545_v56 = vmax.f32 %v1357_v51, 0.0  ;;  %v2936_v60 = vsel %vm2931_vm4, %v2933_v32, %v2935_v54  ;;  %v2138_v61 = vrot.slane %v2136_v55, 1  ;;  %v1598_v62 = vmul.f32 %v10339_v9, %v1544_v50 }
 0x1ed   : > { %8832 = vmatmul.mubr.bf16.vlgmr.msra.gmra.mrb[0].mxu0 %v2936_v60  ;;  %v4607_v25 = vrot.slane %v7711_v15, 1 }
 0x1ee   : > { %v1599_v63 = vmul.f32 %v10330_v59, %v1545_v56  ;;  %v2139_v4 = vsel %vm2119_vm5, %v2134_v58, %v2138_v61  ;;  %8880 = vmatpush3.bf16.msra.mxu0 %v10525_v38  ;;  %v2142_v20 = vor.u32 %v2140_v12, %v2138_v61  ;;  %v9870_v12 = vld [vmem:[%s11830_s5] sm:$0xff]  }
 0x1ef   : > { %v1361_v3 = vpop.f32.mrb[128].mxu1  ;;  %v9845_v5 = vld [vmem:[#allocation3 + $0x18] sm:$0xff]   ;;  %8704 = vmatmul.mubr.bf16.vlgmr.msra.gmra.mrb[216].mxu1 %v2139_v4  ;;  %8881 = vmatprep.subr.bf16.mxu0 %v9858_v57 }
 0x1f0   : > { %v7924_v6 = vpack.c.bf16 %v1599_v63, %v1598_v62  ;;  %v8601_v7 = vpop.f32.mrb[129].mxu1  ;;  %v2937_v11 = vrot.slane %v9845_v5, 1  ;;  %v2144_v13 = vshll.u32 %v9845_v5, 16  ;;  %v1362_v16 = vadd.f32 %v10519_v43, %v1361_v3  ;;  %v9916_v38 = vld [vmem:[#allocation3 + $0x14] sm:$0xff]   ;;  %8751 = vmatprep.subr.bf16.mxu1 %v9870_v12 }
 0x1f1   : > { %v1364_v10 = vpop.f32.mrb[130].mxu1  ;;  %v4608_v26 = vrot.slane %v9916_v38, 1  ;;  %v2148_v44 = vshrl.u32 %v9845_v5, 16  ;;  %8752 = vmatpush3.bf16.msra.mxu1 %v9870_v12 }
 0x1f2   : > { %8039 = vst [vmem:[#allocation3 + $0x20] sm:$0xff] %v7924_v6   ;;  %v1365_v17 = vadd.f32 %v10519_v43, %v1364_v10  ;;  %v8602_v18 = vpop.f32.mrb[131].mxu1  ;;  %v2938_v19 = vsel %vm2931_vm4, %v2935_v54, %v2937_v11  ;;  %v2146_v21 = vrot.slane %v2144_v13, 1  ;;  %8882 = vmatpush3.bf16.msra.mxu0 %v9858_v57  ;;  %v1546_v27 = vmax.f32 %v1362_v16, 0.0 }
 0x1f3   : > { %8835 = vmatprep.mubr.bf16.mxu0 %v2938_v19  ;;  %8883 = vmatprep.subr.bf16.mxu0 %v9860_v8  ;;  %v10566_v30 = vsel %vm2931_vm4, %v4607_v25, %v4608_v26 }
 0x1f4   : > { %v1547_v22 = vmax.f32 %v1365_v17, 0.0  ;;  %v2147_v24 = vsel %vm2119_vm5, %v2142_v20, %v2146_v21  ;;  %v2150_v50 = vor.u32 %v2148_v44, %v2146_v21 }
 0x1f5   : > { %8707 = vmatprep.mubr.bf16.mxu1 %v2147_v24 }
 0x1f6   : > { %v1601_v28 = vmul.f32 %v10339_v9, %v1547_v22  ;;  %8884 = vmatpush3.bf16.msra.mxu0 %v9860_v8 }
 0x1f7   : > { %v1369_v29 = vpop.f32.mrb[132].mxu1  ;;  %8885 = vmatprep.subr.bf16.mxu0 %v9863_v23 }
 0x1f8   : > { %v7929_v31 = vpack.c.bf16 %v1601_v28, %v1546_v27  ;;  %v1370_v32 = vadd.f32 %v10519_v43, %v1369_v29  ;;  %v8605_v33 = vpop.f32.mrb[133].mxu1 }
 0x1f9   : > { %v1372_v35 = vpop.f32.mrb[134].mxu1  ;;  %v9846_v36 = vld [vmem:[#allocation3 + $0x20] sm:$0xff]  }
 0x1fa   : > { %8040 = vst [vmem:[#allocation3 + $0x28] sm:$0xff] %v7929_v31   ;;  %v1548_v37 = vmax.f32 %v1370_v32, 0.0  ;;  %v1373_v39 = vadd.f32 %v10519_v43, %v1372_v35  ;;  %v8606_v40 = vpop.f32.mrb[135].mxu1  ;;  %v9918_v41 = vld [vmem:[#allocation3 + $0x1c] sm:$0xff]   ;;  %v2939_v42 = vrot.slane %v9846_v36, 1  ;;  %v2152_v45 = vshll.u32 %v9846_v36, 16  ;;  %8886 = vmatpush3.bf16.msra.mxu0 %v9863_v23 }
 0x1fb   : > { %8887 = vmatprep.subr.bf16.mxu0 %v9865_v34  ;;  %v4610_v52 = vrot.slane %v9918_v41, 1  ;;  %v2156_v4 = vshrl.u32 %v9846_v36, 16 }
 0x1fc   : > { %v1602_v46 = vmul.f32 %v10330_v59, %v1548_v37  ;;  %v1549_v47 = vmax.f32 %v1373_v39, 0.0  ;;  %v2940_v48 = vsel %vm2931_vm4, %v2937_v11, %v2939_v42  ;;  %v2154_v51 = vrot.slane %v2152_v45, 1  ;;  %v9873_v39 = vld [vmem:[%s11830_s5 + $0x10] sm:$0xff]  }
 0x1fd   : > { %8836 = vmatmul.mubr.bf16.gmra.mrb[4].mxu0 %v2940_v48  ;;  %v10577_v56 = vsel %vm2931_vm4, %v4608_v26, %v4610_v52  ;;  %v9871_v26 = vld [vmem:[%s11830_s5 + $0x8] sm:$0xff]   ;;  %v9872_v48 = vld [vmem:[%s11830_s5 + $0xf0] sm:$0xff]  }
 0x1fe   : > { %v7934_v53 = vpack.c.bf16 %v1549_v47, %v1602_v46  ;;  %v2155_v55 = vsel %vm2119_vm5, %v2150_v50, %v2154_v51  ;;  %8888 = vmatpush3.bf16.msra.mxu0 %v9865_v34  ;;  %v2158_v10 = vor.u32 %v2156_v4, %v2154_v51  ;;  %8753 = vmatprep.subr.bf16.mxu1 %v9871_v26  ;;  %v9876_v4 = vld [vmem:[%s11830_s5 + $0x20] sm:$0xff]  }
 0x1ff   : > { %v1377_v54 = vpop.f32.mrb[136].mxu1  ;;  %8708 = vmatmul.mubr.bf16.gmra.mrb[220].mxu1 %v2155_v55  ;;  %8889 = vmatprep.subr.bf16.mxu0 %v9868_v2  ;;  %v9875_v55 = vld [vmem:[%s11830_s5 + $0x18] sm:$0xff]  }
 0x200   : > { %8041 = vst [vmem:[#allocation3 + $0x30] sm:$0xff] %v7934_v53   ;;  %v1378_v57 = vadd.f32 %v10519_v43, %v1377_v54  ;;  %v8609_v58 = vpop.f32.mrb[137].mxu1  ;;  %8754 = vmatpush3.bf16.msra.mxu1 %v9871_v26 }
 0x201   : > { %v1380_v60 = vpop.f32.mrb[138].mxu1  ;;  %v9847_v61 = vld [vmem:[#allocation3 + $0x28] sm:$0xff]   ;;  %8755 = vmatprep.subr.bf16.mxu1 %v9873_v39 }
 0x202   : > { %v1550_v62 = vmax.f32 %v1378_v57, 0.0  ;;  %v1381_v63 = vadd.f32 %v10519_v43, %v1380_v60  ;;  %v8610_v0 = vpop.f32.mrb[139].mxu1  ;;  %v2941_v3 = vrot.slane %v9847_v61, 1  ;;  %v2160_v5 = vshll.u32 %v9847_v61, 16  ;;  %v9919_v6 = vld [vmem:[#allocation3 + $0x24] sm:$0xff]   ;;  %8890 = vmatpush3.bf16.msra.mxu0 %v9868_v2 }
 0x203   : > { %v4612_v16 = vrot.slane %v9919_v6, 1  ;;  %v2164_v24 = vshrl.u32 %v9847_v61, 16  ;;  %8891 = vmatprep.subr.bf16.mxu0 %v9872_v48 }
 0x204   : > { %v1551_v7 = vmax.f32 %v1381_v63, 0.0  ;;  %v2942_v8 = vsel %vm2931_vm4, %v2939_v42, %v2941_v3  ;;  %v2162_v11 = vrot.slane %v2160_v5, 1  ;;  %v1604_v13 = vmul.f32 %v10339_v9, %v1550_v62  ;;  %8756 = vmatpush3.bf16.msra.mxu1 %v9873_v39 }
 0x205   : > { %8839 = vmatprep.mubr.bf16.mxu0 %v2942_v8  ;;  %v10592_v21 = vsel %vm2931_vm4, %v4610_v52, %v4612_v16  ;;  %8757 = vmatprep.subr.bf16.mxu1 %v9875_v55 }
 0x206   : > { %v1605_v15 = vmul.f32 %v10330_v59, %v1551_v7  ;;  %v2163_v18 = vsel %vm2119_vm5, %v2158_v10, %v2162_v11  ;;  %v2166_v33 = vor.u32 %v2164_v24, %v2162_v11  ;;  %8892 = vmatpush3.bf16.msra.mxu0 %v9872_v48 }
 0x207   : > { %v1385_v17 = vpop.f32.mrb[140].mxu1  ;;  %v9848_v38 = vld [vmem:[#allocation3 + $0x30] sm:$0xff]   ;;  %8711 = vmatprep.mubr.bf16.mxu1 %v2163_v18 }
 0x208   : > { %v7939_v19 = vpack.c.bf16 %v1605_v15, %v1604_v13  ;;  %v8613_v20 = vpop.f32.mrb[141].mxu1  ;;  %v2943_v23 = vrot.slane %v9848_v38, 1  ;;  %v2168_v25 = vshll.u32 %v9848_v38, 16  ;;  %v1386_v27 = vadd.f32 %v10519_v43, %v1385_v17  ;;  %v9920_v31 = vld [vmem:[#allocation3 + $0x2c] sm:$0xff]   ;;  %8758 = vmatpush3.bf16.msra.mxu1 %v9875_v55 }
 0x209   : > { %v1388_v22 = vpop.f32.mrb[142].mxu1  ;;  %v4614_v36 = vrot.slane %v9920_v31, 1  ;;  %v2172_v58 = vshrl.u32 %v9848_v38, 16  ;;  %8759 = vmatprep.subr.bf16.mxu1 %v9876_v4  ;;  %v9879_v38 = vld [vmem:[%s11830_s5 + $0x28] sm:$0xff]  }
 0x20a   : > { %8042 = vst [vmem:[#allocation3 + $0x38] sm:$0xff] %v7939_v19   ;;  %v1389_v28 = vadd.f32 %v10519_v43, %v1388_v22  ;;  %v8614_v29 = vpop.f32.mrb[143].mxu1  ;;  %v2944_v32 = vsel %vm2931_vm4, %v2941_v3, %v2943_v23  ;;  %v2170_v34 = vrot.slane %v2168_v25, 1  ;;  %v1552_v40 = vmax.f32 %v1386_v27, 0.0  ;;  %v9878_v25 = vld [vmem:[%s11830_s5 + $0xf8] sm:$0xff]  }
 0x20b   : > { %8840 = vmatmul.mubr.bf16.gmra.mrb[8].mxu0 %v2944_v32  ;;  %v10606_v42 = vsel %vm2931_vm4, %v4612_v16, %v4614_v36  ;;  %v9882_v29 = vld [vmem:[%s11830_s5 + $0x30] sm:$0xff]   ;;  %8893 = vmatprep.subr.bf16.mxu0 %v9878_v25 }
 0x20c   : > { %v1553_v35 = vmax.f32 %v1389_v28, 0.0  ;;  %v2171_v37 = vsel %vm2119_vm5, %v2166_v33, %v2170_v34  ;;  %v2174_v2 = vor.u32 %v2172_v58, %v2170_v34  ;;  %8760 = vmatpush3.bf16.msra.mxu1 %v9876_v4  ;;  %8894 = vmatpush3.bf16.msra.mxu0 %v9878_v25 }
 0x20d   : > { %8712 = vmatmul.mubr.bf16.gmra.mrb[224].mxu1 %v2171_v37  ;;  %8761 = vmatprep.subr.bf16.mxu1 %v9879_v38 }
 0x20e   : > { %v1607_v41 = vmul.f32 %v10339_v9, %v1553_v35 }
 0x20f   : > { %v1393_v44 = vpop.f32.mrb[144].mxu1 }
 0x210   : > { %v7944_v45 = vpack.c.bf16 %v1607_v41, %v1552_v40  ;;  %v1394_v46 = vadd.f32 %v10519_v43, %v1393_v44  ;;  %v8617_v47 = vpop.f32.mrb[145].mxu1  ;;  %8762 = vmatpush3.bf16.msra.mxu1 %v9879_v38 }
 0x211   : > { %v1396_v50 = vpop.f32.mrb[146].mxu1  ;;  %v9849_v51 = vld [vmem:[#allocation3 + $0x38] sm:$0xff]   ;;  %8763 = vmatprep.subr.bf16.mxu1 %v9882_v29  ;;  %v9883_v47 = vld [vmem:[%s11830_s5 + $0x38] sm:$0xff]  }
 0x212   : > { %8043 = vst [vmem:[#allocation3 + $0x40] sm:$0xff] %v7944_v45   ;;  %v1554_v52 = vmax.f32 %v1394_v46, 0.0  ;;  %v1397_v53 = vadd.f32 %v10519_v43, %v1396_v50  ;;  %v8618_v54 = vpop.f32.mrb[147].mxu1  ;;  %v2945_v57 = vrot.slane %v9849_v51, 1  ;;  %v2176_v60 = vshll.u32 %v9849_v51, 16  ;;  %v9921_v61 = vld [vmem:[#allocation3 + $0x34] sm:$0xff]  }
 0x213   : > { %v4616_v6 = vrot.slane %v9921_v61, 1  ;;  %v2180_v20 = vshrl.u32 %v9849_v51, 16 }
 0x214   : > { %v1608_v62 = vmul.f32 %v10330_v59, %v1554_v52  ;;  %v1555_v63 = vmax.f32 %v1397_v53, 0.0  ;;  %v2946_v0 = vsel %vm2931_vm4, %v2943_v23, %v2945_v57  ;;  %v2178_v3 = vrot.slane %v2176_v60, 1  ;;  %8764 = vmatpush3.bf16.msra.mxu1 %v9882_v29  ;;  %v9884_v52 = vld [vmem:[%s11830_s5 + $0x100] sm:$0xff]  }
 0x215   : > { %8843 = vmatprep.mubr.bf16.mxu0 %v2946_v0  ;;  %v10624_v12 = vsel %vm2931_vm4, %v4614_v36, %v4616_v6  ;;  %8765 = vmatprep.subr.bf16.mxu1 %v9883_v47 }
 0x216   : > { %v7949_v5 = vpack.c.bf16 %v1555_v63, %v1608_v62  ;;  %v2179_v8 = vsel %vm2119_vm5, %v2174_v2, %v2178_v3  ;;  %v2182_v27 = vor.u32 %v2180_v20, %v2178_v3  ;;  %8943 = vmatprep.subr.bf16.mxu0 %v9884_v52 }
 0x217   : > { %v1401_v7 = vpop.f32.mrb[148].mxu1  ;;  %8715 = vmatprep.mubr.bf16.mxu1 %v2179_v8 }
 0x218   : > { %8044 = vst [vmem:[#allocation3 + $0x48] sm:$0xff] %v7949_v5   ;;  %v1402_v10 = vadd.f32 %v10519_v43, %v1401_v7  ;;  %v8621_v11 = vpop.f32.mrb[149].mxu1  ;;  %8766 = vmatpush3.bf16.msra.mxu1 %v9883_v47 }
 0x219   : > { %v1404_v13 = vpop.f32.mrb[150].mxu1  ;;  %v9850_v15 = vld [vmem:[#allocation3 + $0x40] sm:$0xff]  }
 0x21a   : > { %v1556_v16 = vmax.f32 %v1402_v10, 0.0  ;;  %v1405_v17 = vadd.f32 %v10519_v43, %v1404_v13  ;;  %v8622_v18 = vpop.f32.mrb[151].mxu1  ;;  %v2947_v19 = vrot.slane %v9850_v15, 1  ;;  %v2184_v22 = vshll.u32 %v9850_v15, 16  ;;  %v9923_v23 = vld [vmem:[#allocation3 + $0x3c] sm:$0xff]  }
 0x21b   : > { %v4618_v33 = vrot.slane %v9923_v23, 1  ;;  %v2188_v45 = vshrl.u32 %v9850_v15, 16  ;;  %v9891_v49 = vld [vmem:[#allocation3 + $0x3c] sm:$0xff]  }
 0x21c   : > { %v1557_v24 = vmax.f32 %v1405_v17, 0.0  ;;  %v2948_v26 = vsel %vm2931_vm4, %v2945_v57, %v2947_v19  ;;  %v2186_v28 = vrot.slane %v2184_v22, 1  ;;  %v1610_v31 = vmul.f32 %v10339_v9, %v1556_v16 }
 0x21d   : > { %8844 = vmatmul.mubr.bf16.gmra.mrb[12].mxu0 %v2948_v26  ;;  %v10641_v40 = vsel %vm2931_vm4, %v4616_v6, %v4618_v33 }
 0x21e   : > { %v1611_v32 = vmul.f32 %v10330_v59, %v1557_v24  ;;  %v2187_v35 = vsel %vm2119_vm5, %v2182_v27, %v2186_v28  ;;  %v2190_v55 = vor.u32 %v2188_v45, %v2186_v28 }
 0x21f   : > { %v1409_v34 = vpop.f32.mrb[152].mxu1  ;;  %v9851_v36 = vld [vmem:[#allocation3 + $0x48] sm:$0xff]   ;;  %8716 = vmatmul.mubr.bf16.gmra.mrb[228].mxu1 %v2187_v35 }
 0x220   : > { %v7954_v37 = vpack.c.bf16 %v1611_v32, %v1610_v31  ;;  %v8625_v39 = vpop.f32.mrb[153].mxu1  ;;  %v2949_v44 = vrot.slane %v9851_v36, 1  ;;  %v2192_v46 = vshll.u32 %v9851_v36, 16  ;;  %v1410_v48 = vadd.f32 %v10519_v43, %v1409_v34  ;;  %v9924_v53 = vld [vmem:[#allocation3 + $0x44] sm:$0xff]  }
 0x221   : > { %v1412_v41 = vpop.f32.mrb[154].mxu1  ;;  %v4620_v60 = vrot.slane %v9924_v53, 1  ;;  %v2196_v16 = vshrl.u32 %v9851_v36, 16 }
 0x222   : > { %8045 = vst [vmem:[#allocation3 + $0x50] sm:$0xff] %v7954_v37   ;;  %v1413_v50 = vadd.f32 %v10519_v43, %v1412_v41  ;;  %v8626_v51 = vpop.f32.mrb[155].mxu1  ;;  %v2950_v54 = vsel %vm2931_vm4, %v2947_v19, %v2949_v44  ;;  %v2194_v57 = vrot.slane %v2192_v46, 1  ;;  %v1558_v62 = vmax.f32 %v1410_v48, 0.0 }
 0x223   : > { %8847 = vmatprep.mubr.bf16.mxu0 %v2950_v54  ;;  %v10655_v0 = vsel %vm2931_vm4, %v4618_v33, %v4620_v60 }
 0x224   : > { %v1559_v58 = vmax.f32 %v1413_v50, 0.0  ;;  %v2195_v61 = vsel %vm2119_vm5, %v2190_v55, %v2194_v57  ;;  %v2198_v20 = vor.u32 %v2196_v16, %v2194_v57 }
 0x225   : > { %8719 = vmatprep.mubr.bf16.mxu1 %v2195_v61 }
 0x226   : > { %v1613_v63 = vmul.f32 %v10339_v9, %v1559_v58 }
 0x227   : > { %v1417_v2 = vpop.f32.mrb[156].mxu1 }
 0x228   : > { %v7959_v3 = vpack.c.bf16 %v1613_v63, %v1558_v62  ;;  %v1418_v4 = vadd.f32 %v10519_v43, %v1417_v2  ;;  %v8629_v5 = vpop.f32.mrb[157].mxu1 }
 0x229   : > { %v1420_v6 = vpop.f32.mrb[158].mxu1  ;;  %v9852_v7 = vld [vmem:[#allocation3 + $0x50] sm:$0xff]  }
 0x22a   : > { %8046 = vst [vmem:[#allocation3 + $0x58] sm:$0xff] %v7959_v3   ;;  %v1560_v8 = vmax.f32 %v1418_v4, 0.0  ;;  %v1421_v10 = vadd.f32 %v10519_v43, %v1420_v6  ;;  %v8630_v11 = vpop.f32.mrb[159].mxu1  ;;  %v9926_v13 = vld [vmem:[#allocation3 + $0x4c] sm:$0xff]   ;;  %v2951_v15 = vrot.slane %v9852_v7, 1  ;;  %v2200_v17 = vshll.u32 %v9852_v7, 16 }
 0x22b   : > { %v4622_v23 = vrot.slane %v9926_v13, 1  ;;  %v2204_v39 = vshrl.u32 %v9852_v7, 16 }
 0x22c   : > { %v1614_v18 = vmul.f32 %v10330_v59, %v1560_v8  ;;  %v1561_v38 = vmax.f32 %v1421_v10, 0.0  ;;  %v2952_v19 = vsel %vm2931_vm4, %v2949_v44, %v2951_v15  ;;  %v2202_v22 = vrot.slane %v2200_v17, 1 }
 0x22d   : > { %8848 = vmatmul.mubr.bf16.gmra.mrb[16].mxu0 %v2952_v19  ;;  %v10663_v27 = vsel %vm2931_vm4, %v4620_v60, %v4622_v23 }
 0x22e   : > { %v7964_v24 = vpack.c.bf16 %v1561_v38, %v1614_v18  ;;  %v2203_v26 = vsel %vm2119_vm5, %v2198_v20, %v2202_v22  ;;  %v2206_v46 = vor.u32 %v2204_v39, %v2202_v22  ;;  %v10077_v22 = vmov 0  }
 0x22f   : > { %v1425_v25 = vpop.f32.mrb[160].mxu1  ;;  %8720 = vmatmul.mubr.bf16.gmra.mrb[232].mxu1 %v2203_v26  ;;  %438 = vst [vmem:[#allocation3 + $0xd8] sm:$0xf] %v10077_v22 }
 0x230   : > { %8047 = vst [vmem:[#allocation3 + $0x60] sm:$0xff] %v7964_v24   ;;  %v1426_v28 = vadd.f32 %v10519_v43, %v1425_v25  ;;  %v8633_v29 = vpop.f32.mrb[161].mxu1 }
 0x231   : > { %v1428_v31 = vpop.f32.mrb[162].mxu1  ;;  %v9853_v32 = vld [vmem:[#allocation3 + $0x58] sm:$0xff]  }
 0x232   : > { %v1562_v33 = vmax.f32 %v1426_v28, 0.0  ;;  %v1429_v34 = vadd.f32 %v10519_v43, %v1428_v31  ;;  %v8634_v35 = vpop.f32.mrb[163].mxu1  ;;  %v9927_v36 = vld [vmem:[#allocation3 + $0x54] sm:$0xff]   ;;  %v2953_v37 = vrot.slane %v9853_v32, 1  ;;  %v2208_v41 = vshll.u32 %v9853_v32, 16 }
 0x233   : > { %v4624_v48 = vrot.slane %v9927_v36, 1  ;;  %v2212_v62 = vshrl.u32 %v9853_v32, 16 }
 0x234   : > { %v1563_v44 = vmax.f32 %v1429_v34, 0.0  ;;  %v2954_v45 = vsel %vm2931_vm4, %v2951_v15, %v2953_v37  ;;  %v2210_v47 = vrot.slane %v2208_v41, 1  ;;  %v1616_v50 = vmul.f32 %v10339_v9, %v1562_v33 }
 0x235   : > { %8851 = vmatprep.mubr.bf16.mxu0 %v2954_v45  ;;  %v10672_v55 = vsel %vm2931_vm4, %v4622_v23, %v4624_v48 }
 0x236   : > { %v1617_v51 = vmul.f32 %v10330_v59, %v1563_v44  ;;  %v2211_v53 = vsel %vm2119_vm5, %v2206_v46, %v2210_v47  ;;  %v2214_v7 = vor.u32 %v2212_v62, %v2210_v47  ;;  %v10693_v47 = vld [vmem:[%s11829_s4] ss:$0 sm:$0xff] }
 0x237   : > { %v1433_v52 = vpop.f32.mrb[164].mxu1  ;;  %v9854_v54 = vld [vmem:[#allocation3 + $0x60] sm:$0xff]   ;;  %8723 = vmatprep.mubr.bf16.mxu1 %v2211_v53 }
 0x238   : > { %v7969_v57 = vpack.c.bf16 %v1617_v51, %v1616_v50  ;;  %v8637_v58 = vpop.f32.mrb[165].mxu1  ;;  %v2955_v61 = vrot.slane %v9854_v54, 1  ;;  %v2216_v63 = vshll.u32 %v9854_v54, 16  ;;  %v1434_v2 = vadd.f32 %v10519_v43, %v1433_v52  ;;  %v9928_v5 = vld [vmem:[#allocation3 + $0x5c] sm:$0xff]  }
 0x239   : > { %v1436_v60 = vpop.f32.mrb[166].mxu1  ;;  %v4626_v11 = vrot.slane %v9928_v5, 1  ;;  %v2220_v32 = vshrl.u32 %v9854_v54, 16 }
 0x23a   : > { %8048 = vst [vmem:[#allocation3 + $0x68] sm:$0xff] %v7969_v57   ;;  %v1437_v3 = vadd.f32 %v10519_v43, %v1436_v60  ;;  %v8638_v4 = vpop.f32.mrb[167].mxu1  ;;  %v2956_v6 = vsel %vm2931_vm4, %v2953_v37, %v2955_v61  ;;  %v2218_v8 = vrot.slane %v2216_v63, 1  ;;  %v1564_v15 = vmax.f32 %v1434_v2, 0.0 }
 0x23b   : > { %8852 = vmatmul.mubr.bf16.gmra.mrb[20].mxu0 %v2956_v6  ;;  %v10680_v17 = vsel %vm2931_vm4, %v4624_v48, %v4626_v11 }
 0x23c   : > { %v1565_v10 = vmax.f32 %v1437_v3, 0.0  ;;  %v2219_v13 = vsel %vm2119_vm5, %v2214_v7, %v2218_v8  ;;  %v2222_v37 = vor.u32 %v2220_v32, %v2218_v8 }
 0x23d   : > { %8724 = vmatmul.mubr.bf16.gmra.mrb[236].mxu1 %v2219_v13 }
 0x23e   : > { %v1619_v16 = vmul.f32 %v10339_v9, %v1565_v10 }
 0x23f   : > { %v1441_v18 = vpop.f32.mrb[168].mxu1 }
 0x240   : > { %v7974_v38 = vpack.c.bf16 %v1619_v16, %v1564_v15  ;;  %v1442_v19 = vadd.f32 %v10519_v43, %v1441_v18  ;;  %v8641_v20 = vpop.f32.mrb[169].mxu1 }
 0x241   : > { %v1444_v23 = vpop.f32.mrb[170].mxu1  ;;  %v9856_v24 = vld [vmem:[#allocation3 + $0x68] sm:$0xff]  }
 0x242   : > { %8049 = vst [vmem:[#allocation3 + $0x70] sm:$0xff] %v7974_v38   ;;  %v1566_v25 = vmax.f32 %v1442_v19, 0.0  ;;  %v1445_v26 = vadd.f32 %v10519_v43, %v1444_v23  ;;  %v8642_v28 = vpop.f32.mrb[171].mxu1  ;;  %v9929_v29 = vld [vmem:[#allocation3 + $0x64] sm:$0xff]   ;;  %v2957_v31 = vrot.slane %v9856_v24, 1  ;;  %v2224_v33 = vshll.u32 %v9856_v24, 16 }
 0x243   : > { %v4628_v41 = vrot.slane %v9929_v29, 1 }
 0x244   : > { %v1620_v34 = vmul.f32 %v10330_v59, %v1566_v25  ;;  %v1567_v35 = vmax.f32 %v1445_v26, 0.0  ;;  %v2958_v36 = vsel %vm2931_vm4, %v2955_v61, %v2957_v31  ;;  %v2226_v39 = vrot.slane %v2224_v33, 1 }
 0x245   : > { %8855 = vmatprep.mubr.bf16.mxu0 %v2958_v36  ;;  %v10688_v43 = vsel %vm2931_vm4, %v4626_v11, %v4628_v41  ;;  %v2228_v61 = vshrl.u32 %v9856_v24, 16 }
 0x246   : > { %v7979_v44 = vpack.c.bf16 %v1567_v35, %v1620_v34  ;;  %v2227_v46 = vsel %vm2119_vm5, %v2222_v37, %v2226_v39 }
 0x247   : > { %v1449_v45 = vpop.f32.mrb[172].mxu1  ;;  %8727 = vmatprep.mubr.bf16.mxu1 %v2227_v46  ;;  %v2230_v3 = vor.u32 %v2228_v61, %v2226_v39 }
 0x248   : > { %8050 = vst [vmem:[#allocation3 + $0x78] sm:$0xff] %v7979_v44   ;;  %v1450_v48 = vadd.f32 %v10693_v47, %v1449_v45  ;;  %v8645_v50 = vpop.f32.mrb[173].mxu1 }
 0x249   : > { %v1452_v51 = vpop.f32.mrb[174].mxu1  ;;  %v10696_v52 = vld [vmem:[#allocation3 + $0x70] sm:$0xff]  }
 0x24a   : > { %v1568_v53 = vmax.f32 %v1450_v48, 0.0  ;;  %v1453_v54 = vadd.f32 %v10693_v47, %v1452_v51  ;;  %v8646_v57 = vpop.f32.mrb[175].mxu1  ;;  %v9931_v58 = vld [vmem:[#allocation3 + $0x6c] sm:$0xff]   ;;  %v2959_v60 = vrot.slane %v10696_v52, 1  ;;  %v2232_v62 = vshll.u32 %v10696_v52, 16 }
 0x24b   : > { %v4630_v5 = vrot.slane %v9931_v58, 1  ;;  %v2236_v19 = vshrl.u32 %v10696_v52, 16 }
 0x24c   : > { %v1569_v63 = vmax.f32 %v1453_v54, 0.0  ;;  %v2960_v2 = vsel %vm2931_vm4, %v2957_v31, %v2959_v60  ;;  %v2234_v4 = vrot.slane %v2232_v62, 1  ;;  %v1622_v6 = vmul.f32 %v10339_v9, %v1568_v53 }
 0x24d   : > { %8856 = vmatmul.mubr.bf16.gmra.mrb[24].mxu0 %v2960_v2  ;;  %v10708_v13 = vsel %vm2931_vm4, %v4628_v41, %v4630_v5 }
 0x24e   : > { %v1623_v7 = vmul.f32 %v10330_v59, %v1569_v63  ;;  %v2235_v10 = vsel %vm2119_vm5, %v2230_v3, %v2234_v4  ;;  %v2238_v28 = vor.u32 %v2236_v19, %v2234_v4 }
 0x24f   : > { %v1457_v8 = vpop.f32.mrb[176].mxu1  ;;  %v10705_v11 = vld [vmem:[#allocation3 + $0x78] sm:$0xff]   ;;  %8728 = vmatmul.mubr.bf16.gmra.mrb[240].mxu1 %v2235_v10 }
 0x250   : > { %v7984_v15 = vpack.c.bf16 %v1623_v7, %v1622_v6  ;;  %v8649_v16 = vpop.f32.mrb[177].mxu1  ;;  %v2961_v38 = vrot.slane %v10705_v11, 1  ;;  %v2240_v20 = vshll.u32 %v10705_v11, 16  ;;  %v1458_v22 = vadd.f32 %v10693_v47, %v1457_v8  ;;  %v9932_v25 = vld [vmem:[#allocation3 + $0x74] sm:$0xff]  }
 0x251   : > { %v1460_v18 = vpop.f32.mrb[178].mxu1  ;;  %v4632_v32 = vrot.slane %v9932_v25, 1  ;;  %v2244_v57 = vshrl.u32 %v10705_v11, 16 }
 0x252   : > { %8051 = vst [vmem:[#allocation3 + $0x80] sm:$0xff] %v7984_v15   ;;  %v1461_v23 = vadd.f32 %v10693_v47, %v1460_v18  ;;  %v8650_v24 = vpop.f32.mrb[179].mxu1  ;;  %v2962_v26 = vsel %vm2931_vm4, %v2959_v60, %v2961_v38  ;;  %v2242_v29 = vrot.slane %v2240_v20, 1  ;;  %v1570_v34 = vmax.f32 %v1458_v22, 0.0 }
 0x253   : > { %8859 = vmatprep.mubr.bf16.mxu0 %v2962_v26  ;;  %v10719_v36 = vsel %vm2931_vm4, %v4630_v5, %v4632_v32 }
 0x254   : > { %v1571_v31 = vmax.f32 %v1461_v23, 0.0  ;;  %v2243_v33 = vsel %vm2119_vm5, %v2238_v28, %v2242_v29  ;;  %v2246_v63 = vor.u32 %v2244_v57, %v2242_v29 }
 0x255   : > { %8731 = vmatprep.mubr.bf16.mxu1 %v2243_v33 }
 0x256   : > { %v1625_v35 = vmul.f32 %v10339_v9, %v1571_v31 }
 0x257   : > { %v1465_v37 = vpop.f32.mrb[180].mxu1 }
 0x258   : > { %v7989_v39 = vpack.c.bf16 %v1625_v35, %v1570_v34  ;;  %v1466_v41 = vadd.f32 %v10693_v47, %v1465_v37  ;;  %v8653_v44 = vpop.f32.mrb[181].mxu1 }
 0x259   : > { %v1468_v45 = vpop.f32.mrb[182].mxu1  ;;  %v10722_v46 = vld [vmem:[#allocation3 + $0x80] sm:$0xff]  }
 0x25a   : > { %8052 = vst [vmem:[#allocation3 + $0x88] sm:$0xff] %v7989_v39   ;;  %v1572_v48 = vmax.f32 %v1466_v41, 0.0  ;;  %v1469_v50 = vadd.f32 %v10693_v47, %v1468_v45  ;;  %v8654_v51 = vpop.f32.mrb[183].mxu1  ;;  %v9934_v53 = vld [vmem:[#allocation3 + $0x7c] sm:$0xff]   ;;  %v2963_v54 = vrot.slane %v10722_v46, 1  ;;  %v2248_v58 = vshll.u32 %v10722_v46, 16 }
 0x25b   : > { %v4634_v3 = vrot.slane %v9934_v53, 1  ;;  %v2252_v23 = vshrl.u32 %v10722_v46, 16 }
 0x25c   : > { %v1626_v60 = vmul.f32 %v10330_v59, %v1572_v48  ;;  %v1573_v61 = vmax.f32 %v1469_v50, 0.0  ;;  %v2964_v62 = vsel %vm2931_vm4, %v2961_v38, %v2963_v54  ;;  %v2250_v2 = vrot.slane %v2248_v58, 1 }
 0x25d   : > { %8860 = vmatmul.mubr.bf16.gmra.mrb[28].mxu0 %v2964_v62  ;;  %v10732_v7 = vsel %vm2931_vm4, %v4632_v32, %v4634_v3 }
 0x25e   : > { %v7994_v4 = vpack.c.bf16 %v1573_v61, %v1626_v60  ;;  %v2251_v6 = vsel %vm2119_vm5, %v2246_v63, %v2250_v2  ;;  %v2254_v28 = vor.u32 %v2252_v23, %v2250_v2 }
 0x25f   : > { %v1473_v5 = vpop.f32.mrb[184].mxu1  ;;  %8732 = vmatmul.mubr.bf16.gmra.mrb[244].mxu1 %v2251_v6 }
 0x260   : > { %8053 = vst [vmem:[#allocation3 + $0x90] sm:$0xff] %v7994_v4   ;;  %v1474_v8 = vadd.f32 %v10693_v47, %v1473_v5  ;;  %v8657_v10 = vpop.f32.mrb[185].mxu1 }
 0x261   : > { %v1476_v15 = vpop.f32.mrb[186].mxu1  ;;  %v10735_v16 = vld [vmem:[#allocation3 + $0x88] sm:$0xff]  }
 0x262   : > { %v1574_v18 = vmax.f32 %v1474_v8, 0.0  ;;  %v1477_v38 = vadd.f32 %v10693_v47, %v1476_v15  ;;  %v8658_v19 = vpop.f32.mrb[187].mxu1  ;;  %v10738_v20 = vld [vmem:[#allocation3 + $0x84] sm:$0xff]   ;;  %v2965_v22 = vrot.slane %v10735_v16, 1  ;;  %v2256_v24 = vshll.u32 %v10735_v16, 16 }
 0x263   : > { %v4636_v31 = vrot.slane %v10738_v20, 1  ;;  %v2260_v50 = vshrl.u32 %v10735_v16, 16 }
 0x264   : > { %v1575_v25 = vmax.f32 %v1477_v38, 0.0  ;;  %v2966_v26 = vsel %vm2931_vm4, %v2963_v54, %v2965_v22  ;;  %v2258_v29 = vrot.slane %v2256_v24, 1  ;;  %v1628_v32 = vmul.f32 %v10339_v9, %v1574_v18 }
 0x265   : > { %8863 = vmatprep.mubr.bf16.mxu0 %v2966_v26  ;;  %v10751_v39 = vsel %vm2931_vm4, %v4634_v3, %v4636_v31 }
 0x266   : > { %v1629_v33 = vmul.f32 %v10330_v59, %v1575_v25  ;;  %v2259_v35 = vsel %vm2119_vm5, %v2254_v28, %v2258_v29  ;;  %v2262_v61 = vor.u32 %v2260_v50, %v2258_v29 }
 0x267   : > { %v1481_v34 = vpop.f32.mrb[188].mxu1  ;;  %v10748_v37 = vld [vmem:[#allocation3 + $0x90] sm:$0xff]   ;;  %8735 = vmatprep.mubr.bf16.mxu1 %v2259_v35 }
 0x268   : > { %v7999_v41 = vpack.c.bf16 %v1629_v33, %v1628_v32  ;;  %v8661_v44 = vpop.f32.mrb[189].mxu1  ;;  %v2967_v48 = vrot.slane %v10748_v37, 1  ;;  %v2264_v51 = vshll.u32 %v10748_v37, 16  ;;  %v10756_v53 = vld [vmem:[#allocation3 + $0x8c] sm:$0xff]   ;;  %v1482_v54 = vadd.f32 %v10693_v47, %v1481_v34 }
 0x269   : > { %v1484_v45 = vpop.f32.mrb[190].mxu1  ;;  %v4638_v2 = vrot.slane %v10756_v53, 1  ;;  %v2268_v28 = vshrl.u32 %v10748_v37, 16 }
 0x26a   : > { %8054 = vst [vmem:[#allocation3 + $0x98] sm:$0xff] %v7999_v41   ;;  %v1485_v57 = vadd.f32 %v10693_v47, %v1484_v45  ;;  %v8662_v58 = vpop.f32.mrb[191].mxu1  ;;  %v2968_v60 = vsel %vm2931_vm4, %v2965_v22, %v2967_v48  ;;  %v2266_v62 = vrot.slane %v2264_v51, 1  ;;  %v1576_v4 = vmax.f32 %v1482_v54, 0.0 }
 0x26b   : > { %8864 = vmatmul.mubr.bf16.gmra.mrb[32].mxu0 %v2968_v60  ;;  %v10765_v6 = vsel %vm2931_vm4, %v4636_v31, %v4638_v2 }
 0x26c   : > { %v1577_v63 = vmax.f32 %v1485_v57, 0.0  ;;  %v2267_v3 = vsel %vm2119_vm5, %v2262_v61, %v2266_v62  ;;  %v2270_v34 = vor.u32 %v2268_v28, %v2266_v62 }
 0x26d   : > { %8736 = vmatmul.mubr.bf16.gmra.mrb[248].mxu1 %v2267_v3 }
 0x26e   : > { %v1631_v5 = vmul.f32 %v10339_v9, %v1577_v63 }
 0x26f   : > { %v1489_v8 = vpop.f32.mrb[192].mxu1 }
 0x270   : > { %v8004_v10 = vpack.c.bf16 %v1631_v5, %v1576_v4  ;;  %v1490_v15 = vadd.f32 %v10693_v47, %v1489_v8  ;;  %v8665_v18 = vpop.f32.mrb[193].mxu1 }
 0x271   : > { %v1492_v38 = vpop.f32.mrb[194].mxu1  ;;  %v10768_v19 = vld [vmem:[#allocation3 + $0x98] sm:$0xff]  }
 0x272   : > { %8055 = vst [vmem:[#allocation3 + $0xa0] sm:$0xff] %v8004_v10   ;;  %v1578_v22 = vmax.f32 %v1490_v15, 0.0  ;;  %v1493_v23 = vadd.f32 %v10693_v47, %v1492_v38  ;;  %v8666_v24 = vpop.f32.mrb[195].mxu1  ;;  %v10771_v25 = vld [vmem:[#allocation3 + $0x94] sm:$0xff]   ;;  %v2969_v26 = vrot.slane %v10768_v19, 1  ;;  %v2272_v29 = vshll.u32 %v10768_v19, 16 }
 0x273   : > { %v4640_v41 = vrot.slane %v10771_v25, 1  ;;  %v2276_v4 = vshrl.u32 %v10768_v19, 16 }
 0x274   : > { %v1632_v31 = vmul.f32 %v10330_v59, %v1578_v22  ;;  %v1579_v32 = vmax.f32 %v1493_v23, 0.0  ;;  %v2970_v33 = vsel %vm2931_vm4, %v2967_v48, %v2969_v26  ;;  %v2274_v35 = vrot.slane %v2272_v29, 1 }
 0x275   : > { %8867 = vmatprep.mubr.bf16.mxu0 %v2970_v33  ;;  %v10781_v51 = vsel %vm2931_vm4, %v4638_v2, %v4640_v41 }
 0x276   : > { %v8009_v44 = vpack.c.bf16 %v1579_v32, %v1632_v31  ;;  %v2275_v50 = vsel %vm2119_vm5, %v2270_v34, %v2274_v35  ;;  %v2278_v10 = vor.u32 %v2276_v4, %v2274_v35 }
 0x277   : > { %v1497_v45 = vpop.f32.mrb[196].mxu1  ;;  %8739 = vmatprep.mubr.bf16.mxu1 %v2275_v50 }
 0x278   : > { %8056 = vst [vmem:[#allocation3 + $0xa8] sm:$0xff] %v8009_v44   ;;  %v1498_v54 = vadd.f32 %v10693_v47, %v1497_v45  ;;  %v8669_v57 = vpop.f32.mrb[197].mxu1 }
 0x279   : > { %v1500_v58 = vpop.f32.mrb[198].mxu1  ;;  %v10784_v60 = vld [vmem:[#allocation3 + $0xa0] sm:$0xff]  }
 0x27a   : > { %v1580_v48 = vmax.f32 %v1498_v54, 0.0  ;;  %v1501_v61 = vadd.f32 %v10693_v47, %v1500_v58  ;;  %v8670_v62 = vpop.f32.mrb[199].mxu1  ;;  %v10787_v63 = vld [vmem:[#allocation3 + $0x9c] sm:$0xff]   ;;  %v2971_v3 = vrot.slane %v10784_v60, 1  ;;  %v2280_v2 = vshll.u32 %v10784_v60, 16 }
 0x27b   : > { %v4642_v18 = vrot.slane %v10787_v63, 1  ;;  %v2284_v34 = vshrl.u32 %v10784_v60, 16 }
 0x27c   : > { %v1581_v5 = vmax.f32 %v1501_v61, 0.0  ;;  %v2972_v8 = vsel %vm2931_vm4, %v2969_v26, %v2971_v3  ;;  %v2282_v15 = vrot.slane %v2280_v2, 1  ;;  %v1634_v38 = vmul.f32 %v10339_v9, %v1580_v48 }
 0x27d   : > { %8868 = vmatmul.mubr.bf16.gmra.mrb[36].mxu0 %v2972_v8  ;;  %v10800_v29 = vsel %vm2931_vm4, %v4640_v41, %v4642_v18 }
 0x27e   : > { %v1635_v22 = vmul.f32 %v10330_v59, %v1581_v5  ;;  %v2283_v24 = vsel %vm2119_vm5, %v2278_v10, %v2282_v15  ;;  %v2286_v57 = vor.u32 %v2284_v34, %v2282_v15 }
 0x27f   : > { %v1505_v23 = vpop.f32.mrb[200].mxu1  ;;  %v10797_v28 = vld [vmem:[#allocation3 + $0xa8] sm:$0xff]   ;;  %8740 = vmatmul.mubr.bf16.gmra.mrb[252].mxu1 %v2283_v24 }
 0x280   : > { %v8014_v31 = vpack.c.bf16 %v1635_v22, %v1634_v38  ;;  %v8673_v32 = vpop.f32.mrb[201].mxu1  ;;  %v2973_v33 = vrot.slane %v10797_v28, 1  ;;  %v2288_v35 = vshll.u32 %v10797_v28, 16  ;;  %v1506_v44 = vadd.f32 %v10693_v47, %v1505_v23  ;;  %v10807_v54 = vld [vmem:[#allocation3 + $0xa4] sm:$0xff]  }
 0x281   : > { %v1508_v26 = vpop.f32.mrb[202].mxu1  ;;  %v4644_v61 = vrot.slane %v10807_v54, 1 }
 0x282   : > { %8057 = vst [vmem:[#allocation3 + $0xb0] sm:$0xff] %v8014_v31   ;;  %v1509_v45 = vadd.f32 %v10693_v47, %v1508_v26  ;;  %v8674_v50 = vpop.f32.mrb[203].mxu1  ;;  %v2974_v41 = vsel %vm2931_vm4, %v2971_v3, %v2973_v33  ;;  %v2290_v58 = vrot.slane %v2288_v35, 1  ;;  %v1582_v4 = vmax.f32 %v1506_v44, 0.0 }
 0x283   : > { %8871 = vmatprep.mubr.bf16.mxu0 %v2974_v41  ;;  %v10814_v5 = vsel %vm2931_vm4, %v4642_v18, %v4644_v61  ;;  %v2292_v26 = vshrl.u32 %v10797_v28, 16 }
 0x284   : > { %v1583_v48 = vmax.f32 %v1509_v45, 0.0  ;;  %v2291_v62 = vsel %vm2119_vm5, %v2286_v57, %v2290_v58 }
 0x285   : > { %8743 = vmatprep.mubr.bf16.mxu1 %v2291_v62  ;;  %v2294_v45 = vor.u32 %v2292_v26, %v2290_v58 }
 0x286   : > { %v1637_v2 = vmul.f32 %v10339_v9, %v1583_v48 }
 0x287   : > { %v1513_v8 = vpop.f32.mrb[204].mxu1 }
 0x288   : > { %v8019_v10 = vpack.c.bf16 %v1637_v2, %v1582_v4  ;;  %v1514_v38 = vadd.f32 %v10693_v47, %v1513_v8  ;;  %v8677_v3 = vpop.f32.mrb[205].mxu1 }
 0x289   : > { %v1516_v15 = vpop.f32.mrb[206].mxu1  ;;  %v10817_v22 = vld [vmem:[#allocation3 + $0xb0] sm:$0xff]  }
 0x28a   : > { %8058 = vst [vmem:[#allocation3 + $0xb8] sm:$0xff] %v8019_v10   ;;  %v1584_v23 = vmax.f32 %v1514_v38, 0.0  ;;  %v1517_v24 = vadd.f32 %v10693_v47, %v1516_v15  ;;  %v8678_v31 = vpop.f32.mrb[207].mxu1  ;;  %v10820_v32 = vld [vmem:[#allocation3 + $0xac] sm:$0xff]   ;;  %v2975_v18 = vrot.slane %v10817_v22, 1  ;;  %v2296_v34 = vshll.u32 %v10817_v22, 16 }
 0x28b   : > { %v4646_v57 = vrot.slane %v10820_v32, 1 }
 0x28c   : > { %v1638_v35 = vmul.f32 %v10330_v59, %v1584_v23  ;;  %v1585_v44 = vmax.f32 %v1517_v24, 0.0  ;;  %v2976_v50 = vsel %vm2931_vm4, %v2973_v33, %v2975_v18  ;;  %v2298_v41 = vrot.slane %v2296_v34, 1 }
 0x28d   : > { %8872 = vmatmul.mubr.bf16.gmra.mrb[40].mxu0 %v2976_v50  ;;  %v10830_v2 = vsel %vm2931_vm4, %v4644_v61, %v4646_v57  ;;  %v2300_v24 = vshrl.u32 %v10817_v22, 16 }
 0x28e   : > { %v8024_v48 = vpack.c.bf16 %v1585_v44, %v1638_v35  ;;  %v2299_v4 = vsel %vm2119_vm5, %v2294_v45, %v2298_v41 }
 0x28f   : > { %v1521_v62 = vpop.f32.mrb[208].mxu1  ;;  %8744 = vmatmul.mubr.bf16.gmra.mrb[0].mxu1 %v2299_v4  ;;  %v2302_v35 = vor.u32 %v2300_v24, %v2298_v41 }
 0x290   : > { %8059 = vst [vmem:[#allocation3 + $0xc0] sm:$0xff] %v8024_v48   ;;  %v1522_v8 = vadd.f32 %v10693_v47, %v1521_v62  ;;  %v8681_v10 = vpop.f32.mrb[209].mxu1 }
 0x291   : > { %v1524_v59 = vpop.f32.mrb[210].mxu1  ;;  %v10833_v58 = vld [vmem:[#allocation3 + $0xb8] sm:$0xff]  }
 0x292   : > { %v1586_v33 = vmax.f32 %v1522_v8, 0.0  ;;  %v1525_v38 = vadd.f32 %v10693_v47, %v1524_v59  ;;  %v8682_v3 = vpop.f32.mrb[211].mxu1  ;;  %v10836_v15 = vld [vmem:[#allocation3 + $0xb4] sm:$0xff]   ;;  %v2977_v23 = vrot.slane %v10833_v58, 1  ;;  %v2304_v61 = vshll.u32 %v10833_v58, 16 }
 0x293   : > { %v4648_v45 = vrot.slane %v10836_v15, 1 }
 0x294   : > { %v1640_v31 = vmul.f32 %v10339_v9, %v1586_v33  ;;  %v1587_v26 = vmax.f32 %v1525_v38, 0.0  ;;  %v2978_v34 = vsel %vm2931_vm4, %v2975_v18, %v2977_v23  ;;  %v2306_v44 = vrot.slane %v2304_v61, 1 }
 0x295   : > { %8875 = vmatprep.mubr.bf16.mxu0 %v2978_v34  ;;  %v10846_v8 = vsel %vm2931_vm4, %v4646_v57, %v4648_v45  ;;  %v2308_v33 = vshrl.u32 %v10833_v58, 16 }
 0x296   : > { %v1641_v50 = vmul.f32 0.0, %v1587_v26  ;;  %v2307_v62 = vsel %vm2119_vm5, %v2302_v35, %v2306_v44  ;;  %v9881_v35 = vld [vmem:[#allocation3 + $0xc] sm:$0xff]  }
 0x297   : > { %v1529_v48 = vpop.f32.mrb[212].mxu1  ;;  %v9880_v4 = vld [vmem:[#allocation3 + $0xc0] ss:$0 sps:$4 sm:$0x11]   ;;  %8747 = vmatprep.mubr.bf16.mxu1 %v2307_v62  ;;  %v2310_v34 = vor.u32 %v2308_v33, %v2306_v44  ;;  %v9885_v44 = vld [vmem:[#allocation3 + $0x14] sm:$0xff]  }
 0x298   : > { %v8029_v10 = vpack.c.bf16 %v1641_v50, %v1640_v31  ;;  %v1530_v59 = vadd.f32 %v10693_v47, %v1529_v48  ;;  %v8685_v9 = vpop.f32.mrb[213].mxu1  ;;  %v2312_v41 = vshll.u32 %v9880_v4, 16  ;;  %v2979_v38 = vrot.slane %v9880_v4, 1  ;;  %v10850_v3 = vld [vmem:[#allocation3 + $0xbc] sm:$0xff]  }
 0x299   : > { %v1532_v18 = vpop.f32.mrb[214].mxu1  ;;  %v4650_v62 = vrot.slane %v10850_v3, 1 }
 0x29a   : > { %8060 = vst [vmem:[#allocation3 + $0xc8] sm:$0xff] %v8029_v10   ;;  %v1588_v24 = vmax.f32 %v1530_v59, 0.0  ;;  %v1533_v61 = vadd.f32 %v10693_v47, %v1532_v18  ;;  %v8686_v26 = vpop.f32.mrb[215].mxu1  ;;  %v2314_v57 = vrot.slane %v2312_v41, 1  ;;  %v2980_v31 = vsel %vm2931_vm4, %v2977_v23, %v2979_v38  ;;  %v9889_v23 = vld [vmem:[%s11830_s5 + $0x108] sm:$0xff]   ;;  %v10029_v38 = vld [vmem:[#allocation3 + $0x8] sm:$0xff]  }
 0x29b   : > { %8876 = vmatmul.mubr.bf16.gmra.mrb[44].mxu0 %v2980_v31  ;;  %v10857_v10 = vsel %vm2931_vm4, %v4648_v45, %v4650_v62  ;;  %v9886_v18 = vld [vmem:[#allocation3 + $0x1c] sm:$0xff]   ;;  %v10028_v45 = vld [vmem:[%s11830_s5 + $0x100] sm:$0xff]   ;;  %v9897_v31 = vld [vmem:[%s11830_s5 + $0x118] sm:$0xff]  }
 0x29c   : > { %v1642_v50 = vmul.f32 0.0, %v1588_v24  ;;  %v1589_v48 = vmax.f32 %v1533_v61, 0.0  ;;  %8895 = vmatprep.mubr.bf16.mxu0 %v9881_v35  ;;  %v2315_v4 = vsel %vm2119_vm5, %v2310_v34, %v2314_v57  ;;  %v9892_v24 = vld [vmem:[%s11830_s5 + $0x110] sm:$0xff]   ;;  %v10030_v26 = vld [vmem:[#allocation3 + $0x10] sm:$0xff]  }
 0x29d   : > { %8748 = vmatmul.mubr.bf16.gmra.mrb[4].mxu1 %v2315_v4  ;;  %v9887_v57 = vld [vmem:[#allocation3 + $0x24] sm:$0xff]   ;;  %v9888_v35 = vld [vmem:[#allocation3 + $0x2c] sm:$0xff]  }
 0x29e   : > { %v1643_v9 = vmul.f32 0.0, %v1589_v48  ;;  %8767 = vmatprep.mubr.bf16.mxu1 %v10534_v14  ;;  %v10010_v48 = vld [vmem:[#allocation3 + $0x98] sm:$0xff]   ;;  %v10011_v4 = vld [vmem:[#allocation3 + $0xa0] sm:$0xff]  }
 0x2a0   : > { %v8034_v47 = vpack.c.bf16 %v1643_v9, %v1642_v50  ;;  %v10884_v50 = vld [vmem:[#allocation3 + $0x90] sm:$0xff]   ;;  %v10013_v9 = vld [vmem:[#allocation3 + $0xa8] sm:$0xff]  }
 0x2a1   : > { %v10863_v59 = vld [vmem:[#allocation3 + $0xc4] sm:$0xff]   ;;  %v10865_v33 = vld [vmem:[#allocation3 + $0xcc] ss:$0 sps:$4 sm:$0x11]  }
 0x2a2   : > { %8061 = vst [vmem:[#allocation3 + $0xd0] sm:$0xff] %v8034_v47   ;;  %v4652_v41 = vrot.slane %v10863_v59, 1  ;;  %v4654_v14 = vrot.slane %v10865_v33, 1  ;;  %v10031_v47 = vld [vmem:[#allocation3 + $0x18] sm:$0xff]  }
 0x2a3   : > { %8896 = vmatmul.mubr.bf16.vlgmr.msra.gmra.mrb[0].mxu0 %v9885_v44  ;;  %v10014_v44 = vld [vmem:[#allocation3 + $0xb0] sm:$0xff]  }
 0x2a4   : > { %8944 = vmatpush3.bf16.msra.mxu0 %v10028_v45  ;;  %8899 = vmatprep.mubr.bf16.mxu0 %v9886_v18  ;;  %v10876_v61 = vsel %vm2931_vm4, %v4650_v62, %v4652_v41  ;;  %v10879_v34 = vsel %vm2931_vm4, %v4652_v41, %v4654_v14  ;;  %v9900_v62 = vld [vmem:[%s11830_s5 + $0x120] sm:$0xff]   ;;  %v10017_v18 = vld [vmem:[#allocation3 + $0xc0] sm:$0xff]   ;;  %v11842_v45 = vrot.slane %v10884_v50, 1  ;;  %v6313_v14 = vrot.slane %v10010_v48, 1 }
 0x2a5   : > { %8768 = vmatmul.mubr.bf16.vlgmr.msra.gmra.mrb[216].mxu1 %v10029_v38  ;;  %8945 = vmatprep.subr.bf16.mxu0 %v9889_v23  ;;  %v10032_v41 = vld [vmem:[#allocation3 + $0x20] sm:$0xff]  }
 0x2a6   : > { %8771 = vmatprep.mubr.bf16.mxu1 %v10030_v26  ;;  %v10893_v38 = vsel %vm2931_vm4, %v11842_v45, %v6313_v14  ;;  %v6317_v26 = vrot.slane %v10013_v9, 1 }
 0x2a8   : > { %8946 = vmatpush3.bf16.msra.mxu0 %v9889_v23  ;;  %v10016_v23 = vld [vmem:[#allocation3 + $0xb8] sm:$0xff]  }
 0x2a9   : > { %8947 = vmatprep.subr.bf16.mxu0 %v9892_v24  ;;  %v6321_v1 = vrot.slane %v10016_v23, 1  ;;  %v10033_v23 = vld [vmem:[#allocation3 + $0x28] sm:$0xff]  }
 0x2ab   : > { %8900 = vmatmul.mubr.bf16.gmra.mrb[4].mxu0 %v9887_v57  ;;  %v9890_v57 = vld [vmem:[#allocation3 + $0x34] sm:$0xff]  }
 0x2ac   : > { %8903 = vmatprep.mubr.bf16.mxu0 %v9888_v35  ;;  %8948 = vmatpush3.bf16.msra.mxu0 %v9892_v24  ;;  %v6315_v24 = vrot.slane %v10011_v4, 1  ;;  %v9905_v35 = vld [vmem:[%s11830_s5 + $0x128] sm:$0xff]  }
 0x2ad   : > { %8772 = vmatmul.mubr.bf16.gmra.mrb[220].mxu1 %v10031_v47  ;;  %8949 = vmatprep.subr.bf16.mxu0 %v9897_v31  ;;  %v6319_v47 = vrot.slane %v10014_v44, 1  ;;  %v10018_v44 = vld [vmem:[#allocation3 + $0xc8] sm:$0xff]  }
 0x2ae   : > { %8775 = vmatprep.mubr.bf16.mxu1 %v10032_v41  ;;  %v6323_v41 = vrot.slane %v10017_v18, 1  ;;  %v10899_v48 = vsel %vm2931_vm4, %v6313_v14, %v6315_v24  ;;  %v9908_v18 = vld [vmem:[%s11830_s5 + $0x130] sm:$0xff]   ;;  %v10034_v14 = vld [vmem:[#allocation3 + $0x30] sm:$0xff]  }
 0x2af   : > { %v10905_v4 = vsel %vm2931_vm4, %v6317_v26, %v6319_v47  ;;  %v10908_v9 = vsel %vm2931_vm4, %v6319_v47, %v6321_v1  ;;  %v10035_v47 = vld [vmem:[#allocation3 + $0x38] sm:$0xff]  }
 0x2b0   : > { %8950 = vmatpush3.bf16.msra.mxu0 %v9897_v31  ;;  %v10902_v31 = vsel %vm2931_vm4, %v6315_v24, %v6317_v26  ;;  %11850 = vst [vmem:[#allocation5_spill] sm:$0xff] %v10908_v9  ;;  %v10911_v45 = vsel %vm2931_vm4, %v6321_v1, %v6323_v41  ;;  %v6325_v24 = vrot.slane %v10018_v44, 1  ;;  %v9893_v26 = vld [vmem:[#allocation3 + $0x44] sm:$0xff]   ;;  %v9902_v9 = vld [vmem:[#allocation3 + $0x7c] sm:$0xff]  }
 0x2b1   : > { %8951 = vmatprep.subr.bf16.mxu0 %v9900_v62  ;;  %11851 = vst [vmem:[#allocation6_spill] sm:$0xff] %v10911_v45  ;;  %v9913_v1 = vld [vmem:[%s11830_s5 + $0x138] sm:$0xff]   ;;  %v10036_v44 = vld [vmem:[#allocation3 + $0x40] sm:$0xff]   ;;  %v9901_v45 = vld [vmem:[#allocation3 + $0x74] sm:$0xff]  }
 0x2b3   : > { %8904 = vmatmul.mubr.bf16.gmra.mrb[8].mxu0 %v9890_v57  ;;  %v10922_v57 = vld [vmem:[#allocation3 + $0xd0] sm:$0xff]  }
 0x2b4   : > { %8907 = vmatprep.mubr.bf16.mxu0 %v9891_v49  ;;  %8952 = vmatpush3.bf16.msra.mxu0 %v9900_v62  ;;  %v9894_v49 = vld [vmem:[#allocation3 + $0x4c] sm:$0xff]   ;;  %v10920_v62 = vsel %vm2931_vm4, %v6323_v41, %v6325_v24  ;;  %v9895_v41 = vld [vmem:[#allocation3 + $0x54] sm:$0xff]  }
 0x2b5   : > { %8776 = vmatmul.mubr.bf16.gmra.mrb[224].mxu1 %v10033_v23  ;;  %8953 = vmatprep.subr.bf16.mxu0 %v9905_v35  ;;  %11852 = vst [vmem:[#allocation7_spill] sm:$0xff] %v10920_v62  ;;  %v11843_v23 = vrot.slane %v10922_v57, 1  ;;  %v10040_v62 = vld [vmem:[#allocation3 + $0x60] sm:$0xff]  }
 0x2b6   : > { %8779 = vmatprep.mubr.bf16.mxu1 %v10034_v14  ;;  %v9896_v14 = vld [vmem:[#allocation3 + $0x5c] sm:$0xff]  }
 0x2b8   : > { %8954 = vmatpush3.bf16.msra.mxu0 %v9905_v35  ;;  %v10927_v35 = vld [vmem:[%s11830_s5 + $0x140] sm:$0xff]  }
 0x2b9   : > { %8955 = vmatprep.subr.bf16.mxu0 %v9908_v18 }
 0x2bb   : > { %8908 = vmatmul.mubr.bf16.gmra.mrb[12].mxu0 %v9893_v26  ;;  %v10037_v26 = vld [vmem:[#allocation3 + $0x48] sm:$0xff]  }
 0x2bc   : > { %8911 = vmatprep.mubr.bf16.mxu0 %v9894_v49  ;;  %8956 = vmatpush3.bf16.msra.mxu0 %v9908_v18  ;;  %v10934_v18 = vsel %vm2931_vm4, %v6325_v24, %v11843_v23  ;;  %v10038_v49 = vld [vmem:[#allocation3 + $0x50] sm:$0xff]   ;;  %v10041_v24 = vld [vmem:[#allocation3 + $0x68] sm:$0xff]  }
 0x2bd   : > { %8780 = vmatmul.mubr.bf16.gmra.mrb[228].mxu1 %v10035_v47  ;;  %8957 = vmatprep.subr.bf16.mxu0 %v9913_v1  ;;  %v9898_v47 = vld [vmem:[#allocation3 + $0x64] sm:$0xff]  }
 0x2be   : > { %8783 = vmatprep.mubr.bf16.mxu1 %v10036_v44  ;;  %v9899_v44 = vld [vmem:[#allocation3 + $0x6c] sm:$0xff]  }
 0x2c0   : > { %8958 = vmatpush3.bf16.msra.mxu0 %v9913_v1  ;;  %v10039_v1 = vld [vmem:[#allocation3 + $0x58] sm:$0xff]  }
 0x2c1   : > { %9007 = vmatprep.subr.bf16.mxu0 %v10927_v35 }
 0x2c3   : > { %8912 = vmatmul.mubr.bf16.gmra.mrb[16].mxu0 %v9895_v41  ;;  %v9903_v41 = vld [vmem:[#allocation3 + $0x84] sm:$0xff]  }
 0x2c4   : > { %8915 = vmatprep.mubr.bf16.mxu0 %v9896_v14  ;;  %v9904_v14 = vld [vmem:[#allocation3 + $0x8c] sm:$0xff]  }
 0x2c5   : > { %8784 = vmatmul.mubr.bf16.gmra.mrb[232].mxu1 %v10037_v26  ;;  %v9906_v26 = vld [vmem:[#allocation3 + $0x94] sm:$0xff]  }
 0x2c6   : > { %8787 = vmatprep.mubr.bf16.mxu1 %v10038_v49  ;;  %v9907_v49 = vld [vmem:[#allocation3 + $0x9c] sm:$0xff]  }
 0x2cb   : > { %8916 = vmatmul.mubr.bf16.gmra.mrb[20].mxu0 %v9898_v47 }
 0x2cc   : > { %8919 = vmatprep.mubr.bf16.mxu0 %v9899_v44  ;;  %v9912_v44 = vld [vmem:[#allocation3 + $0xbc] sm:$0xff]  }
 0x2cd   : > { %8788 = vmatmul.mubr.bf16.gmra.mrb[236].mxu1 %v10039_v1  ;;  %v10043_v1 = vld [vmem:[#allocation3 + $0x14] sm:$0xff]  }
 0x2ce   : > { %8791 = vmatprep.mubr.bf16.mxu1 %v10040_v62  ;;  %v10042_v62 = vld [vmem:[#allocation3 + $0x10] sm:$0xf] }
 0x2d3   : > { %8920 = vmatmul.mubr.bf16.gmra.mrb[24].mxu0 %v9901_v45  ;;  %v9909_v45 = vld [vmem:[#allocation3 + $0xa4] sm:$0xff]  }
 0x2d4   : > { %8923 = vmatprep.mubr.bf16.mxu0 %v9902_v9  ;;  %v9910_v9 = vld [vmem:[#allocation3 + $0xac] sm:$0xff]  }
 0x2d5   : > { %8792 = vmatmul.mubr.bf16.gmra.mrb[240].mxu1 %v10041_v24  ;;  %v4053_v24 = vshll.u32 %v10043_v1, 16 }
 0x2d6   : > { %8795 = vmatprep.mubr.bf16.mxu1 %v10696_v52  ;;  %v3856_v52 = vld [vmem:[#allocation3 + $0xc] sm:$0xf] }
 0x2d7   : > { %v7662_v47 = vcombine.low %v3856_v52, %v10042_v62  ;;  %v4057_v62 = vshrl.u32 %v10043_v1, 16 }
 0x2db   : > { %8924 = vmatmul.mubr.bf16.gmra.mrb[28].mxu0 %v9903_v41  ;;  %v4055_v41 = vrot.slane %v4053_v24, 1 }
 0x2dc   : > { %8927 = vmatprep.mubr.bf16.mxu0 %v9904_v14  ;;  %v9914_v14 = vld [vmem:[#allocation3 + $0xc4] sm:$0xff]  }
 0x2dd   : > { %8796 = vmatmul.mubr.bf16.gmra.mrb[244].mxu1 %v10705_v11  ;;  %v9911_v11 = vld [vmem:[#allocation3 + $0xb4] sm:$0xff]  }
 0x2de   : > { %8799 = vmatprep.mubr.bf16.mxu1 %v10722_v46  ;;  %v4048_v46 = vshll.u32 %v7662_v47, 16 }
 0x2e3   : > { %8928 = vmatmul.mubr.bf16.gmra.mrb[32].mxu0 %v9906_v26  ;;  %v10044_v26 = vld [vmem:[#allocation3 + $0x1c] sm:$0xff]  }
 0x2e4   : > { %8931 = vmatprep.mubr.bf16.mxu0 %v9907_v49  ;;  %v4061_v49 = vshll.u32 %v10044_v26, 16 }
 0x2e5   : > { %8800 = vmatmul.mubr.bf16.gmra.mrb[248].mxu1 %v10735_v16  ;;  %v4050_v16 = vrot.slane %v4048_v46, 1 }
 0x2e6   : > { %8803 = vmatprep.mubr.bf16.mxu1 %v10748_v37  ;;  %v4046_v37 = vshrl.u32 %v7662_v47, 16  ;;  %v4063_v52 = vrot.slane %v4061_v49, 1 }
 0x2eb   : > { %8932 = vmatmul.mubr.bf16.gmra.mrb[36].mxu0 %v9909_v45  ;;  %v10045_v45 = vld [vmem:[#allocation3 + $0x24] sm:$0xff]  }
 0x2ec   : > { %8935 = vmatprep.mubr.bf16.mxu0 %v9910_v9  ;;  %v4069_v9 = vshll.u32 %v10045_v45, 16 }
 0x2ed   : > { %8804 = vmatmul.mubr.bf16.gmra.mrb[252].mxu1 %v10768_v19  ;;  %v4051_v19 = vor.u32 %v4050_v16, %v4046_v37  ;;  %v9922_v16 = vld [vmem:[%s11830_s5 + $0x148] sm:$0xff]  }
 0x2ee   : > { %8807 = vmatprep.mubr.bf16.mxu1 %v10784_v60  ;;  %v4071_v47 = vrot.slane %v4069_v9, 1 }
 0x2ef   : > { %v4056_v60 = vsel %vm2119_vm5, %v4051_v19, %v4055_v41 }
 0x2f3   : > { %8936 = vmatmul.mubr.bf16.gmra.mrb[40].mxu0 %v9911_v11  ;;  %v4059_v11 = vor.u32 %v4057_v62, %v4055_v41  ;;  %v9925_v41 = vld [vmem:[%s11830_s5 + $0x150] sm:$0xff]  }
 0x2f4   : > { %8939 = vmatprep.mubr.bf16.mxu0 %v9912_v44  ;;  %v10046_v44 = vld [vmem:[#allocation3 + $0x2c] sm:$0xff]   ;;  %v10048_v62 = vld [vmem:[#allocation3 + $0x3c] sm:$0xff]  }
 0x2f5   : > { %8808 = vmatmul.mubr.bf16.gmra.mrb[0].mxu1 %v10797_v28  ;;  %v11853_v28 = vmov 0.0   ;;  %v4077_v24 = vshll.u32 %v10046_v44, 16  ;;  %v4064_v37 = vsel %vm2119_vm5, %v4059_v11, %v4063_v52  ;;  %v4081_v49 = vshrl.u32 %v10046_v44, 16 }
 0x2f6   : > { %8811 = vmatprep.mubr.bf16.mxu1 %v10817_v22  ;;  %v4065_v22 = vshrl.u32 %v10044_v26, 16  ;;  %v4073_v26 = vshrl.u32 %v10045_v45, 16 }
 0x2f7   : > { %v4079_v19 = vrot.slane %v4077_v24, 1  ;;  %v10049_v24 = vld [vmem:[#allocation3 + $0x44] sm:$0xff]  }
 0x2f8   : > { %v4067_v46 = vor.u32 %v4065_v22, %v4063_v52  ;;  %v4075_v9 = vor.u32 %v4073_v26, %v4071_v47  ;;  %v4093_v22 = vshll.u32 %v10048_v62, 16 }
 0x2f9   : > { %v4083_v52 = vor.u32 %v4081_v49, %v4079_v19 }
 0x2fa   : > { %v4080_v11 = vsel %vm2119_vm5, %v4075_v9, %v4079_v19  ;;  %v4095_v45 = vrot.slane %v4093_v22, 1  ;;  %v10050_v19 = vld [vmem:[#allocation3 + $0x4c] sm:$0xff]   ;;  %v9938_v9 = vld [vmem:[%s11830_s5 + $0x168] sm:$0xff]  }
 0x2fb   : > { %8940 = vmatmul.mubr.bf16.gmra.mrb[44].mxu0 %v9914_v14  ;;  %v10047_v14 = vld [vmem:[#allocation3 + $0x34] sm:$0xff]   ;;  %v4109_v49 = vshll.u32 %v10050_v19, 16 }
 0x2fc   : > { %8959 = vmatprep.mubr.bf16.mxu0 %v4056_v60  ;;  %v4085_v1 = vshll.u32 %v10047_v14, 16  ;;  %v4089_v44 = vshrl.u32 %v10047_v14, 16  ;;  %v10051_v22 = vld [vmem:[#allocation3 + $0x54] sm:$0xff]  }
 0x2fd   : > { %8812 = vmatmul.mubr.bf16.gmra.mrb[4].mxu1 %v10833_v58  ;;  %v4072_v58 = vsel %vm2119_vm5, %v4067_v46, %v4071_v47  ;;  %v9933_v47 = vld [vmem:[%s11830_s5 + $0x160] sm:$0xff]   ;;  %v4111_v14 = vrot.slane %v4109_v49, 1  ;;  %v10053_v49 = vld [vmem:[#allocation3 + $0x64] sm:$0xff]  }
 0x2fe   : > { %9295 = vmatprep.mubr.msk.f32.mxu1 %vm10076_vm0, %v11853_v28  ;;  %v4087_v60 = vrot.slane %v4085_v1, 1  ;;  %v9973_v28 = vld [vmem:[#allocation3 + $0x78] sm:$0xff]  }
 0x300   : > { %v4088_v46 = vsel %vm2119_vm5, %v4083_v52, %v4087_v60  ;;  %v4091_v1 = vor.u32 %v4089_v44, %v4087_v60  ;;  %v9941_v60 = vld [vmem:[%s11830_s5 + $0x170] sm:$0xff]  }
 0x303   : > { %8960 = vmatmul.mubr.bf16.vlgmr.msra.gmra.mrb[0].mxu0 %v4064_v37  ;;  %v4101_v37 = vshll.u32 %v10049_v24, 16 }
 0x304   : > { %9008 = vmatpush3.bf16.msra.mxu0 %v10927_v35  ;;  %8963 = vmatprep.mubr.bf16.mxu0 %v4072_v58  ;;  %v9930_v35 = vld [vmem:[%s11830_s5 + $0x158] sm:$0xff]  }
 0x305   : > { %9009 = vmatprep.subr.bf16.mxu0 %v9922_v16  ;;  %v4103_v58 = vrot.slane %v4101_v37, 1 }
 0x308   : > { %9010 = vmatpush3.bf16.msra.mxu0 %v9922_v16  ;;  %v4097_v16 = vshrl.u32 %v10048_v62, 16  ;;  %v4105_v62 = vshrl.u32 %v10049_v24, 16 }
 0x309   : > { %9011 = vmatprep.subr.bf16.mxu0 %v9925_v41 }
 0x30a   : > { %v4099_v26 = vor.u32 %v4097_v16, %v4095_v45  ;;  %v4107_v37 = vor.u32 %v4105_v62, %v4103_v58  ;;  %v10054_v62 = vld [vmem:[#allocation3 + $0x6c] sm:$0xff]  }
 0x30b   : > { %8964 = vmatmul.mubr.bf16.gmra.mrb[4].mxu0 %v4080_v11  ;;  %v4117_v11 = vshll.u32 %v10051_v22, 16 }
 0x30c   : > { %8967 = vmatprep.mubr.bf16.mxu0 %v4088_v46  ;;  %9012 = vmatpush3.bf16.msra.mxu0 %v9925_v41  ;;  %v4096_v41 = vsel %vm2119_vm5, %v4091_v1, %v4095_v45  ;;  %v4104_v52 = vsel %vm2119_vm5, %v4099_v26, %v4103_v58  ;;  %v10052_v45 = vld [vmem:[#allocation3 + $0x5c] sm:$0xff]   ;;  %v9946_v1 = vld [vmem:[%s11830_s5 + $0x178] sm:$0xff]   ;;  %v10982_v58 = vld [vmem:[%s11830_s5 + $0x180] sm:$0xff]  }
 0x30d   : > { %9013 = vmatprep.subr.bf16.mxu0 %v9930_v35  ;;  %v4119_v46 = vrot.slane %v4117_v11, 1  ;;  %v4125_v16 = vshll.u32 %v10052_v45, 16 }
 0x30f   : > { %v4127_v24 = vrot.slane %v4125_v16, 1 }
 0x310   : > { %9014 = vmatpush3.bf16.msra.mxu0 %v9930_v35  ;;  %v4113_v35 = vshrl.u32 %v10050_v19, 16  ;;  %v4121_v19 = vshrl.u32 %v10051_v22, 16  ;;  %v4145_v22 = vshrl.u32 %v10054_v62, 16 }
 0x311   : > { %9015 = vmatprep.subr.bf16.mxu0 %v9933_v47 }
 0x312   : > { %v4115_v44 = vor.u32 %v4113_v35, %v4111_v14  ;;  %v4123_v11 = vor.u32 %v4121_v19, %v4119_v46  ;;  %v4141_v35 = vshll.u32 %v10054_v62, 16  ;;  %v4173_v62 = vshll.u32 %v10756_v53, 16 }
 0x313   : > { %8968 = vmatmul.mubr.bf16.gmra.mrb[8].mxu0 %v4096_v41  ;;  %v4133_v41 = vshll.u32 %v10053_v49, 16 }
 0x314   : > { %8971 = vmatprep.mubr.bf16.mxu0 %v4104_v52  ;;  %9016 = vmatpush3.bf16.msra.mxu0 %v9933_v47  ;;  %v4112_v47 = vsel %vm2119_vm5, %v4107_v37, %v4111_v14  ;;  %v4120_v26 = vsel %vm2119_vm5, %v4115_v44, %v4119_v46  ;;  %v4128_v37 = vsel %vm2119_vm5, %v4123_v11, %v4127_v24  ;;  %v10055_v44 = vld [vmem:[#allocation3 + $0x74] sm:$0xff]  }
 0x315   : > { %9017 = vmatprep.subr.bf16.mxu0 %v9938_v9  ;;  %v4135_v52 = vrot.slane %v4133_v41, 1  ;;  %v4149_v16 = vshll.u32 %v10055_v44, 16 }
 0x318   : > { %9018 = vmatpush3.bf16.msra.mxu0 %v9938_v9  ;;  %v4129_v9 = vshrl.u32 %v10052_v45, 16  ;;  %v4151_v45 = vrot.slane %v4149_v16, 1 }
 0x319   : > { %9019 = vmatprep.subr.bf16.mxu0 %v9941_v60 }
 0x31a   : > { %v4131_v14 = vor.u32 %v4129_v9, %v4127_v24  ;;  %v4165_v24 = vshll.u32 %v10738_v20, 16 }
 0x31b   : > { %8972 = vmatmul.mubr.bf16.gmra.mrb[12].mxu0 %v4112_v47  ;;  %v4143_v47 = vrot.slane %v4141_v35, 1 }
 0x31c   : > { %8975 = vmatprep.mubr.bf16.mxu0 %v4120_v26  ;;  %9020 = vmatpush3.bf16.msra.mxu0 %v9941_v60  ;;  %v4136_v60 = vsel %vm2119_vm5, %v4131_v14, %v4135_v52  ;;  %v4137_v26 = vshrl.u32 %v10053_v49, 16  ;;  %v4153_v14 = vshrl.u32 %v10055_v44, 16 }
 0x31d   : > { %9021 = vmatprep.subr.bf16.mxu0 %v9946_v1  ;;  %v4147_v46 = vor.u32 %v4145_v22, %v4143_v47  ;;  %v10057_v22 = vld [vmem:[#allocation3 + $0x84] sm:$0xff]  }
 0x31e   : > { %v4139_v41 = vor.u32 %v4137_v26, %v4135_v52  ;;  %v4155_v35 = vor.u32 %v4153_v14, %v4151_v45  ;;  %v4175_v26 = vrot.slane %v4173_v62, 1  ;;  %v4169_v20 = vshrl.u32 %v10057_v22, 16 }
 0x31f   : > { %v4152_v23 = vsel %vm2119_vm5, %v4147_v46, %v4151_v45  ;;  %v4189_v45 = vshll.u32 %v10787_v63, 16  ;;  %v4193_v14 = vshrl.u32 %v10787_v63, 16 }
 0x320   : > { %9022 = vmatpush3.bf16.msra.mxu0 %v9946_v1  ;;  %v10056_v1 = vld [vmem:[#allocation3 + $0x7c] sm:$0xff]   ;;  %v4144_v9 = vsel %vm2119_vm5, %v4139_v41, %v4143_v47  ;;  %v4181_v47 = vshll.u32 %v10771_v25, 16 }
 0x321   : > { %9071 = vmatprep.subr.bf16.mxu0 %v10982_v58  ;;  %v4157_v19 = vshll.u32 %v10056_v1, 16 }
 0x322   : > { %v4183_v44 = vrot.slane %v4181_v47, 1  ;;  %v4201_v47 = vshrl.u32 %v10807_v54, 16 }
 0x323   : > { %8976 = vmatmul.mubr.bf16.gmra.mrb[16].mxu0 %v4128_v37  ;;  %v4159_v11 = vrot.slane %v4157_v19, 1  ;;  %v4161_v37 = vshrl.u32 %v10056_v1, 16 }
 0x324   : > { %8979 = vmatprep.mubr.bf16.mxu0 %v4136_v60  ;;  %v4167_v60 = vrot.slane %v4165_v24, 1  ;;  %v4191_v24 = vrot.slane %v4189_v45, 1  ;;  %v4217_v45 = vshrl.u32 %v10836_v15, 16 }
 0x325   : > { %v4163_v49 = vor.u32 %v4161_v37, %v4159_v11  ;;  %v4160_v52 = vsel %vm2119_vm5, %v4155_v35, %v4159_v11  ;;  %v4185_v11 = vshrl.u32 %v10771_v25, 16  ;;  %v4209_v25 = vshrl.u32 %v10820_v32, 16 }
 0x326   : > { %v4171_v41 = vor.u32 %v4169_v20, %v4167_v60  ;;  %v4195_v35 = vor.u32 %v4193_v14, %v4191_v24  ;;  %v4221_v20 = vshll.u32 %v10850_v3, 16  ;;  %v4233_v14 = vshrl.u32 %v10863_v59, 16 }
 0x327   : > { %v4168_v16 = vsel %vm2119_vm5, %v4163_v49, %v4167_v60  ;;  %v4205_v60 = vshll.u32 %v10820_v32, 16 }
 0x328   : > { %v4176_v1 = vsel %vm2119_vm5, %v4171_v41, %v4175_v26  ;;  %v4229_v41 = vshll.u32 %v10863_v59, 16 }
 0x32b   : > { %8980 = vmatmul.mubr.bf16.gmra.mrb[20].mxu0 %v4144_v9  ;;  %v4197_v9 = vshll.u32 %v10807_v54, 16  ;;  %v4225_v54 = vshrl.u32 %v10850_v3, 16  ;;  %v9951_v3 = vld [vmem:[%s11830_s5 + $0x190] sm:$0xff]  }
 0x32c   : > { %8983 = vmatprep.mubr.bf16.mxu0 %v4152_v23  ;;  %v4177_v23 = vshrl.u32 %v10756_v53, 16  ;;  %v4187_v53 = vor.u32 %v4185_v11, %v4183_v44 }
 0x32d   : > { %v4199_v37 = vrot.slane %v4197_v9, 1 }
 0x32e   : > { %v4179_v46 = vor.u32 %v4177_v23, %v4175_v26  ;;  %v4192_v49 = vsel %vm2119_vm5, %v4187_v53, %v4191_v24  ;;  %v4237_v24 = vshll.u32 %v10865_v33, 16  ;;  %v9956_v33 = vld [vmem:[%s11830_s5 + $0x1b8] sm:$0xff]  }
 0x32f   : > { %v4200_v62 = vsel %vm2119_vm5, %v4195_v35, %v4199_v37  ;;  %v4203_v63 = vor.u32 %v4201_v47, %v4199_v37 }
 0x330   : > { %v4184_v19 = vsel %vm2119_vm5, %v4179_v46, %v4183_v44  ;;  %v4223_v46 = vrot.slane %v4221_v20, 1  ;;  %v4239_v53 = vrot.slane %v4237_v24, 1  ;;  %v9959_v24 = vld [vmem:[#allocation3 + $0x20] sm:$0xff]  }
 0x333   : > { %8984 = vmatmul.mubr.bf16.gmra.mrb[24].mxu0 %v4160_v52  ;;  %v4213_v52 = vshll.u32 %v10836_v15, 16  ;;  %v9950_v15 = vld [vmem:[%s11830_s5 + $0x188] sm:$0xff]  }
 0x334   : > { %8987 = vmatprep.mubr.bf16.mxu0 %v4168_v16  ;;  %v4207_v16 = vrot.slane %v4205_v60, 1 }
 0x335   : > { %v4215_v26 = vrot.slane %v4213_v52, 1 }
 0x336   : > { %v4211_v22 = vor.u32 %v4209_v25, %v4207_v16  ;;  %v4208_v23 = vsel %vm2119_vm5, %v4203_v63, %v4207_v16 }
 0x337   : > { %v4219_v32 = vor.u32 %v4217_v45, %v4215_v26 }
 0x338   : > { %v4216_v44 = vsel %vm2119_vm5, %v4211_v22, %v4215_v26 }
 0x339   : > { %v4224_v9 = vsel %vm2119_vm5, %v4219_v32, %v4223_v46 }
 0x33b   : > { %8988 = vmatmul.mubr.bf16.gmra.mrb[28].mxu0 %v4176_v1  ;;  %v4231_v1 = vrot.slane %v4229_v41, 1 }
 0x33c   : > { %8991 = vmatprep.mubr.bf16.mxu0 %v4184_v19  ;;  %v4227_v19 = vor.u32 %v4225_v54, %v4223_v46 }
 0x33d   : > { %v4235_v37 = vor.u32 %v4233_v14, %v4231_v1 }
 0x33e   : > { %v4232_v11 = vsel %vm2119_vm5, %v4227_v19, %v4231_v1 }
 0x33f   : > { %v4240_v35 = vsel %vm2119_vm5, %v4235_v37, %v4239_v53 }
 0x343   : > { %8992 = vmatmul.mubr.bf16.gmra.mrb[32].mxu0 %v4192_v49 }
 0x344   : > { %8995 = vmatprep.mubr.bf16.mxu0 %v4200_v62 }
 0x34b   : > { %8996 = vmatmul.mubr.bf16.gmra.mrb[36].mxu0 %v4208_v23 }
 0x34c   : > { %8999 = vmatprep.mubr.bf16.mxu0 %v4216_v44 }
 0x353   : > { %9000 = vmatmul.mubr.bf16.gmra.mrb[40].mxu0 %v4224_v9 }
 0x354   : > { %9003 = vmatprep.mubr.bf16.mxu0 %v4232_v11  ;;  %v9960_v11 = vld [vmem:[#allocation3 + $0x28] sm:$0xff]  }
 0x35b   : > { %9004 = vmatmul.mubr.bf16.gmra.mrb[44].mxu0 %v4240_v35  ;;  %v9961_v35 = vld [vmem:[#allocation3 + $0x30] sm:$0xff]  }
 0x35c   : > { %9023 = vmatprep.mubr.bf16.mxu0 %v10566_v30  ;;  %v9952_v30 = vld [vmem:[%s11830_s5 + $0x198] sm:$0xff]  }
 0x363   : > { %9024 = vmatmul.mubr.bf16.vlgmr.msra.gmra.mrb[0].mxu0 %v10577_v56  ;;  %v9953_v56 = vld [vmem:[%s11830_s5 + $0x1a0] sm:$0xff]  }
 0x364   : > { %9072 = vmatpush3.bf16.msra.mxu0 %v10982_v58  ;;  %9027 = vmatprep.mubr.bf16.mxu0 %v10592_v21  ;;  %v9954_v21 = vld [vmem:[%s11830_s5 + $0x1a8] sm:$0xff]  }
 0x365   : > { %9073 = vmatprep.subr.bf16.mxu0 %v9950_v15 }
 0x368   : > { %9074 = vmatpush3.bf16.msra.mxu0 %v9950_v15  ;;  %v9971_v15 = vld [vmem:[%s11830_s5 + $0x1d8] sm:$0xff]  }
 0x369   : > { %9075 = vmatprep.subr.bf16.mxu0 %v9951_v3 }
 0x36b   : > { %9028 = vmatmul.mubr.bf16.gmra.mrb[4].mxu0 %v10606_v42  ;;  %v9955_v42 = vld [vmem:[%s11830_s5 + $0x1b0] sm:$0xff]  }
 0x36c   : > { %9031 = vmatprep.mubr.bf16.mxu0 %v10624_v12  ;;  %9076 = vmatpush3.bf16.msra.mxu0 %v9951_v3 }
 0x36d   : > { %9077 = vmatprep.subr.bf16.mxu0 %v9952_v30 }
 0x370   : > { %9078 = vmatpush3.bf16.msra.mxu0 %v9952_v30  ;;  %v9962_v30 = vld [vmem:[#allocation3 + $0x38] sm:$0xff]  }
 0x371   : > { %9079 = vmatprep.subr.bf16.mxu0 %v9953_v56 }
 0x373   : > { %9032 = vmatmul.mubr.bf16.gmra.mrb[8].mxu0 %v10641_v40 }
 0x374   : > { %9035 = vmatprep.mubr.bf16.mxu0 %v10655_v0  ;;  %9080 = vmatpush3.bf16.msra.mxu0 %v9953_v56  ;;  %v9958_v0 = vld [vmem:[%s11830_s5 + $0x1c0] sm:$0xff]  }
 0x375   : > { %9081 = vmatprep.subr.bf16.mxu0 %v9954_v21 }
 0x378   : > { %v11044_v12 = vpop.f32.mrb[216].mxu1  ;;  %9082 = vmatpush3.bf16.msra.mxu0 %v9954_v21  ;;  %v9974_v21 = vld [vmem:[%s11830_s5 + $0x1e0] sm:$0xff]  }
 0x379   : > { %v11046_v59 = vpop.f32.mrb[217].mxu1  ;;  %9083 = vmatprep.subr.bf16.mxu0 %v9955_v42 }
 0x37a   : > { %v11051_v58 = vpop.f32.mrb[218].mxu1 }
 0x37b   : > { %v11053_v40 = vpop.f32.mrb[219].mxu1  ;;  %9036 = vmatmul.mubr.bf16.gmra.mrb[12].mxu0 %v10663_v27 }
 0x37c   : > { %9039 = vmatprep.mubr.bf16.mxu0 %v10672_v55  ;;  %9084 = vmatpush3.bf16.msra.mxu0 %v9955_v42 }
 0x37d   : > { %9085 = vmatprep.subr.bf16.mxu0 %v9956_v33 }
 0x380   : > { %v11060_v60 = vpop.f32.mrb[220].mxu1  ;;  %9086 = vmatpush3.bf16.msra.mxu0 %v9956_v33 }
 0x381   : > { %v11062_v49 = vpop.f32.mrb[221].mxu1  ;;  %9135 = vmatprep.subr.bf16.mxu0 %v9958_v0 }
 0x382   : > { %v11064_v62 = vpop.f32.mrb[222].mxu1 }
 0x383   : > { %v11066_v52 = vpop.f32.mrb[223].mxu1  ;;  %9040 = vmatmul.mubr.bf16.gmra.mrb[16].mxu0 %v10680_v17 }
 0x384   : > { %9043 = vmatprep.mubr.bf16.mxu0 %v10688_v43 }
 0x388   : > { %v11070_v27 = vpop.f32.mrb[224].mxu1 }
 0x389   : > { %v11072_v55 = vpop.f32.mrb[225].mxu1 }
 0x38a   : > { %v11074_v16 = vpop.f32.mrb[226].mxu1 }
 0x38b   : > { %v11076_v47 = vpop.f32.mrb[227].mxu1  ;;  %9044 = vmatmul.mubr.bf16.gmra.mrb[20].mxu0 %v10708_v13 }
 0x38c   : > { %9047 = vmatprep.mubr.bf16.mxu0 %v10719_v36 }
 0x390   : > { %v11080_v25 = vpop.f32.mrb[228].mxu1 }
 0x391   : > { %v11082_v26 = vpop.f32.mrb[229].mxu1 }
 0x392   : > { %v11084_v63 = vpop.f32.mrb[230].mxu1 }
 0x393   : > { %v11086_v17 = vpop.f32.mrb[231].mxu1  ;;  %9048 = vmatmul.mubr.bf16.gmra.mrb[24].mxu0 %v10732_v7 }
 0x394   : > { %9051 = vmatprep.mubr.bf16.mxu0 %v10751_v39 }
 0x398   : > { %v11090_v43 = vpop.f32.mrb[232].mxu1 }
 0x399   : > { %v11092_v22 = vpop.f32.mrb[233].mxu1 }
 0x39a   : > { %v11094_v20 = vpop.f32.mrb[234].mxu1 }
 0x39b   : > { %v11096_v13 = vpop.f32.mrb[235].mxu1  ;;  %9052 = vmatmul.mubr.bf16.gmra.mrb[28].mxu0 %v10765_v6 }
 0x39c   : > { %9055 = vmatprep.mubr.bf16.mxu0 %v10781_v51 }
 0x3a0   : > { %v11100_v36 = vpop.f32.mrb[236].mxu1 }
 0x3a1   : > { %11854 = vst [vmem:[#allocation8_spill] sm:$0xff] %v11100_v36  ;;  %v11102_v23 = vpop.f32.mrb[237].mxu1  ;;  %v10061_v36 = vld [vmem:[#allocation3 + $0xa8] sm:$0xff]  }
 0x3a2   : > { %11855 = vst [vmem:[#allocation9_spill] sm:$0xff] %v11102_v23  ;;  %v11104_v44 = vpop.f32.mrb[238].mxu1 }
 0x3a3   : > { %11856 = vst [vmem:[#allocation10_spill] sm:$0xff] %v11104_v44  ;;  %v11106_v7 = vpop.f32.mrb[239].mxu1  ;;  %9056 = vmatmul.mubr.bf16.gmra.mrb[32].mxu0 %v10800_v29 }
 0x3a4   : > { %11857 = vst [vmem:[#allocation11_spill] sm:$0xff] %v11106_v7  ;;  %9059 = vmatprep.mubr.bf16.mxu0 %v10814_v5 }
 0x3a8   : > { %v11110_v39 = vpop.f32.mrb[240].mxu1 }
 0x3a9   : > { %11858 = vst [vmem:[#allocation12_spill] sm:$0xff] %v11110_v39  ;;  %v11112_v41 = vpop.f32.mrb[241].mxu1 }
 0x3aa   : > { %11859 = vst [vmem:[#allocation13_spill] sm:$0xff] %v11112_v41  ;;  %v11114_v46 = vpop.f32.mrb[242].mxu1 }
 0x3ab   : > { %11860 = vst [vmem:[#allocation14_spill] sm:$0xff] %v11114_v46  ;;  %v11116_v6 = vpop.f32.mrb[243].mxu1  ;;  %9060 = vmatmul.mubr.bf16.gmra.mrb[36].mxu0 %v10830_v2  ;;  %v9957_v2 = vld [vmem:[#allocation3 + $0x18] sm:$0xff]  }
 0x3ac   : > { %11861 = vst [vmem:[#allocation15_spill] sm:$0xff] %v11116_v6  ;;  %9063 = vmatprep.mubr.bf16.mxu0 %v10846_v8 }
 0x3b0   : > { %v11120_v51 = vpop.f32.mrb[244].mxu1 }
 0x3b1   : > { %11862 = vst [vmem:[#allocation16_spill] sm:$0xff] %v11120_v51  ;;  %v11122_v45 = vpop.f32.mrb[245].mxu1 }
 0x3b2   : > { %11863 = vst [vmem:[#allocation17_spill] sm:$0xff] %v11122_v45  ;;  %v11124_v54 = vpop.f32.mrb[246].mxu1  ;;  %v11269_v45 = vld [vmem:[#allocation3 + $0x80] sm:$0xff]  }
 0x3b3   : > { %11864 = vst [vmem:[#allocation18_spill] sm:$0xff] %v11124_v54  ;;  %v11126_v29 = vpop.f32.mrb[247].mxu1  ;;  %9064 = vmatmul.mubr.bf16.gmra.mrb[40].mxu0 %v10857_v10  ;;  %v9963_v10 = vld [vmem:[%s11830_s5 + $0x1c8] sm:$0xff]  }
 0x3b4   : > { %11865 = vst [vmem:[#allocation19_spill] sm:$0xff] %v11126_v29  ;;  %9067 = vmatprep.mubr.bf16.mxu0 %v10876_v61 }
 0x3b8   : > { %v11130_v5 = vpop.f32.mrb[248].mxu1 }
 0x3b9   : > { %11866 = vst [vmem:[#allocation20_spill] sm:$0xff] %v11130_v5  ;;  %v11132_v1 = vpop.f32.mrb[249].mxu1 }
 0x3ba   : > { %11867 = vst [vmem:[#allocation21_spill] sm:$0xff] %v11132_v1  ;;  %v11134_v32 = vpop.f32.mrb[250].mxu1 }
 0x3bb   : > { %11868 = vst [vmem:[#allocation22_spill] sm:$0xff] %v11134_v32  ;;  %v11136_v8 = vpop.f32.mrb[251].mxu1  ;;  %9068 = vmatmul.mubr.bf16.gmra.mrb[44].mxu0 %v10879_v34  ;;  %v9966_v34 = vld [vmem:[%s11830_s5 + $0x1d0] sm:$0xff]  }
 0x3bc   : > { %11869 = vst [vmem:[#allocation23_spill] sm:$0xff] %v11136_v8  ;;  %9087 = vmatprep.mubr.bf16.mxu0 %v9957_v2  ;;  %v9979_v2 = vld [vmem:[%s11830_s5 + $0x1e8] sm:$0xff]  }
 0x3c0   : > { %v11139_v19 = vpop.f32.mrb[252].mxu1 }
 0x3c1   : > { %11870 = vst [vmem:[#allocation24_spill] sm:$0xff] %v11139_v19  ;;  %v11141_v9 = vpop.f32.mrb[253].mxu1 }
 0x3c2   : > { %11871 = vst [vmem:[#allocation25_spill] sm:$0xff] %v11141_v9  ;;  %v11146_v61 = vpop.f32.mrb[254].mxu1 }
 0x3c3   : > { %11872 = vst [vmem:[#allocation26_spill] sm:$0xff] %v11146_v61  ;;  %v11148_v14 = vpop.f32.mrb[255].mxu1  ;;  %9088 = vmatmul.mubr.bf16.vlgmr.msra.gmra.mrb[0].mxu0 %v9959_v24  ;;  %v11203_v61 = vld [vmem:[#allocation3 + $0x38] sm:$0xff]  }
 0x3c4   : > { %11873 = vst [vmem:[#allocation27_spill] sm:$0xff] %v11148_v14  ;;  %9136 = vmatpush3.bf16.msra.mxu0 %v9958_v0  ;;  %9091 = vmatprep.mubr.bf16.mxu0 %v9960_v11  ;;  %v9964_v0 = vld [vmem:[#allocation3 + $0x40] sm:$0xff]  }
 0x3c5   : > { %9137 = vmatprep.subr.bf16.mxu0 %v9963_v10 }
 0x3c8   : > { %v11153_v37 = vpop.f32.mrb[0].mxu1  ;;  %9138 = vmatpush3.bf16.msra.mxu0 %v9963_v10  ;;  %v9965_v10 = vld [vmem:[#allocation3 + $0x48] sm:$0xff]  }
 0x3c9   : > { %11874 = vst [vmem:[#allocation28_spill] sm:$0xff] %v11153_v37  ;;  %v11155_v53 = vpop.f32.mrb[1].mxu1  ;;  %9139 = vmatprep.subr.bf16.mxu0 %v9966_v34 }
 0x3ca   : > { %11875 = vst [vmem:[#allocation29_spill] sm:$0xff] %v11155_v53  ;;  %v11160_v3 = vpop.f32.mrb[2].mxu1  ;;  %v11198_v53 = vld [vmem:[#allocation3 + $0x30] sm:$0xff]  }
 0x3cb   : > { %11876 = vst [vmem:[#allocation30_spill] sm:$0xff] %v11160_v3  ;;  %v11162_v56 = vpop.f32.mrb[3].mxu1  ;;  %9092 = vmatmul.mubr.bf16.gmra.mrb[4].mxu0 %v9961_v35  ;;  %v9967_v35 = vld [vmem:[#allocation3 + $0x50] sm:$0xff]   ;;  %v5744_v14 = vshll.u32 %v11198_v53, 16 }
 0x3cc   : > { %11877 = vst [vmem:[#allocation31_spill] sm:$0xff] %v11162_v56  ;;  %9095 = vmatprep.mubr.bf16.mxu0 %v9962_v30  ;;  %9140 = vmatpush3.bf16.msra.mxu0 %v9966_v34  ;;  %v9982_v34 = vld [vmem:[%s11830_s5 + $0x1f0] sm:$0xff]   ;;  %v9968_v30 = vld [vmem:[#allocation3 + $0x58] sm:$0xff]   ;;  %v9986_v56 = vld [vmem:[#allocation3 + $0xc8] sm:$0xff]  }
 0x3cd   : > { %9141 = vmatprep.subr.bf16.mxu0 %v9971_v15 }
 0x3d0   : > { %v11167_v42 = vpop.f32.mrb[4].mxu1  ;;  %9142 = vmatpush3.bf16.msra.mxu0 %v9971_v15  ;;  %v9987_v15 = vld [vmem:[%s11830_s5 + $0x1f8] sm:$0xff]  }
 0x3d1   : > { %11878 = vst [vmem:[#allocation32_spill] sm:$0xff] %v11167_v42  ;;  %v11169_v33 = vpop.f32.mrb[5].mxu1  ;;  %9143 = vmatprep.subr.bf16.mxu0 %v9974_v21  ;;  %v9984_v42 = vld [vmem:[#allocation3 + $0xb8] sm:$0xff]  }
 0x3d2   : > { %11879 = vst [vmem:[#allocation33_spill] sm:$0xff] %v11169_v33  ;;  %v11174_v24 = vpop.f32.mrb[6].mxu1  ;;  %v9983_v33 = vld [vmem:[#allocation3 + $0xb0] sm:$0xff]  }
 0x3d3   : > { %11880 = vst [vmem:[#allocation34_spill] sm:$0xff] %v11174_v24  ;;  %v11176_v11 = vpop.f32.mrb[7].mxu1  ;;  %9096 = vmatmul.mubr.bf16.gmra.mrb[8].mxu0 %v9964_v0  ;;  %v9969_v0 = vld [vmem:[#allocation3 + $0x60] sm:$0xff]  }
 0x3d4   : > { %11881 = vst [vmem:[#allocation35_spill] sm:$0xff] %v11176_v11  ;;  %9099 = vmatprep.mubr.bf16.mxu0 %v9965_v10  ;;  %9144 = vmatpush3.bf16.msra.mxu0 %v9974_v21  ;;  %v11187_v21 = vld [vmem:[%s11830_s5 + $0x200] sm:$0xff]   ;;  %v9978_v11 = vld [vmem:[#allocation3 + $0x98] sm:$0xff]   ;;  %v9980_v24 = vld [vmem:[#allocation3 + $0xa0] sm:$0xff]  }
 0x3d5   : > { %9145 = vmatprep.subr.bf16.mxu0 %v9979_v2  ;;  %v9972_v10 = vld [vmem:[#allocation3 + $0x70] sm:$0xff]  }
 0x3d8   : > { %9146 = vmatpush3.bf16.msra.mxu0 %v9979_v2  ;;  %v9970_v2 = vld [vmem:[#allocation3 + $0x68] sm:$0xff]  }
 0x3d9   : > { %9147 = vmatprep.subr.bf16.mxu0 %v9982_v34 }
 0x3db   : > { %9100 = vmatmul.mubr.bf16.gmra.mrb[12].mxu0 %v9967_v35  ;;  %v9975_v35 = vld [vmem:[#allocation3 + $0x80] sm:$0xff]  }
 0x3dc   : > { %9103 = vmatprep.mubr.bf16.mxu0 %v9968_v30  ;;  %9148 = vmatpush3.bf16.msra.mxu0 %v9982_v34  ;;  %v9976_v30 = vld [vmem:[#allocation3 + $0x88] sm:$0xff]   ;;  %v9977_v34 = vld [vmem:[#allocation3 + $0x90] sm:$0xff]  }
 0x3dd   : > { %9149 = vmatprep.subr.bf16.mxu0 %v9987_v15 }
 0x3e0   : > { %9150 = vmatpush3.bf16.msra.mxu0 %v9987_v15  ;;  %v9981_v15 = vld [vmem:[#allocation3 + $0xa8] sm:$0xff]  }
 0x3e1   : > { %9199 = vmatprep.subr.bf16.mxu0 %v11187_v21 }
 0x3e3   : > { %9104 = vmatmul.mubr.bf16.gmra.mrb[16].mxu0 %v9969_v0  ;;  %v5531_v0 = vld [vmem:[#allocation3 + $0x18] sm:$0xf] }
 0x3e4   : > { %9107 = vmatprep.mubr.bf16.mxu0 %v9970_v2  ;;  %v11190_v2 = vld [vmem:[#allocation3 + $0x1c] sm:$0xf] }
 0x3eb   : > { %9108 = vmatmul.mubr.bf16.gmra.mrb[20].mxu0 %v9972_v10  ;;  %v11193_v10 = vld [vmem:[#allocation3 + $0x20] sm:$0xff]  }
 0x3ec   : > { %9111 = vmatprep.mubr.bf16.mxu0 %v9973_v28  ;;  %v7784_v28 = vcombine.low %v5531_v0, %v11190_v2 }
 0x3f3   : > { %9112 = vmatmul.mubr.bf16.gmra.mrb[24].mxu0 %v9975_v35  ;;  %v9985_v35 = vld [vmem:[#allocation3 + $0xc0] sm:$0xff]  }
 0x3f4   : > { %9115 = vmatprep.mubr.bf16.mxu0 %v9976_v30  ;;  %v5723_v30 = vshll.u32 %v7784_v28, 16 }
 0x3fb   : > { %9116 = vmatmul.mubr.bf16.gmra.mrb[28].mxu0 %v9977_v34  ;;  %v11196_v34 = vld [vmem:[#allocation3 + $0x28] sm:$0xff]  }
 0x3fc   : > { %9119 = vmatprep.mubr.bf16.mxu0 %v9978_v11  ;;  %v5728_v11 = vshll.u32 %v11193_v10, 16  ;;  %v5736_v0 = vshll.u32 %v11196_v34, 16 }
 0x3fe   : > { %v5730_v3 = vrot.slane %v5728_v11, 1  ;;  %v11207_v11 = vld [vmem:[#allocation3 + $0x40] sm:$0xff]  }
 0x403   : > { %9120 = vmatmul.mubr.bf16.gmra.mrb[32].mxu0 %v9980_v24  ;;  %v5725_v24 = vrot.slane %v5723_v30, 1  ;;  %v5746_v30 = vrot.slane %v5744_v14, 1 }
 0x404   : > { %9123 = vmatprep.mubr.bf16.mxu0 %v9981_v15  ;;  %v5721_v15 = vshrl.u32 %v7784_v28, 16  ;;  %v5740_v28 = vshrl.u32 %v11196_v34, 16 }
 0x40b   : > { %9124 = vmatmul.mubr.bf16.gmra.mrb[36].mxu0 %v9983_v33  ;;  %v9988_v33 = vld [vmem:[#allocation3 + $0xd0] sm:$0xff]  }
 0x40c   : > { %9127 = vmatprep.mubr.bf16.mxu0 %v9984_v42  ;;  %v5726_v42 = vor.u32 %v5725_v24, %v5721_v15  ;;  %v5752_v15 = vshll.u32 %v11203_v61, 16 }
 0x40e   : > { %v5731_v37 = vsel %vm2119_vm5, %v5726_v42, %v5730_v3  ;;  %v5754_v14 = vrot.slane %v5752_v15, 1  ;;  %v10004_v15 = vld [vmem:[%s11830_s5 + $0x218] sm:$0xff]  }
 0x413   : > { %9128 = vmatmul.mubr.bf16.gmra.mrb[40].mxu0 %v9985_v35  ;;  %v5738_v35 = vrot.slane %v5736_v0, 1  ;;  %v5760_v0 = vshll.u32 %v11207_v11, 16 }
 0x414   : > { %9131 = vmatprep.mubr.bf16.mxu0 %v9986_v56  ;;  %v5732_v56 = vshrl.u32 %v11193_v10, 16 }
 0x415   : > { %v5742_v24 = vor.u32 %v5740_v28, %v5738_v35  ;;  %v5748_v28 = vshrl.u32 %v11198_v53, 16 }
 0x416   : > { %v5734_v9 = vor.u32 %v5732_v56, %v5730_v3  ;;  %v11217_v3 = vld [vmem:[#allocation3 + $0x48] sm:$0xff]   ;;  %v9999_v56 = vld [vmem:[%s11830_s5 + $0x210] sm:$0xff]  }
 0x417   : > { %v5747_v42 = vsel %vm2119_vm5, %v5742_v24, %v5746_v30  ;;  %v5750_v24 = vor.u32 %v5748_v28, %v5746_v30  ;;  %v11233_v30 = vld [vmem:[#allocation3 + $0x58] sm:$0xff]   ;;  %v5764_v28 = vshrl.u32 %v11207_v11, 16 }
 0x41b   : > { %9132 = vmatmul.mubr.bf16.gmra.mrb[44].mxu0 %v9988_v33  ;;  %v9996_v33 = vld [vmem:[%s11830_s5 + $0x208] sm:$0xff]  }
 0x41c   : > { %9151 = vmatprep.mubr.bf16.mxu0 %v5731_v37  ;;  %v5739_v37 = vsel %vm2119_vm5, %v5734_v9, %v5738_v35  ;;  %v5756_v9 = vshrl.u32 %v11203_v61, 16  ;;  %v5762_v35 = vrot.slane %v5760_v0, 1 }
 0x41e   : > { %v5758_v19 = vor.u32 %v5756_v9, %v5754_v14  ;;  %v5772_v9 = vshrl.u32 %v11217_v3, 16 }
 0x420   : > { %v5763_v8 = vsel %vm2119_vm5, %v5758_v19, %v5762_v35  ;;  %v5766_v19 = vor.u32 %v5764_v28, %v5762_v35  ;;  %v11249_v35 = vld [vmem:[#allocation3 + $0x68] sm:$0xff]  }
 0x423   : > { %9152 = vmatmul.mubr.bf16.vlgmr.msra.gmra.mrb[0].mxu0 %v5739_v37  ;;  %v11224_v37 = vld [vmem:[#allocation3 + $0x50] sm:$0xff]  }
 0x424   : > { %9200 = vmatpush3.bf16.msra.mxu0 %v11187_v21  ;;  %9155 = vmatprep.mubr.bf16.mxu0 %v5747_v42  ;;  %v5768_v21 = vshll.u32 %v11217_v3, 16  ;;  %v5755_v42 = vsel %vm2119_vm5, %v5750_v24, %v5754_v14  ;;  %v5776_v32 = vshll.u32 %v11224_v37, 16  ;;  %v11240_v24 = vld [vmem:[#allocation3 + $0x60] sm:$0xff]   ;;  %v5780_v28 = vshrl.u32 %v11224_v37, 16 }
 0x425   : > { %9201 = vmatprep.subr.bf16.mxu0 %v9996_v33  ;;  %v5792_v5 = vshll.u32 %v11240_v24, 16 }
 0x426   : > { %v5770_v0 = vrot.slane %v5768_v21, 1  ;;  %v5778_v14 = vrot.slane %v5776_v32, 1 }
 0x428   : > { %9202 = vmatpush3.bf16.msra.mxu0 %v9996_v33  ;;  %v10007_v33 = vld [vmem:[%s11830_s5 + $0x220] sm:$0xff]   ;;  %v5771_v21 = vsel %vm2119_vm5, %v5766_v19, %v5770_v0 }
 0x429   : > { %9203 = vmatprep.subr.bf16.mxu0 %v9999_v56  ;;  %v11256_v19 = vld [vmem:[#allocation3 + $0x70] sm:$0xff]  }
 0x42a   : > { %v5808_v54 = vshll.u32 %v11256_v19, 16 }
 0x42b   : > { %9156 = vmatmul.mubr.bf16.gmra.mrb[4].mxu0 %v5755_v42  ;;  %v5774_v42 = vor.u32 %v5772_v9, %v5770_v0  ;;  %v5788_v9 = vshrl.u32 %v11233_v30, 16  ;;  %v5794_v0 = vrot.slane %v5792_v5, 1 }
 0x42c   : > { %9159 = vmatprep.mubr.bf16.mxu0 %v5763_v8  ;;  %9204 = vmatpush3.bf16.msra.mxu0 %v9999_v56  ;;  %v5784_v8 = vshll.u32 %v11233_v30, 16  ;;  %v10012_v56 = vld [vmem:[%s11830_s5 + $0x228] sm:$0xff]  }
 0x42d   : > { %9205 = vmatprep.subr.bf16.mxu0 %v10004_v15  ;;  %v5779_v1 = vsel %vm2119_vm5, %v5774_v42, %v5778_v14  ;;  %v5782_v42 = vor.u32 %v5780_v28, %v5778_v14  ;;  %v11265_v14 = vld [vmem:[#allocation3 + $0x78] sm:$0xff]   ;;  %v5804_v28 = vshrl.u32 %v11249_v35, 16 }
 0x42e   : > { %v5786_v32 = vrot.slane %v5784_v8, 1  ;;  %v5820_v6 = vshrl.u32 %v11265_v14, 16 }
 0x430   : > { %9206 = vmatpush3.bf16.msra.mxu0 %v10004_v15  ;;  %v10015_v15 = vld [vmem:[%s11830_s5 + $0x230] sm:$0xff]   ;;  %v5787_v8 = vsel %vm2119_vm5, %v5782_v42, %v5786_v32  ;;  %v5816_v42 = vshll.u32 %v11265_v14, 16 }
 0x431   : > { %9207 = vmatprep.subr.bf16.mxu0 %v10007_v33 }
 0x433   : > { %9160 = vmatmul.mubr.bf16.gmra.mrb[8].mxu0 %v5771_v21  ;;  %v5790_v21 = vor.u32 %v5788_v9, %v5786_v32  ;;  %v5810_v9 = vrot.slane %v5808_v54, 1  ;;  %v5812_v54 = vshrl.u32 %v11256_v19, 16 }
 0x434   : > { %9163 = vmatprep.mubr.bf16.mxu0 %v5779_v1  ;;  %9208 = vmatpush3.bf16.msra.mxu0 %v10007_v33  ;;  %v5800_v1 = vshll.u32 %v11249_v35, 16  ;;  %v10020_v33 = vld [vmem:[%s11830_s5 + $0x238] sm:$0xff]  }
 0x435   : > { %9209 = vmatprep.subr.bf16.mxu0 %v10012_v56  ;;  %v5795_v29 = vsel %vm2119_vm5, %v5790_v21, %v5794_v0 }
 0x436   : > { %v5802_v5 = vrot.slane %v5800_v1, 1  ;;  %v5818_v1 = vrot.slane %v5816_v42, 1 }
 0x438   : > { %9210 = vmatpush3.bf16.msra.mxu0 %v10012_v56  ;;  %v5796_v56 = vshrl.u32 %v11240_v24, 16  ;;  %v5806_v32 = vor.u32 %v5804_v28, %v5802_v5 }
 0x439   : > { %9211 = vmatprep.subr.bf16.mxu0 %v10015_v15 }
 0x43a   : > { %v5798_v51 = vor.u32 %v5796_v56, %v5794_v0  ;;  %v5822_v56 = vor.u32 %v5820_v6, %v5818_v1 }
 0x43b   : > { %9164 = vmatmul.mubr.bf16.gmra.mrb[12].mxu0 %v5787_v8  ;;  %v11275_v8 = vld [vmem:[#allocation3 + $0x88] sm:$0xff]  }
 0x43c   : > { %9167 = vmatprep.mubr.bf16.mxu0 %v5795_v29  ;;  %9212 = vmatpush3.bf16.msra.mxu0 %v10015_v15  ;;  %v5803_v21 = vsel %vm2119_vm5, %v5798_v51, %v5802_v5  ;;  %v5811_v29 = vsel %vm2119_vm5, %v5806_v32, %v5810_v9  ;;  %v5824_v15 = vshll.u32 %v11269_v45, 16  ;;  %v5832_v28 = vshll.u32 %v11275_v8, 16  ;;  %v10058_v32 = vld [vmem:[#allocation3 + $0x90] sm:$0xff]  }
 0x43d   : > { %9213 = vmatprep.subr.bf16.mxu0 %v10020_v33  ;;  %v5836_v46 = vshrl.u32 %v11275_v8, 16 }
 0x43e   : > { %v5826_v0 = vrot.slane %v5824_v15, 1  ;;  %v5834_v42 = vrot.slane %v5832_v28, 1 }
 0x440   : > { %9214 = vmatpush3.bf16.msra.mxu0 %v10020_v33  ;;  %v5814_v33 = vor.u32 %v5812_v54, %v5810_v9  ;;  %v5827_v5 = vsel %vm2119_vm5, %v5822_v56, %v5826_v0  ;;  %v5838_v15 = vor.u32 %v5836_v46, %v5834_v42  ;;  %v10059_v9 = vld [vmem:[#allocation3 + $0x98] sm:$0xff]  }
 0x441   : > { %v5848_v6 = vshll.u32 %v10059_v9, 16  ;;  %v5852_v28 = vshrl.u32 %v10059_v9, 16  ;;  %v10063_v9 = vld [vmem:[#allocation3 + $0xb8] sm:$0xff]  }
 0x442   : > { %v5819_v51 = vsel %vm2119_vm5, %v5814_v33, %v5818_v1  ;;  %v10060_v33 = vld [vmem:[#allocation3 + $0xa0] sm:$0xff]  }
 0x443   : > { %9168 = vmatmul.mubr.bf16.gmra.mrb[16].mxu0 %v5803_v21  ;;  %v5840_v21 = vshll.u32 %v10058_v32, 16  ;;  %v5856_v56 = vshll.u32 %v10060_v33, 16 }
 0x444   : > { %9171 = vmatprep.mubr.bf16.mxu0 %v5811_v29  ;;  %v5828_v29 = vshrl.u32 %v11269_v45, 16 }
 0x445   : > { %v5842_v41 = vrot.slane %v5840_v21, 1  ;;  %v5858_v7 = vrot.slane %v5856_v56, 1  ;;  %v5864_v21 = vshll.u32 %v10061_v36, 16  ;;  %v5880_v56 = vshll.u32 %v10063_v9, 16 }
 0x446   : > { %v5830_v39 = vor.u32 %v5828_v29, %v5826_v0 }
 0x447   : > { %v5843_v1 = vsel %vm2119_vm5, %v5838_v15, %v5842_v41  ;;  %v5866_v29 = vrot.slane %v5864_v21, 1  ;;  %v5860_v15 = vshrl.u32 %v10060_v33, 16 }
 0x448   : > { %v5835_v54 = vsel %vm2119_vm5, %v5830_v39, %v5834_v42  ;;  %v10062_v39 = vld [vmem:[#allocation3 + $0xb0] sm:$0xff]  }
 0x449   : > { %v5872_v42 = vshll.u32 %v10062_v39, 16 }
 0x44b   : > { %9172 = vmatmul.mubr.bf16.gmra.mrb[20].mxu0 %v5819_v51  ;;  %v5850_v51 = vrot.slane %v5848_v6, 1  ;;  %v5862_v6 = vor.u32 %v5860_v15, %v5858_v7 }
 0x44c   : > { %9175 = vmatprep.mubr.bf16.mxu0 %v5827_v5  ;;  %v5844_v5 = vshrl.u32 %v10058_v32, 16 }
 0x44d   : > { %v5854_v23 = vor.u32 %v5852_v28, %v5850_v51  ;;  %v5876_v28 = vshrl.u32 %v10062_v39, 16 }
 0x44e   : > { %v5846_v44 = vor.u32 %v5844_v5, %v5842_v41  ;;  %v5867_v41 = vsel %vm2119_vm5, %v5862_v6, %v5866_v29 }
 0x44f   : > { %v5859_v0 = vsel %vm2119_vm5, %v5854_v23, %v5858_v7  ;;  %v5882_v23 = vrot.slane %v5880_v56, 1 }
 0x450   : > { %v5851_v46 = vsel %vm2119_vm5, %v5846_v44, %v5850_v51  ;;  %v10064_v44 = vld [vmem:[#allocation3 + $0xc0] sm:$0xff]  }
 0x451   : > { %v5888_v51 = vshll.u32 %v10064_v44, 16 }
 0x453   : > { %9176 = vmatmul.mubr.bf16.gmra.mrb[24].mxu0 %v5835_v54  ;;  %v5868_v54 = vshrl.u32 %v10061_v36, 16  ;;  %v10065_v36 = vld [vmem:[#allocation3 + $0xc8] sm:$0xff]  }
 0x454   : > { %9179 = vmatprep.mubr.bf16.mxu0 %v5843_v1  ;;  %v5874_v1 = vrot.slane %v5872_v42, 1  ;;  %v5896_v42 = vshll.u32 %v10065_v36, 16 }
 0x455   : > { %v5870_v32 = vor.u32 %v5868_v54, %v5866_v29  ;;  %v10066_v29 = vld [vmem:[#allocation3 + $0xd0] sm:$0xff]  }
 0x456   : > { %v5878_v21 = vor.u32 %v5876_v28, %v5874_v1  ;;  %v5904_v54 = vshll.u32 %v10066_v29, 16  ;;  %v5898_v6 = vrot.slane %v5896_v42, 1 }
 0x457   : > { %v5875_v5 = vsel %vm2119_vm5, %v5870_v32, %v5874_v1  ;;  %v5900_v32 = vshrl.u32 %v10065_v36, 16 }
 0x458   : > { %v5883_v7 = vsel %vm2119_vm5, %v5878_v21, %v5882_v23  ;;  %v5906_v39 = vrot.slane %v5904_v54, 1 }
 0x459   : > { %v5902_v56 = vor.u32 %v5900_v32, %v5898_v6 }
 0x45b   : > { %9180 = vmatmul.mubr.bf16.gmra.mrb[28].mxu0 %v5851_v46  ;;  %v5884_v46 = vshrl.u32 %v10063_v9, 16 }
 0x45c   : > { %9183 = vmatprep.mubr.bf16.mxu0 %v5859_v0  ;;  %v5890_v0 = vrot.slane %v5888_v51, 1  ;;  %v5908_v51 = vshrl.u32 %v10066_v29, 16  ;;  %v6287_v29 = vrot.slane %v11198_v53, 1  ;;  %v6295_v53 = vrot.slane %v11224_v37, 1 }
 0x45d   : > { %v5886_v33 = vor.u32 %v5884_v46, %v5882_v23  ;;  %v6261_v23 = vld [vmem:[#allocation3 + $0x18] sm:$0xe]  ;;  %v5907_v46 = vsel %vm2119_vm5, %v5902_v56, %v5906_v39  ;;  %v6303_v37 = vrot.slane %v11256_v19, 1 }
 0x45e   : > { %v7833_v21 = vcombine.low %v6261_v23, %v11190_v2 }
 0x45f   : > { %v5891_v15 = vsel %vm2119_vm5, %v5886_v33, %v5890_v0  ;;  %v5910_v33 = vor.u32 %v5908_v51, %v5906_v39 }
 0x460   : > { %v6282_v42 = vrot.slane %v7833_v21, 1  ;;  %v11882_v21 = vrot.slane %v10884_v50, 1 }
 0x463   : > { %9184 = vmatmul.mubr.bf16.gmra.mrb[32].mxu0 %v5867_v41  ;;  %v5892_v41 = vshrl.u32 %v10064_v44, 16  ;;  %v6283_v44 = vrot.slane %v11193_v10, 1  ;;  %v6291_v10 = vrot.slane %v11207_v11, 1  ;;  %v6299_v11 = vrot.slane %v11240_v24, 1 }
 0x464   : > { %9187 = vmatprep.mubr.bf16.mxu0 %v5875_v5  ;;  %v11292_v5 = vld [vmem:[#allocation3 + $0xd8] ss:$0 sps:$4 sm:$0x11]   ;;  %v6307_v24 = vrot.slane %v11269_v45, 1  ;;  %v11883_v45 = vld [vmem:[#allocation5_spill] sm:$0xff] }
 0x465   : > { %v5894_v9 = vor.u32 %v5892_v41, %v5890_v0  ;;  %v5912_v28 = vshll.u32 %v11292_v5, 16  ;;  %v6329_v50 = vrot.slane %v11292_v5, 1 }
 0x467   : > { %v5899_v1 = vsel %vm2119_vm5, %v5894_v9, %v5898_v6  ;;  %v5914_v36 = vrot.slane %v5912_v28, 1  ;;  %v6289_v6 = vrot.slane %v11203_v61, 1  ;;  %v6297_v61 = vrot.slane %v11233_v30, 1 }
 0x468   : > { %v6305_v30 = vrot.slane %v11265_v14, 1  ;;  %v11884_v14 = vld [vmem:[#allocation6_spill] sm:$0xff] }
 0x469   : > { %v5915_v0 = vsel %vm2119_vm5, %v5910_v33, %v5914_v36  ;;  %v6290_v32 = vsel %vm2931_vm4, %v6287_v29, %v6289_v6  ;;  %v6292_v41 = vsel %vm2931_vm4, %v6289_v6, %v6291_v10  ;;  %v6298_v56 = vsel %vm2931_vm4, %v6295_v53, %v6297_v61  ;;  %v6842_v6 = vld [vmem:[%s11832_s7 + $0x48] sm:$0xff] }
 0x46a   : > { %v6306_v23 = vsel %vm2931_vm4, %v6303_v37, %v6305_v30  ;;  %v11886_v36 = vrot.slane %v10922_v57, 1  ;;  %v6835_v57 = vld [vmem:[%s11832_s7 + $0x10] sm:$0xff] }
 0x46b   : > { %9188 = vmatmul.mubr.bf16.gmra.mrb[36].mxu0 %v5883_v7  ;;  %v6284_v7 = vsel %vm2931_vm4, %v6282_v42, %v6283_v44  ;;  %v6837_v42 = vld [vmem:[%s11832_s7 + $0x20] sm:$0xff] }
 0x46c   : > { %9191 = vmatprep.mubr.bf16.mxu0 %v5891_v15  ;;  %v6285_v15 = vrot.slane %v11196_v34, 1  ;;  %v6293_v34 = vrot.slane %v11217_v3, 1  ;;  %v6301_v3 = vrot.slane %v11249_v35, 1  ;;  %v6309_v35 = vrot.slane %v11275_v8, 1  ;;  %v11885_v8 = vld [vmem:[#allocation7_spill] sm:$0xff] }
 0x46e   : > { %v6286_v54 = vsel %vm2931_vm4, %v6283_v44, %v6285_v15  ;;  %v6288_v2 = vsel %vm2931_vm4, %v6285_v15, %v6287_v29  ;;  %v6294_v39 = vsel %vm2931_vm4, %v6291_v10, %v6293_v34  ;;  %v6296_v9 = vsel %vm2931_vm4, %v6293_v34, %v6295_v53  ;;  %v6839_v15 = vld [vmem:[%s11832_s7 + $0x30] sm:$0xff]  ;;  %v6840_v29 = vld [vmem:[%s11832_s7 + $0x38] sm:$0xff]  ;;  %v6845_v53 = vld [vmem:[%s11832_s7 + $0x60] sm:$0xff] }
 0x46f   : > { %v6302_v51 = vsel %vm2931_vm4, %v6299_v11, %v6301_v3  ;;  %v6304_v28 = vsel %vm2931_vm4, %v6301_v3, %v6303_v37  ;;  %v6310_v19 = vsel %vm2931_vm4, %v6307_v24, %v6309_v35  ;;  %v6312_v33 = vsel %vm2931_vm4, %v6309_v35, %v11882_v21  ;;  %v11403_v37 = vld [vmem:[%s11831_s6] ss:$0 sm:$0xff] }
 0x473   : > { %9192 = vmatmul.mubr.bf16.gmra.mrb[40].mxu0 %v5899_v1  ;;  %v6300_v1 = vsel %vm2931_vm4, %v6297_v61, %v6299_v11  ;;  %v6848_v11 = vld [vmem:[%s11832_s7 + $0x78] sm:$0xff] }
 0x474   : > { %9195 = vmatprep.mubr.bf16.mxu0 %v5907_v46  ;;  %v6308_v46 = vsel %vm2931_vm4, %v6305_v30, %v6307_v24 }
 0x47b   : > { %9196 = vmatmul.mubr.bf16.gmra.mrb[44].mxu0 %v5915_v0  ;;  %v6838_v0 = vld [vmem:[%s11832_s7 + $0x28] sm:$0xff] }
 0x47c   : > { %9215 = vmatprep.mubr.bf16.mxu0 %v6284_v7  ;;  %v9347_v7 = vpack.c.bf16 %v6838_v0, %v6837_v42 }
 0x483   : > { %9216 = vmatmul.mubr.bf16.vlgmr.msra.gmra.mrb[0].mxu0 %v6286_v54  ;;  %v9350_v54 = vpack.c.bf16 %v6840_v29, %v6839_v15 }
 0x484   : > { %9219 = vmatprep.mubr.bf16.mxu0 %v6288_v2  ;;  %v6841_v2 = vld [vmem:[%s11832_s7 + $0x40] sm:$0xff] }
 0x485   : > { %v9353_v10 = vpack.c.bf16 %v6842_v6, %v6841_v2 }
 0x48b   : > { %9220 = vmatmul.mubr.bf16.gmra.mrb[4].mxu0 %v6290_v32  ;;  %v6843_v32 = vld [vmem:[%s11832_s7 + $0x50] sm:$0xff] }
 0x48c   : > { %9223 = vmatprep.mubr.bf16.mxu0 %v6292_v41  ;;  %v6844_v41 = vld [vmem:[%s11832_s7 + $0x58] sm:$0xff] }
 0x48d   : > { %v9356_v34 = vpack.c.bf16 %v6844_v41, %v6843_v32 }
 0x493   : > { %9224 = vmatmul.mubr.bf16.gmra.mrb[8].mxu0 %v6294_v39  ;;  %v6846_v39 = vld [vmem:[%s11832_s7 + $0x68] sm:$0xff] }
 0x494   : > { %9227 = vmatprep.mubr.bf16.mxu0 %v6296_v9  ;;  %v6847_v9 = vld [vmem:[%s11832_s7 + $0x70] sm:$0xff]  ;;  %v9359_v61 = vpack.c.bf16 %v6846_v39, %v6845_v53 }
 0x49b   : > { %9228 = vmatmul.mubr.bf16.gmra.mrb[12].mxu0 %v6298_v56  ;;  %v9362_v56 = vpack.c.bf16 %v6848_v11, %v6847_v9 }
 0x49c   : > { %9231 = vmatprep.mubr.bf16.mxu0 %v6300_v1 }
 0x4a3   : > { %9232 = vmatmul.mubr.bf16.gmra.mrb[16].mxu0 %v6302_v51 }
 0x4a4   : > { %9235 = vmatprep.mubr.bf16.mxu0 %v6304_v28 }
 0x4ab   : > { %9236 = vmatmul.mubr.bf16.gmra.mrb[20].mxu0 %v6306_v23 }
 0x4ac   : > { %9239 = vmatprep.mubr.bf16.mxu0 %v6308_v46 }
 0x4b3   : > { %9240 = vmatmul.mubr.bf16.gmra.mrb[24].mxu0 %v6310_v19 }
 0x4b4   : > { %9243 = vmatprep.mubr.bf16.mxu0 %v6312_v33 }
 0x4bb   : > { %9244 = vmatmul.mubr.bf16.gmra.mrb[28].mxu0 %v10893_v38  ;;  %v6330_v38 = vsel %vm2931_vm4, %v11886_v36, %v6329_v50 }
 0x4bc   : > { %9247 = vmatprep.mubr.bf16.mxu0 %v10899_v48  ;;  %v6833_v48 = vld [vmem:[%s11832_s7] sm:$0xff] }
 0x4c3   : > { %9248 = vmatmul.mubr.bf16.gmra.mrb[32].mxu0 %v10902_v31  ;;  %v6834_v31 = vld [vmem:[%s11832_s7 + $0x8] sm:$0xff] }
 0x4c4   : > { %9251 = vmatprep.mubr.bf16.mxu0 %v10905_v4  ;;  %v11844_v4 = vmov 0.0|0.0   ;;  %v9341_v44 = vpack.c.bf16 %v6834_v31, %v6833_v48 }
 0x4c5   : > { %9340 = vmatprep.subr.bf16.mxu1 %v11844_v4 }
 0x4c6   : > { %9342 = vmatpush3.bf16.msra.mxu1 %v9341_v44 }
 0x4c7   : > { %9343 = vmatprep.subr.bf16.mxu1 %v11844_v4 }
 0x4cb   : > { %9252 = vmatmul.mubr.bf16.gmra.mrb[36].mxu0 %v11883_v45 }
 0x4cc   : > { %9255 = vmatprep.mubr.bf16.mxu0 %v11884_v14 }
 0x4d3   : > { %9256 = vmatmul.mubr.bf16.gmra.mrb[40].mxu0 %v11885_v8 }
 0x4d4   : > { %9259 = vmatprep.mubr.bf16.mxu0 %v10934_v18  ;;  %v6836_v18 = vld [vmem:[%s11832_s7 + $0x18] sm:$0xff] }
 0x4d5   : > { %v9344_v5 = vpack.c.bf16 %v6836_v18, %v6835_v57 }
 0x4d7   : > { %9345 = vmatpush3.bf16.msra.mxu1 %v9344_v5 }
 0x4d8   : > { %9346 = vmatprep.subr.bf16.mxu1 %v11844_v4 }
 0x4db   : > { %9260 = vmatmul.mubr.bf16.gmra.mrb[44].mxu0 %v6330_v38  ;;  %9348 = vmatpush3.bf16.msra.mxu1 %v9347_v7 }
 0x4dc   : > { %9349 = vmatprep.subr.bf16.mxu1 %v11844_v4 }
 0x4df   : > { %9351 = vmatpush3.bf16.msra.mxu1 %v9350_v54 }
 0x4e0   : > { %9352 = vmatprep.subr.bf16.mxu1 %v11844_v4 }
 0x4e3   : > { %9354 = vmatpush3.bf16.msra.mxu1 %v9353_v10 }
 0x4e4   : > { %9355 = vmatprep.subr.bf16.mxu1 %v11844_v4 }
 0x4e7   : > { %9357 = vmatpush3.bf16.msra.mxu1 %v9356_v34 }
 0x4e8   : > { %9358 = vmatprep.subr.bf16.mxu1 %v11844_v4 }
 0x4eb   : > { %9360 = vmatpush3.bf16.msra.mxu1 %v9359_v61 }
 0x4ec   : > { %9361 = vmatprep.subr.bf16.mxu1 %v11844_v4 }
 0x4ef   : > { %9363 = vmatpush3.bf16.msra.mxu1 %v9362_v56 }
 0x4f0   : > { %9364 = vmatprep.subr.bf16.mxu1 %v11844_v4 }
 0x556   : > { %v9217_v1 = vpop.f32.mrb[0].mxu0 }
 0x557   : > { %v9391_v3 = vadd.f32 %v9217_v1, %v11044_v12  ;;  %v6437_v51 = vpop.f32.mrb[1].mxu0 }
 0x558   : > { %v9392_v28 = vadd.f32 %v6437_v51, %v11046_v59  ;;  %v9218_v30 = vpop.f32.mrb[2].mxu0 }
 0x559   : > { %v9393_v24 = vadd.f32 %v9218_v30, %v11051_v58  ;;  %v6440_v23 = vpop.f32.mrb[3].mxu0  ;;  %v6685_v46 = vadd.f32 %v9391_v3, %v11403_v37 }
 0x55a   : > { %v9394_v35 = vadd.f32 %v6440_v23, %v11053_v40  ;;  %v11410_v19 = vadd.f32 %v9392_v28, %v11403_v37 }
 0x55b   : > { %v11415_v21 = vmul.f32 0.0, %v6685_v46  ;;  %v11421_v14 = vadd.f32 %v9393_v24, %v11403_v37 }
 0x55c   : > { %v11413_v12 = vadd.f32 %v9394_v35, %v11403_v37 }
 0x55e   : > { %v6779_v33 = vadd.f32 %v11413_v12, %v11410_v19  ;;  %v9221_v59 = vpop.f32.mrb[4].mxu0 }
 0x55f   : > { %v9395_v45 = vadd.f32 %v9221_v59, %v11060_v60  ;;  %v6453_v58 = vpop.f32.mrb[5].mxu0 }
 0x560   : > { %v6780_v40 = vadd.f32 %v6779_v33, %v11415_v21  ;;  %v9396_v8 = vadd.f32 %v6453_v58, %v11062_v49  ;;  %v9222_v50 = vpop.f32.mrb[6].mxu0 }
 0x561   : > { %v9397_v36 = vadd.f32 %v9222_v50, %v11064_v62  ;;  %v6456_v38 = vpop.f32.mrb[7].mxu0  ;;  %v11437_v62 = vadd.f32 %v9395_v45, %v11403_v37 }
 0x562   : > { %v11427_v48 = vadd.f32 %v9396_v8, %v11403_v37  ;;  %v6781_v31 = vadd.f32 %v6780_v40, %v11421_v14  ;;  %v9398_v44 = vadd.f32 %v6456_v38, %v11066_v52 }
 0x563   : > { %v11443_v54 = vadd.f32 %v9397_v36, %v11403_v37 }
 0x564   : > { %v6688_v60 = vadd.f32 %v9398_v44, %v11403_v37  ;;  %v6782_v57 = vadd.f32 %v6781_v31, %v11427_v48 }
 0x566   : > { %v11433_v18 = vmul.f32 0.0, %v6688_v60  ;;  %v9225_v5 = vpop.f32.mrb[8].mxu0  ;;  %v11887_v60 = vld [vmem:[#allocation8_spill] sm:$0xff] }
 0x567   : > { %v9399_v49 = vadd.f32 %v9225_v5, %v11070_v27  ;;  %v6469_v42 = vpop.f32.mrb[9].mxu0 }
 0x568   : > { %v6783_v0 = vadd.f32 %v6782_v57, %v11433_v18  ;;  %v9400_v7 = vadd.f32 %v6469_v42, %v11072_v55  ;;  %v9226_v15 = vpop.f32.mrb[10].mxu0  ;;  %v11888_v42 = vld [vmem:[#allocation9_spill] sm:$0xff] }
 0x569   : > { %v9401_v52 = vadd.f32 %v9226_v15, %v11074_v16  ;;  %v6472_v29 = vpop.f32.mrb[11].mxu0  ;;  %v11458_v9 = vadd.f32 %v9399_v49, %v11403_v37  ;;  %v11889_v15 = vld [vmem:[#allocation10_spill] sm:$0xff] }
 0x56a   : > { %v6784_v2 = vadd.f32 %v6783_v0, %v11437_v62  ;;  %v6691_v6 = vadd.f32 %v9400_v7, %v11403_v37  ;;  %v9402_v27 = vadd.f32 %v6472_v29, %v11076_v47 }
 0x56b   : > { %v6694_v55 = vadd.f32 %v9401_v52, %v11403_v37 }
 0x56c   : > { %v11448_v10 = vmul.f32 0.0, %v6691_v6  ;;  %v6785_v32 = vadd.f32 %v6784_v2, %v11443_v54  ;;  %v11454_v16 = vadd.f32 %v9402_v27, %v11403_v37 }
 0x56d   : > { %v11463_v3 = vmul.f32 0.0, %v6694_v55 }
 0x56e   : > { %v6786_v41 = vadd.f32 %v6785_v32, %v11448_v10  ;;  %v9229_v34 = vpop.f32.mrb[12].mxu0  ;;  %v11890_v32 = vld [vmem:[#allocation11_spill] sm:$0xff] }
 0x56f   : > { %v9403_v53 = vadd.f32 %v9229_v34, %v11080_v25  ;;  %v6485_v39 = vpop.f32.mrb[13].mxu0 }
 0x570   : > { %v6787_v47 = vadd.f32 %v6786_v41, %v11454_v16  ;;  %v9404_v61 = vadd.f32 %v6485_v39, %v11082_v26  ;;  %v9230_v11 = vpop.f32.mrb[14].mxu0 }
 0x571   : > { %v9405_v56 = vadd.f32 %v9230_v11, %v11084_v63  ;;  %v6488_v1 = vpop.f32.mrb[15].mxu0  ;;  %v6697_v25 = vadd.f32 %v9403_v53, %v11403_v37  ;;  %v11891_v11 = vld [vmem:[#allocation12_spill] sm:$0xff] }
 0x572   : > { %v6788_v51 = vadd.f32 %v6787_v47, %v11458_v9  ;;  %v9406_v28 = vadd.f32 %v6488_v1, %v11086_v17  ;;  %v11469_v30 = vadd.f32 %v9404_v61, %v11403_v37 }
 0x573   : > { %v11477_v33 = vmul.f32 0.0, %v6697_v25  ;;  %v11483_v8 = vadd.f32 %v9405_v56, %v11403_v37  ;;  %v11892_v25 = vld [vmem:[#allocation13_spill] sm:$0xff] }
 0x574   : > { %v6789_v24 = vadd.f32 %v6788_v51, %v11463_v3  ;;  %v11474_v26 = vadd.f32 %v9406_v28, %v11403_v37 }
 0x576   : > { %v6790_v23 = vadd.f32 %v6789_v24, %v11469_v30  ;;  %v9233_v63 = vpop.f32.mrb[16].mxu0 }
 0x577   : > { %v9407_v46 = vadd.f32 %v9233_v63, %v11090_v43  ;;  %v6501_v35 = vpop.f32.mrb[17].mxu0  ;;  %v11893_v63 = vld [vmem:[#allocation14_spill] sm:$0xff] }
 0x578   : > { %v6791_v17 = vadd.f32 %v6790_v23, %v11474_v26  ;;  %v9408_v59 = vadd.f32 %v6501_v35, %v11092_v22  ;;  %v9234_v45 = vpop.f32.mrb[18].mxu0 }
 0x579   : > { %v9409_v58 = vadd.f32 %v9234_v45, %v11094_v20  ;;  %v6504_v40 = vpop.f32.mrb[19].mxu0  ;;  %v11497_v49 = vadd.f32 %v9407_v46, %v11403_v37  ;;  %v11894_v45 = vld [vmem:[#allocation15_spill] sm:$0xff] }
 0x57a   : > { %v6792_v50 = vadd.f32 %v6791_v17, %v11477_v33  ;;  %v9410_v36 = vadd.f32 %v6504_v40, %v11096_v13  ;;  %v11488_v43 = vadd.f32 %v9408_v59, %v11403_v37 }
 0x57b   : > { %v11503_v2 = vadd.f32 %v9409_v58, %v11403_v37 }
 0x57c   : > { %v6793_v38 = vadd.f32 %v6792_v50, %v11483_v8  ;;  %v6700_v31 = vadd.f32 %v9410_v36, %v11403_v37 }
 0x57e   : > { %v6794_v22 = vadd.f32 %v6793_v38, %v11488_v43  ;;  %v11493_v44 = vmul.f32 0.0, %v6700_v31  ;;  %v9237_v20 = vpop.f32.mrb[20].mxu0 }
 0x57f   : > { %v9411_v57 = vadd.f32 %v9237_v20, %v11887_v60  ;;  %v6517_v5 = vpop.f32.mrb[21].mxu0  ;;  %v11895_v20 = vld [vmem:[#allocation16_spill] sm:$0xff] }
 0x580   : > { %v6795_v13 = vadd.f32 %v6794_v22, %v11493_v44  ;;  %v9412_v0 = vadd.f32 %v6517_v5, %v11888_v42  ;;  %v9238_v7 = vpop.f32.mrb[22].mxu0  ;;  %v11896_v42 = vld [vmem:[#allocation17_spill] sm:$0xff] }
 0x581   : > { %v9413_v52 = vadd.f32 %v9238_v7, %v11889_v15  ;;  %v6520_v29 = vpop.f32.mrb[23].mxu0  ;;  %v11518_v51 = vadd.f32 %v9411_v57, %v11403_v37  ;;  %v11897_v15 = vld [vmem:[#allocation18_spill] sm:$0xff] }
 0x582   : > { %v6796_v6 = vadd.f32 %v6795_v13, %v11497_v49  ;;  %v6703_v27 = vadd.f32 %v9412_v0, %v11403_v37  ;;  %v9414_v41 = vadd.f32 %v6520_v29, %v11890_v32  ;;  %v11898_v32 = vld [vmem:[#allocation19_spill] sm:$0xff] }
 0x583   : > { %v6706_v39 = vadd.f32 %v9413_v52, %v11403_v37 }
 0x584   : > { %v11508_v55 = vmul.f32 0.0, %v6703_v27  ;;  %v6797_v34 = vadd.f32 %v6796_v6, %v11503_v2  ;;  %v11514_v47 = vadd.f32 %v9414_v41, %v11403_v37 }
 0x585   : > { %v11523_v17 = vmul.f32 0.0, %v6706_v39 }
 0x586   : > { %v6798_v53 = vadd.f32 %v6797_v34, %v11508_v55  ;;  %v9241_v61 = vpop.f32.mrb[24].mxu0 }
 0x587   : > { %v9415_v56 = vadd.f32 %v9241_v61, %v11891_v11  ;;  %v6533_v1 = vpop.f32.mrb[25].mxu0 }
 0x588   : > { %v6799_v28 = vadd.f32 %v6798_v53, %v11514_v47  ;;  %v9416_v24 = vadd.f32 %v6533_v1, %v11892_v25  ;;  %v9242_v23 = vpop.f32.mrb[26].mxu0  ;;  %v11899_v1 = vld [vmem:[#allocation20_spill] sm:$0xff] }
 0x589   : > { %v9417_v46 = vadd.f32 %v9242_v23, %v11893_v63  ;;  %v6536_v35 = vpop.f32.mrb[27].mxu0  ;;  %v6709_v40 = vadd.f32 %v9415_v56, %v11403_v37  ;;  %v11900_v63 = vld [vmem:[#allocation21_spill] sm:$0xff] }
 0x58a   : > { %v6800_v59 = vadd.f32 %v6799_v28, %v11518_v51  ;;  %v9418_v58 = vadd.f32 %v6536_v35, %v11894_v45  ;;  %v11529_v50 = vadd.f32 %v9416_v24, %v11403_v37 }
 0x58b   : > { %v11537_v5 = vmul.f32 0.0, %v6709_v40  ;;  %v11543_v6 = vadd.f32 %v9417_v46, %v11403_v37 }
 0x58c   : > { %v6801_v36 = vadd.f32 %v6800_v59, %v11523_v17  ;;  %v11534_v31 = vadd.f32 %v9418_v58, %v11403_v37  ;;  %v11901_v59 = vld [vmem:[#allocation22_spill] sm:$0xff] }
 0x58e   : > { %v6802_v38 = vadd.f32 %v6801_v36, %v11529_v50  ;;  %v9245_v22 = vpop.f32.mrb[28].mxu0 }
 0x58f   : > { %v9419_v60 = vadd.f32 %v9245_v22, %v11895_v20  ;;  %v6549_v57 = vpop.f32.mrb[29].mxu0  ;;  %v11902_v22 = vld [vmem:[#allocation23_spill] sm:$0xff] }
 0x590   : > { %v6803_v13 = vadd.f32 %v6802_v38, %v11534_v31  ;;  %v9420_v0 = vadd.f32 %v6549_v57, %v11896_v42  ;;  %v9246_v7 = vpop.f32.mrb[30].mxu0 }
 0x591   : > { %v9421_v52 = vadd.f32 %v9246_v7, %v11897_v15  ;;  %v6552_v29 = vpop.f32.mrb[31].mxu0  ;;  %v11557_v24 = vadd.f32 %v9419_v60, %v11403_v37  ;;  %v11903_v15 = vld [vmem:[#allocation24_spill] sm:$0xff] }
 0x592   : > { %v6804_v27 = vadd.f32 %v6803_v13, %v11537_v5  ;;  %v9422_v41 = vadd.f32 %v6552_v29, %v11898_v32  ;;  %v11548_v34 = vadd.f32 %v9420_v0, %v11403_v37 }
 0x593   : > { %v11563_v40 = vadd.f32 %v9421_v52, %v11403_v37 }
 0x594   : > { %v6805_v53 = vadd.f32 %v6804_v27, %v11543_v6  ;;  %v6712_v39 = vadd.f32 %v9422_v41, %v11403_v37  ;;  %v11904_v41 = vld [vmem:[#allocation25_spill] sm:$0xff] }
 0x596   : > { %v6806_v61 = vadd.f32 %v6805_v53, %v11548_v34  ;;  %v11553_v11 = vmul.f32 0.0, %v6712_v39  ;;  %v9249_v56 = vpop.f32.mrb[32].mxu0 }
 0x597   : > { %v9423_v28 = vadd.f32 %v9249_v56, %v11899_v1  ;;  %v6565_v25 = vpop.f32.mrb[33].mxu0 }
 0x598   : > { %v6807_v23 = vadd.f32 %v6806_v61, %v11553_v11  ;;  %v9424_v46 = vadd.f32 %v6565_v25, %v11900_v63  ;;  %v9250_v35 = vpop.f32.mrb[34].mxu0  ;;  %v11905_v61 = vld [vmem:[#allocation26_spill] sm:$0xff]  ;;  %v11906_v63 = vld [vmem:[#allocation27_spill] sm:$0xff] }
 0x599   : > { %v9425_v45 = vadd.f32 %v9250_v35, %v11901_v59  ;;  %v6568_v58 = vpop.f32.mrb[35].mxu0  ;;  %v11578_v27 = vadd.f32 %v9423_v28, %v11403_v37 }
 0x59a   : > { %v6808_v36 = vadd.f32 %v6807_v23, %v11557_v24  ;;  %v6715_v38 = vadd.f32 %v9424_v46, %v11403_v37  ;;  %v9426_v20 = vadd.f32 %v6568_v58, %v11902_v22 }
 0x59b   : > { %v6718_v42 = vadd.f32 %v9425_v45, %v11403_v37 }
 0x59c   : > { %v11568_v57 = vmul.f32 0.0, %v6715_v38  ;;  %v6809_v60 = vadd.f32 %v6808_v36, %v11563_v40  ;;  %v11574_v0 = vadd.f32 %v9426_v20, %v11403_v37  ;;  %v11907_v38 = vld [vmem:[#allocation28_spill] sm:$0xff] }
 0x59d   : > { %v11583_v25 = vmul.f32 0.0, %v6718_v42  ;;  %v11908_v42 = vld [vmem:[#allocation29_spill] sm:$0xff] }
 0x59e   : > { %v6810_v13 = vadd.f32 %v6809_v60, %v11568_v57  ;;  %v9253_v7 = vpop.f32.mrb[36].mxu0 }
 0x59f   : > { %v9427_v52 = vadd.f32 %v9253_v7, %v11903_v15  ;;  %v6581_v29 = vpop.f32.mrb[37].mxu0 }
 0x5a0   : > { %v6811_v32 = vadd.f32 %v6810_v13, %v11574_v0  ;;  %v9428_v53 = vadd.f32 %v6581_v29, %v11904_v41  ;;  %v9254_v39 = vpop.f32.mrb[38].mxu0 }
 0x5a1   : > { %v9429_v56 = vadd.f32 %v9254_v39, %v11905_v61  ;;  %v6584_v1 = vpop.f32.mrb[39].mxu0  ;;  %v6721_v35 = vadd.f32 %v9427_v52, %v11403_v37  ;;  %v11909_v52 = vld [vmem:[#allocation30_spill] sm:$0xff]  ;;  %v11910_v39 = vld [vmem:[#allocation31_spill] sm:$0xff] }
 0x5a2   : > { %v6812_v23 = vadd.f32 %v6811_v32, %v11578_v27  ;;  %v9430_v46 = vadd.f32 %v6584_v1, %v11906_v63  ;;  %v11589_v59 = vadd.f32 %v9428_v53, %v11403_v37 }
 0x5a3   : > { %v11597_v60 = vmul.f32 0.0, %v6721_v35  ;;  %v11603_v41 = vadd.f32 %v9429_v56, %v11403_v37 }
 0x5a4   : > { %v6813_v28 = vadd.f32 %v6812_v23, %v11583_v25  ;;  %v11594_v58 = vadd.f32 %v9430_v46, %v11403_v37 }
 0x5a6   : > { %v6814_v45 = vadd.f32 %v6813_v28, %v11589_v59  ;;  %v9257_v36 = vpop.f32.mrb[40].mxu0 }
 0x5a7   : > { %v9431_v22 = vadd.f32 %v9257_v36, %v11907_v38  ;;  %v6597_v20 = vpop.f32.mrb[41].mxu0 }
 0x5a8   : > { %v6815_v13 = vadd.f32 %v6814_v45, %v11594_v58  ;;  %v9432_v7 = vadd.f32 %v6597_v20, %v11908_v42  ;;  %v9258_v15 = vpop.f32.mrb[42].mxu0  ;;  %v11911_v45 = vld [vmem:[#allocation32_spill] sm:$0xff] }
 0x5a9   : > { %v9433_v29 = vadd.f32 %v9258_v15, %v11909_v52  ;;  %v6600_v32 = vpop.f32.mrb[43].mxu0  ;;  %v11617_v38 = vadd.f32 %v9431_v22, %v11403_v37  ;;  %v11913_v15 = vld [vmem:[#allocation34_spill] sm:$0xff] }
 0x5aa   : > { %v6816_v53 = vadd.f32 %v6815_v13, %v11597_v60  ;;  %v9434_v61 = vadd.f32 %v6600_v32, %v11910_v39  ;;  %v11608_v1 = vadd.f32 %v9432_v7, %v11403_v37  ;;  %v11912_v13 = vld [vmem:[#allocation33_spill] sm:$0xff] }
 0x5ac   : > { %v6817_v23 = vadd.f32 %v6816_v53, %v11603_v41  ;;  %v6724_v63 = vadd.f32 %v9434_v61, %v11403_v37  ;;  %v11623_v53 = vadd.f32 %v9433_v29, %v11403_v37 }
 0x5ae   : > { %v6818_v46 = vadd.f32 %v6817_v23, %v11608_v1  ;;  %v11613_v35 = vmul.f32 0.0, %v6724_v63  ;;  %v9261_v28 = vpop.f32.mrb[44].mxu0  ;;  %v11914_v23 = vld [vmem:[#allocation35_spill] sm:$0xff] }
 0x5af   : > { %v9435_v36 = vadd.f32 %v9261_v28, %v11911_v45  ;;  %v6613_v56 = vpop.f32.mrb[45].mxu0 }
 0x5b0   : > { %v6819_v20 = vadd.f32 %v6818_v46, %v11613_v35  ;;  %v9436_v42 = vadd.f32 %v6613_v56, %v11912_v13  ;;  %v9262_v7 = vpop.f32.mrb[46].mxu0 }
 0x5b1   : > { %v9437_v52 = vadd.f32 %v9262_v7, %v11913_v15  ;;  %v6616_v32 = vpop.f32.mrb[47].mxu0  ;;  %v11637_v29 = vadd.f32 %v9435_v36, %v11403_v37  ;;  %v6922_v36 = vld [vmem:[%s11834_s9 + $0x8] sm:$0xff] }
 0x5b2   : > { %v6820_v39 = vadd.f32 %v6819_v20, %v11617_v38  ;;  %v6727_v61 = vadd.f32 %v9436_v42, %v11403_v37  ;;  %v9438_v63 = vadd.f32 %v6616_v32, %v11914_v23 }
 0x5b3   : > { %v6730_v45 = vadd.f32 %v9437_v52, %v11403_v37  ;;  %11916 = vst [vmem:[#allocation6_spill] sm:$0xff] %v11637_v29 }
 0x5b4   : > { %v11628_v28 = vmul.f32 0.0, %v6727_v61  ;;  %v6821_v22 = vadd.f32 %v6820_v39, %v11623_v53  ;;  %v11634_v56 = vadd.f32 %v9438_v63, %v11403_v37  ;;  %v11918_v63 = vmov 0.0   ;;  %v6921_v37 = vld [vmem:[%s11834_s9] sm:$0xff] }
 0x5b5   : > { %v11640_v13 = vmul.f32 0.0, %v6730_v45  ;;  %v6849_v45 = vld [vmem:[%s11833_s8] sm:$0x1] }
 0x5b6   : > { %v6822_v46 = vadd.f32 %v6821_v22, %v11628_v28  ;;  %11915 = vst [vmem:[#allocation5_spill] sm:$0xff] %v11634_v56 }
 0x5b7   : > { %11917 = vst [vmem:[#allocation7_spill] sm:$0xff] %v11640_v13 }
 0x5b8   : > { %v6823_v20 = vadd.f32 %v6822_v46, %v11634_v56  ;;  %v9365_v46 = vpack.c.bf16 %v6922_v36, %v6921_v37  ;;  %v11919_v36 = vld [vmem:[#allocation4_spill] sm:$0xff]  ;;  %v7257_v56 = vld [vmem:[%s11836_s11 + $0x20] sm:$0xff] }
 0x5ba   : > { %v6824_v42 = vadd.f32 %v6823_v20, %v11637_v29  ;;  %v11920_v29 = vmov 0.0|0.0  }
 0x5bc   : > { %v6825_v7 = vadd.f32 %v6824_v42, %v11640_v13  ;;  %v7010_v13 = vld [vmem:[#allocation2 + $0x49] sm:$0xff] }
 0x5be   : > { %v6826_v15 = vrot.slane %v6825_v7, 4 }
 0x5c0   : > { %v6827_v32 = vadd.f32 %v6826_v15, %v6825_v7 }
 0x5c2   : > { %v6828_v39 = vrot.slane %v6827_v32, 2 }
 0x5c4   : > { %v6829_v61 = vadd.f32 %v6828_v39, %v6827_v32  ;;  %v6923_v32 = vld [vmem:[%s11835_s10] sm:$0x1] }
 0x5c6   : > { %v6830_v23 = vrot.slane %v6829_v61, 1 }
 0x5c8   : > { %v6831_v52 = vadd.f32 %v6830_v23, %v6829_v61 }
 0x5ca   : > { %v6832_v22 = vmul.f32 0.00390625, %v6831_v52 }
 0x5cc   : > { %9296 = vmatmul.mubr.f32.vlgmr.msra.gmra.mrb[8].mxu1 %v6832_v22 }
 0x5cd   : > { %9302 = vmatprep.mubr.msk.f32.mxu1 %vm10076_vm0, %v11918_v63  ;;  %9366 = vmatpush3.bf16.msra.mxu1 %v9365_v46  ;;  %v7054_v46 = vsub.s32 0, %v11919_v36 }
 0x5ce   : > { %9367 = vmatprep.subr.bf16.mxu1 %v11844_v4 }
 0x69f   : > { %v6916_v20 = vpop.f32.mrb[8].mxu1 }
 0x6a0   : > { %v6917_v42 = vadd.f32 %v6916_v20, %v6849_v45  ;;  %v9297_v7 = vpop.f32.mrb[9].mxu1 }
 0x6a1   : > { %v7004_v7 = vld [vmem:[#allocation2 + $0x19] sm:$0xff] }
 0x6a2   : > { %v6920_v15 = vmax.f32 %v6917_v42, 0.0 }
 0x6a4   : > { %9303 = vmatmul.mubr.msk.f32.vlgmr.msra.gmra.mrb[10].mxu1 %vm6924_vm6, %v6920_v15  ;;  %v7005_v15 = vld [vmem:[#allocation2 + $0x21] sm:$0xff] }
 0x6a5   : > { %9337 = vmatprep.mubr.msk.f32.mxu1 %vm10076_vm0, %v11918_v63 }
 0x777   : > { %v6994_v39 = vpop.f32.mrb[10].mxu1 }
 0x778   : > { %v6995_v61 = vadd.f32 %v6994_v39, %v6923_v32  ;;  %v9304_v23 = vpop.f32.mrb[11].mxu1 }
 0x77a   : > { %v7844_v52 = vmul.f32 -1.442695, %v6995_v61 }
 0x77c   : > { %10023 = vpow2.f32 %v7844_v52  ;;  %v7006_v52 = vld [vmem:[#allocation2 + $0x29] sm:$0xff] }
 0x786   : > { %v10024_v22 = vpop.eup %10023 }
 0x787   : > { %v7001_v37 = vadd.f32 1.0, %v10024_v22 }
 0x789   : > { %10025 = vrcp.f32 %v7001_v37 }
 0x793   : > { %v10026_v45 = vpop.eup %10025 }
 0x794   : > { %v11662_v20 = vrot.slane %v10026_v45, %v7054_v46  ;;  %v7007_v46 = vld [vmem:[#allocation2 + $0x31] sm:$0xff] }
 0x796   : > { %v7056_v63 = vmul.f32 %v11662_v20, %v11410_v19  ;;  %v7057_v42 = vmul.f32 %v11662_v20, %v11413_v12  ;;  %v7058_v32 = vmul.f32 %v11662_v20, %v11415_v21  ;;  %v7059_v23 = vmul.f32 %v11662_v20, %v11421_v14  ;;  %v7253_v12 = vld [vmem:[%s11836_s11] sm:$0xff]  ;;  %v7254_v21 = vld [vmem:[%s11836_s11 + $0x8] sm:$0xff] }
 0x797   : > { %v7060_v22 = vmul.f32 %v11662_v20, %v11427_v48  ;;  %v7061_v45 = vmul.f32 %v11662_v20, %v11433_v18  ;;  %v7062_v48 = vmul.f32 %v11662_v20, %v11437_v62  ;;  %v7063_v18 = vmul.f32 %v11662_v20, %v11443_v54 }
 0x798   : > { %v7104_v39 = vadd.f32 %v7056_v63, %v7004_v7  ;;  %v7105_v61 = vadd.f32 %v7057_v42, %v7005_v15  ;;  %v7106_v37 = vadd.f32 %v7058_v32, %v7006_v52  ;;  %v7107_v14 = vadd.f32 %v7059_v23, %v7007_v46  ;;  %v7008_v63 = vld [vmem:[#allocation2 + $0x39] sm:$0xff]  ;;  %v7255_v42 = vld [vmem:[%s11836_s11 + $0x10] sm:$0xff]  ;;  %v7009_v52 = vld [vmem:[#allocation2 + $0x41] sm:$0xff] }
 0x799   : > { %v7256_v7 = vld [vmem:[%s11836_s11 + $0x18] sm:$0xff]  ;;  %v7108_v15 = vadd.f32 %v7060_v22, %v7008_v63  ;;  %v7109_v23 = vadd.f32 %v7061_v45, %v7009_v52  ;;  %v7258_v22 = vld [vmem:[%s11836_s11 + $0x28] sm:$0xff]  ;;  %v7110_v54 = vadd.f32 %v7062_v48, %v7010_v13 }
 0x79a   : > { %v7152_v36 = vmax.f32 %v7104_v39, 0.0  ;;  %v7153_v19 = vmax.f32 %v7105_v61, 0.0  ;;  %v7154_v32 = vmax.f32 %v7106_v37, 0.0  ;;  %v9368_v61 = vpack.c.bf16 %v7254_v21, %v7253_v12  ;;  %v7011_v12 = vld [vmem:[#allocation2 + $0x51] sm:$0xff] }
 0x79b   : > { %v7155_v46 = vmax.f32 %v7107_v14, 0.0  ;;  %v9371_v62 = vpack.c.bf16 %v7256_v7, %v7255_v42  ;;  %v7064_v37 = vmul.f32 %v11662_v20, %v11448_v10  ;;  %v7065_v21 = vmul.f32 %v11662_v20, %v11454_v16  ;;  %v7012_v7 = vld [vmem:[#allocation2 + $0x59] sm:$0xff] }
 0x79c   : > { %v7200_v39 = vadd.f32 %v7153_v19, %v7152_v36  ;;  %9369 = vmatpush3.bf16.msra.mxu1 %v9368_v61  ;;  %v7156_v36 = vmax.f32 %v7108_v15, 0.0  ;;  %v7111_v45 = vadd.f32 %v7063_v18, %v7011_v12  ;;  %v7157_v14 = vmax.f32 %v7109_v23, 0.0  ;;  %v7013_v15 = vld [vmem:[#allocation2 + $0x61] sm:$0xff]  ;;  %v7014_v23 = vld [vmem:[#allocation2 + $0x69] sm:$0xff] }
 0x79d   : > { %9370 = vmatprep.subr.bf16.mxu1 %v11920_v29  ;;  %v9374_v42 = vpack.c.bf16 %v7258_v22, %v7257_v56  ;;  %v7066_v10 = vmul.f32 %v11662_v20, %v11458_v9  ;;  %v7112_v16 = vadd.f32 %v7064_v37, %v7012_v7  ;;  %v7158_v13 = vmax.f32 %v7110_v54, 0.0  ;;  %v7262_v9 = vld [vmem:[%s11836_s11 + $0x48] sm:$0xff]  ;;  %v7015_v54 = vld [vmem:[#allocation2 + $0x71] sm:$0xff] }
 0x79e   : > { %v7201_v4 = vadd.f32 %v7200_v39, %v7154_v32  ;;  %v7259_v32 = vld [vmem:[%s11836_s11 + $0x30] sm:$0xff]  ;;  %v7067_v56 = vmul.f32 %v11662_v20, %v11463_v3  ;;  %v7113_v39 = vadd.f32 %v7065_v21, %v7013_v15  ;;  %v7159_v61 = vmax.f32 %v7111_v45, 0.0 }
 0x79f   : > { %v7114_v3 = vadd.f32 %v7066_v10, %v7014_v23  ;;  %v7160_v22 = vmax.f32 %v7112_v16, 0.0  ;;  %v7071_v10 = vmul.f32 %v11662_v20, %v11483_v8  ;;  %v7019_v23 = vld [vmem:[#allocation2 + $0x91] sm:$0xff] }
 0x7a0   : > { %v7202_v19 = vadd.f32 %v7201_v4, %v7155_v46  ;;  %9372 = vmatpush3.bf16.msra.mxu1 %v9371_v62  ;;  %v7260_v4 = vld [vmem:[%s11836_s11 + $0x38] sm:$0xff]  ;;  %v7261_v46 = vld [vmem:[%s11836_s11 + $0x40] sm:$0xff]  ;;  %v7068_v62 = vmul.f32 %v11662_v20, %v11469_v30  ;;  %v7161_v12 = vmax.f32 %v7113_v39, 0.0 }
 0x7a1   : > { %9373 = vmatprep.subr.bf16.mxu1 %v11920_v29  ;;  %v9377_v18 = vpack.c.bf16 %v7260_v4, %v7259_v32  ;;  %v9380_v45 = vpack.c.bf16 %v7262_v9, %v7261_v46  ;;  %v7264_v30 = vld [vmem:[%s11836_s11 + $0x58] sm:$0xff]  ;;  %v7162_v7 = vmax.f32 %v7114_v3, 0.0  ;;  %v7017_v4 = vld [vmem:[#allocation2 + $0x81] sm:$0xff]  ;;  %v7073_v46 = vmul.f32 %v11662_v20, %v11493_v44 }
 0x7a2   : > { %v7203_v63 = vadd.f32 %v7202_v19, %v7156_v36  ;;  %v7069_v36 = vmul.f32 %v11662_v20, %v11474_v26  ;;  %v7115_v19 = vadd.f32 %v7067_v56, %v7015_v54  ;;  %v7018_v56 = vld [vmem:[#allocation2 + $0x89] sm:$0xff]  ;;  %v7265_v39 = vld [vmem:[%s11836_s11 + $0x60] sm:$0xff]  ;;  %v7119_v9 = vadd.f32 %v7071_v10, %v7019_v23  ;;  %v7023_v10 = vld [vmem:[#allocation2 + $0xb1] sm:$0xff] }
 0x7a3   : > { %v7267_v54 = vld [vmem:[%s11836_s11 + $0x70] sm:$0xff] }
 0x7a4   : > { %v7204_v48 = vadd.f32 %v7203_v63, %v7157_v14  ;;  %9375 = vmatpush3.bf16.msra.mxu1 %v9374_v42  ;;  %v7016_v14 = vld [vmem:[#allocation2 + $0x79] sm:$0xff]  ;;  %v7263_v63 = vld [vmem:[%s11836_s11 + $0x50] sm:$0xff]  ;;  %v7070_v42 = vmul.f32 %v11662_v20, %v11477_v33  ;;  %v7117_v16 = vadd.f32 %v7069_v36, %v7017_v4  ;;  %v7266_v33 = vld [vmem:[%s11836_s11 + $0x68] sm:$0xff]  ;;  %v7074_v36 = vmul.f32 %v11662_v20, %v11497_v49 }
 0x7a5   : > { %9376 = vmatprep.subr.bf16.mxu1 %v11920_v29  ;;  %v7116_v26 = vadd.f32 %v7068_v62, %v7016_v14  ;;  %v9383_v15 = vpack.c.bf16 %v7264_v30, %v7263_v63  ;;  %v7167_v63 = vmax.f32 %v7119_v9, 0.0  ;;  %v7026_v23 = vld [vmem:[#allocation2 + $0xc9] sm:$0xff] }
 0x7a6   : > { %v7205_v52 = vadd.f32 %v7204_v48, %v7158_v13  ;;  %v7163_v13 = vmax.f32 %v7115_v19, 0.0  ;;  %v7118_v8 = vadd.f32 %v7070_v42, %v7018_v56  ;;  %v7165_v62 = vmax.f32 %v7117_v16, 0.0 }
 0x7a7   : > { %v7077_v16 = vmul.f32 %v11662_v20, %v11514_v47  ;;  %v7078_v56 = vmul.f32 %v11662_v20, %v11518_v51  ;;  %v7080_v47 = vmul.f32 %v11662_v20, %v11529_v50  ;;  %v7081_v51 = vmul.f32 %v11662_v20, %v11534_v31 }
 0x7a8   : > { %v7206_v37 = vadd.f32 %v7205_v52, %v7159_v61  ;;  %9378 = vmatpush3.bf16.msra.mxu1 %v9377_v18  ;;  %v7072_v61 = vmul.f32 %v11662_v20, %v11488_v43  ;;  %v7164_v52 = vmax.f32 %v7116_v26, 0.0  ;;  %v7268_v43 = vld [vmem:[%s11836_s11 + $0x78] sm:$0xff]  ;;  %v7166_v19 = vmax.f32 %v7118_v8, 0.0  ;;  %v7022_v26 = vld [vmem:[#allocation2 + $0xa9] sm:$0xff] }
 0x7a9   : > { %9379 = vmatprep.subr.bf16.mxu1 %v11920_v29  ;;  %v9389_v42 = vpack.c.bf16 %v7268_v43, %v7267_v54  ;;  %v7028_v43 = vld [vmem:[#allocation2 + $0xd9] sm:$0xff]  ;;  %v7083_v50 = vmul.f32 %v11662_v20, %v11543_v6  ;;  %v7084_v31 = vmul.f32 %v11662_v20, %v11548_v34  ;;  %v7086_v6 = vmul.f32 %v11662_v20, %v11557_v24 }
 0x7aa   : > { %v7207_v21 = vadd.f32 %v7206_v37, %v7160_v22  ;;  %v9386_v22 = vpack.c.bf16 %v7266_v33, %v7265_v39  ;;  %v7020_v37 = vld [vmem:[#allocation2 + $0x99] sm:$0xff]  ;;  %v7087_v34 = vmul.f32 %v11662_v20, %v11563_v40  ;;  %v7089_v24 = vmul.f32 %v11662_v20, %v11574_v0 }
 0x7ab   : > { %v7120_v44 = vadd.f32 %v7072_v61, %v7020_v37  ;;  %v7025_v61 = vld [vmem:[#allocation2 + $0xc1] sm:$0xff]  ;;  %v7090_v40 = vmul.f32 %v11662_v20, %v11578_v27  ;;  %v7092_v0 = vmul.f32 %v11662_v20, %v11589_v59  ;;  %v7093_v27 = vmul.f32 %v11662_v20, %v11594_v58 }
 0x7ac   : > { %v7208_v32 = vadd.f32 %v7207_v21, %v7161_v12  ;;  %9381 = vmatpush3.bf16.msra.mxu1 %v9380_v45  ;;  %v7021_v21 = vld [vmem:[#allocation2 + $0xa1] sm:$0xff]  ;;  %v7075_v45 = vmul.f32 %v11662_v20, %v11503_v2  ;;  %v7125_v8 = vadd.f32 %v7077_v16, %v7025_v61  ;;  %v7095_v59 = vmul.f32 %v11662_v20, %v11603_v41 }
 0x7ad   : > { %9382 = vmatprep.subr.bf16.mxu1 %v11920_v29  ;;  %v7121_v14 = vadd.f32 %v7073_v46, %v7021_v21  ;;  %v7168_v49 = vmax.f32 %v7120_v44, 0.0  ;;  %v7126_v46 = vadd.f32 %v7078_v56, %v7026_v23  ;;  %v7096_v58 = vmul.f32 %v11662_v20, %v11608_v1 }
 0x7ae   : > { %v7209_v48 = vadd.f32 %v7208_v32, %v7162_v7  ;;  %v7076_v7 = vmul.f32 %v11662_v20, %v11508_v55  ;;  %v7122_v32 = vadd.f32 %v7074_v36, %v7022_v26  ;;  %v7079_v55 = vmul.f32 %v11662_v20, %v11523_v17 }
 0x7af   : > { %v7169_v2 = vmax.f32 %v7121_v14, 0.0  ;;  %v7173_v37 = vmax.f32 %v7125_v8, 0.0  ;;  %v7082_v17 = vmul.f32 %v11662_v20, %v11537_v5  ;;  %v7128_v36 = vadd.f32 %v7080_v47, %v7028_v43  ;;  %v7035_v8 = vld [vmem:[#allocation2 + $0x111] sm:$0xff]  ;;  %v7036_v47 = vld [vmem:[#allocation2 + $0x119] sm:$0xff] }
 0x7b0   : > { %v7210_v18 = vadd.f32 %v7209_v48, %v7163_v13  ;;  %9384 = vmatpush3.bf16.msra.mxu1 %v9383_v15  ;;  %v7123_v13 = vadd.f32 %v7075_v45, %v7023_v10  ;;  %v7024_v15 = vld [vmem:[#allocation2 + $0xb9] sm:$0xff]  ;;  %v7174_v44 = vmax.f32 %v7126_v46, 0.0  ;;  %v7085_v5 = vmul.f32 %v11662_v20, %v11553_v11 }
 0x7b1   : > { %9385 = vmatprep.subr.bf16.mxu1 %v11920_v29  ;;  %v7124_v39 = vadd.f32 %v7076_v7, %v7024_v15  ;;  %v7031_v7 = vld [vmem:[#allocation2 + $0xf1] sm:$0xff]  ;;  %v7032_v10 = vld [vmem:[#allocation2 + $0xf9] sm:$0xff]  ;;  %v7088_v11 = vmul.f32 %v11662_v20, %v11568_v57  ;;  %v7091_v57 = vmul.f32 %v11662_v20, %v11583_v25  ;;  %v7094_v25 = vmul.f32 %v11662_v20, %v11597_v60 }
 0x7b2   : > { %v7211_v3 = vadd.f32 %v7210_v18, %v7164_v52  ;;  %v7171_v52 = vmax.f32 %v7123_v13, 0.0  ;;  %v7132_v16 = vadd.f32 %v7084_v31, %v7032_v10  ;;  %v7041_v31 = vld [vmem:[#allocation2 + $0x141] sm:$0xff]  ;;  %v7097_v60 = vmul.f32 %v11662_v20, %v11613_v35 }
 0x7b3   : > { %v7172_v9 = vmax.f32 %v7124_v39, 0.0  ;;  %v7136_v46 = vadd.f32 %v7088_v11, %v7036_v47  ;;  %v7098_v41 = vmul.f32 %v11662_v20, %v11617_v38  ;;  %v7099_v1 = vmul.f32 %v11662_v20, %v11623_v53  ;;  %v7046_v11 = vld [vmem:[#allocation2 + $0x169] sm:$0xff]  ;;  %v7048_v47 = vld [vmem:[#allocation2 + $0x179] sm:$0xff] }
 0x7b4   : > { %v7212_v12 = vadd.f32 %v7211_v3, %v7165_v62  ;;  %9387 = vmatpush3.bf16.msra.mxu1 %v9386_v22  ;;  %v7027_v3 = vld [vmem:[#allocation2 + $0xd1] sm:$0xff]  ;;  %v7180_v61 = vmax.f32 %v7132_v16, 0.0  ;;  %v7100_v35 = vmul.f32 %v11662_v20, %v11628_v28 }
 0x7b5   : > { %9388 = vmatprep.subr.bf16.mxu1 %v11920_v29  ;;  %v7170_v29 = vmax.f32 %v7122_v32, 0.0  ;;  %v7127_v22 = vadd.f32 %v7079_v55, %v7027_v3  ;;  %v7131_v32 = vadd.f32 %v7083_v50, %v7031_v7  ;;  %v7037_v3 = vld [vmem:[#allocation2 + $0x121] sm:$0xff]  ;;  %v7042_v7 = vld [vmem:[#allocation2 + $0x149] sm:$0xff] }
 0x7b6   : > { %v7213_v30 = vadd.f32 %v7212_v12, %v7166_v19  ;;  %v7029_v12 = vld [vmem:[#allocation2 + $0xe1] sm:$0xff] }
 0x7b7   : > { %v7129_v21 = vadd.f32 %v7081_v51, %v7029_v12  ;;  %v7175_v45 = vmax.f32 %v7127_v22, 0.0  ;;  %v7179_v56 = vmax.f32 %v7131_v32, 0.0  ;;  %v7137_v51 = vadd.f32 %v7089_v24, %v7037_v3  ;;  %v11921_v24 = vld [vmem:[#allocation5_spill] sm:$0xff] }
 0x7b8   : > { %v7214_v4 = vadd.f32 %v7213_v30, %v7167_v63  ;;  %9390 = vmatpush3.bf16.msra.mxu1 %v9389_v42  ;;  %v7030_v63 = vld [vmem:[#allocation2 + $0xe9] sm:$0xff]  ;;  %v7176_v42 = vmax.f32 %v7128_v36, 0.0  ;;  %v7101_v38 = vmul.f32 %v11662_v20, %v11921_v24  ;;  %v7049_v3 = vld [vmem:[#allocation2 + $0x181] sm:$0xff] }
 0x7b9   : > { %v7130_v30 = vadd.f32 %v7082_v17, %v7030_v63  ;;  %v7184_v17 = vmax.f32 %v7136_v46, 0.0  ;;  %v7185_v12 = vmax.f32 %v7137_v51, 0.0  ;;  %v7148_v46 = vadd.f32 %v7100_v35, %v7048_v47 }
 0x7ba   : > { %v7215_v48 = vadd.f32 %v7214_v4, %v7168_v49  ;;  %v7177_v49 = vmax.f32 %v7129_v21, 0.0  ;;  %v7040_v21 = vld [vmem:[#allocation2 + $0x139] sm:$0xff]  ;;  %v7149_v51 = vadd.f32 %v7101_v38, %v7049_v3 }
 0x7bb   : > { %v7178_v13 = vmax.f32 %v7130_v30, 0.0  ;;  %v7141_v30 = vadd.f32 %v7093_v27, %v7041_v31 }
 0x7bc   : > { %v7216_v33 = vadd.f32 %v7215_v48, %v7169_v2  ;;  %v7033_v48 = vld [vmem:[#allocation2 + $0x101] sm:$0xff]  ;;  %v7197_v27 = vmax.f32 %v7149_v51, 0.0 }
 0x7bd   : > { %v7133_v15 = vadd.f32 %v7085_v5, %v7033_v48  ;;  %v7142_v5 = vadd.f32 %v7094_v25, %v7042_v7 }
 0x7be   : > { %v7217_v18 = vadd.f32 %v7216_v33, %v7170_v29  ;;  %v7034_v29 = vld [vmem:[#allocation2 + $0x109] sm:$0xff] }
 0x7bf   : > { %v7134_v33 = vadd.f32 %v7086_v6, %v7034_v29  ;;  %v7189_v6 = vmax.f32 %v7141_v30, 0.0  ;;  %v7190_v48 = vmax.f32 %v7142_v5, 0.0 }
 0x7c0   : > { %v7218_v62 = vadd.f32 %v7217_v18, %v7171_v52  ;;  %v7135_v52 = vadd.f32 %v7087_v34, %v7035_v8  ;;  %v7181_v18 = vmax.f32 %v7133_v15, 0.0  ;;  %v7045_v15 = vld [vmem:[#allocation2 + $0x161] sm:$0xff]  ;;  %v7047_v8 = vld [vmem:[#allocation2 + $0x171] sm:$0xff] }
 0x7c2   : > { %v7219_v54 = vadd.f32 %v7218_v62, %v7172_v9  ;;  %v7182_v9 = vmax.f32 %v7134_v33, 0.0  ;;  %v7183_v22 = vmax.f32 %v7135_v52, 0.0  ;;  %v7146_v33 = vadd.f32 %v7098_v41, %v7046_v11 }
 0x7c3   : > { %v7147_v52 = vadd.f32 %v7099_v1, %v7047_v8 }
 0x7c4   : > { %v7220_v19 = vadd.f32 %v7219_v54, %v7173_v37  ;;  %v7038_v54 = vld [vmem:[#allocation2 + $0x129] sm:$0xff] }
 0x7c5   : > { %v7138_v43 = vadd.f32 %v7090_v40, %v7038_v54  ;;  %v11922_v40 = vld [vmem:[#allocation6_spill] sm:$0xff] }
 0x7c6   : > { %v7221_v14 = vadd.f32 %v7220_v19, %v7174_v44  ;;  %v7039_v44 = vld [vmem:[#allocation2 + $0x131] sm:$0xff]  ;;  %v7102_v53 = vmul.f32 %v11662_v20, %v11922_v40  ;;  %v7050_v54 = vld [vmem:[#allocation2 + $0x189] sm:$0xff] }
 0x7c7   : > { %v7139_v19 = vadd.f32 %v7091_v57, %v7039_v44  ;;  %v11923_v57 = vld [vmem:[#allocation7_spill] sm:$0xff] }
 0x7c8   : > { %v7222_v26 = vadd.f32 %v7221_v14, %v7175_v45  ;;  %v7140_v45 = vadd.f32 %v7092_v0, %v7040_v21  ;;  %v7186_v14 = vmax.f32 %v7138_v43, 0.0  ;;  %v7103_v28 = vmul.f32 %v11662_v20, %v11923_v57 }
 0x7c9   : > { %v7150_v0 = vadd.f32 %v7102_v53, %v7050_v54  ;;  %v7196_v43 = vmax.f32 %v7148_v46, 0.0 }
 0x7ca   : > { %v7223_v4 = vadd.f32 %v7222_v26, %v7176_v42  ;;  %v7187_v42 = vmax.f32 %v7139_v19, 0.0  ;;  %v7188_v32 = vmax.f32 %v7140_v45, 0.0 }
 0x7cc   : > { %v7224_v2 = vadd.f32 %v7223_v4, %v7177_v49  ;;  %v7043_v4 = vld [vmem:[#allocation2 + $0x151] sm:$0xff] }
 0x7cd   : > { %v7143_v10 = vadd.f32 %v7095_v59, %v7043_v4 }
 0x7ce   : > { %v7225_v39 = vadd.f32 %v7224_v2, %v7178_v13  ;;  %v7044_v13 = vld [vmem:[#allocation2 + $0x159] sm:$0xff] }
 0x7cf   : > { %v7144_v2 = vadd.f32 %v7096_v58, %v7044_v13 }
 0x7d0   : > { %v7226_v55 = vadd.f32 %v7225_v39, %v7179_v56  ;;  %v7145_v56 = vadd.f32 %v7097_v60, %v7045_v15  ;;  %v7191_v39 = vmax.f32 %v7143_v10, 0.0 }
 0x7d2   : > { %v7227_v23 = vadd.f32 %v7226_v55, %v7180_v61  ;;  %v7192_v61 = vmax.f32 %v7144_v2, 0.0 }
 0x7d4   : > { %v7228_v62 = vadd.f32 %v7227_v23, %v7181_v18  ;;  %v7193_v18 = vmax.f32 %v7145_v56, 0.0 }
 0x7d6   : > { %v7229_v37 = vadd.f32 %v7228_v62, %v7182_v9  ;;  %v7194_v9 = vmax.f32 %v7146_v33, 0.0 }
 0x7d8   : > { %v7230_v36 = vadd.f32 %v7229_v37, %v7183_v22  ;;  %v7195_v22 = vmax.f32 %v7147_v52, 0.0 }
 0x7da   : > { %v7231_v50 = vadd.f32 %v7230_v36, %v7184_v17  ;;  %v7051_v36 = vld [vmem:[#allocation2 + $0x191] sm:$0xff] }
 0x7db   : > { %v7151_v44 = vadd.f32 %v7103_v28, %v7051_v36 }
 0x7dc   : > { %v7232_v63 = vadd.f32 %v7231_v50, %v7185_v12  ;;  %v7198_v12 = vmax.f32 %v7150_v0, 0.0 }
 0x7dd   : > { %v7199_v21 = vmax.f32 %v7151_v44, 0.0 }
 0x7de   : > { %v7233_v26 = vadd.f32 %v7232_v63, %v7186_v14 }
 0x7e0   : > { %v7234_v49 = vadd.f32 %v7233_v26, %v7187_v42  ;;  %v7269_v42 = vld [vmem:[%s11837_s12] sm:$0x1] }
 0x7e2   : > { %v7235_v16 = vadd.f32 %v7234_v49, %v7188_v32 }
 0x7e4   : > { %v7236_v34 = vadd.f32 %v7235_v16, %v7189_v6 }
 0x7e6   : > { %v7237_v29 = vadd.f32 %v7236_v34, %v7190_v48 }
 0x7e8   : > { %v7238_v55 = vadd.f32 %v7237_v29, %v7191_v39 }
 0x7ea   : > { %v7239_v23 = vadd.f32 %v7238_v55, %v7192_v61 }
 0x7ec   : > { %v7240_v62 = vadd.f32 %v7239_v23, %v7193_v18 }
 0x7ee   : > { %v7241_v37 = vadd.f32 %v7240_v62, %v7194_v9 }
 0x7f0   : > { %v7242_v17 = vadd.f32 %v7241_v37, %v7195_v22 }
 0x7f2   : > { %v7243_v19 = vadd.f32 %v7242_v17, %v7196_v43 }
 0x7f4   : > { %v7244_v50 = vadd.f32 %v7243_v19, %v7197_v27 }
 0x7f6   : > { %v7245_v25 = vadd.f32 %v7244_v50, %v7198_v12 }
 0x7f8   : > { %v7246_v45 = vadd.f32 %v7245_v25, %v7199_v21 }
 0x7fa   : > { %v7247_v14 = vrot.slane %v7246_v45, 4 }
 0x7fc   : > { %v7248_v63 = vadd.f32 %v7247_v14, %v7246_v45 }
 0x7fe   : > { %v7249_v20 = vrot.slane %v7248_v63, 2 }
 0x800   : > { %v7250_v31 = vadd.f32 %v7249_v20, %v7248_v63 }
 0x802   : > { %v7251_v59 = vrot.slane %v7250_v31, 1 }
 0x804   : > { %v7252_v30 = vadd.f32 %v7251_v59, %v7250_v31 }
 0x806   : > { %9338 = vmatmul.mubr.f32.vlgmr.msra.gmra.mrb[12].mxu1 %v7252_v30 }
 0x8d9   : > { %v7336_v26 = vpop.f32.mrb[12].mxu1 }
 0x8da   : > { %v7337_v7 = vadd.f32 %v7336_v26, %v7269_v42  ;;  %v9339_v58 = vpop.f32.mrb[13].mxu1 }
 0x8dc   : > { %7340 = vst [vmem:[%s436_s24] sm:$0x1] %v7337_v7 }
 0x8dd PF: > { %s23_s25 = sadd.s32 1, %s10073_s25  }
 0x8de   : > { %p20_p4 = scmp.ge.s32.totalorder %s23_s25, 4  }
 0x8e0   :  { %22 = sbr.rel (!%p20_p4) target bundleno = 1 (0x1), region = 110 }

</bundles_post_ra>
